<compile_context>
chip_gen: v5e
topology: v5e:2x2
jax: 0.10.0
libtpu: 0.0.40
codegen_flags: <defaults>
</compile_context>

<pallas_src>
import jax
import jax.numpy as jnp
from jax.experimental import pallas as pl
from jax.experimental.pallas import tpu as pltpu

_LANES = 128
_CHUNK_ROWS = 128          # rows per unrolled inner step (16 f32 vregs per temp)
_SMALL_N = 1 << 16         # below this, pure-XLA path (dispatch/DMA overhead dominates)
_PAD_VALUE = 1024.0        # softplus(-1024) == 0 exactly in f32; exact in f16/bf16 too


def _round_up(x, m):
    return (x + m - 1) // m * m


def _softplus_neg_sum(x):
    # sum(softplus(-x)) in f32, numerically stable.  log(1+t), t = exp(-|x|) <= 1,
    # is used instead of log1p for Mosaic-lowering safety; abs error < 1e-7/elem.
    x = x.astype(jnp.float32)
    return jnp.sum(jnp.maximum(-x, 0.0) + jnp.log(1.0 + jnp.exp(-jnp.abs(x))))


def _make_kernel(tile_rows, inner_blocks, num_blocks, last_rows, has_overhang):
    num_chunks = tile_rows // _CHUNK_ROWS
    ragged = last_rows != tile_rows

    def kernel(x_ref, out_ref):
        p = pl.program_id(0)               # parallel (per-TensorCore) axis
        i = pl.program_id(1)               # reduction axis ("arbitrary")
        g = p * inner_blocks + i           # global row-block index

        @pl.when(i == 0)
        def _init():
            out_ref[...] = jnp.zeros_like(out_ref)

        def accumulate(valid_rows):
            # valid_rows is a Python int (None => every row of the tile is valid).
            if valid_rows is None:
                n_chunks = num_chunks
            else:
                n_chunks = -(-valid_rows // _CHUNK_ROWS)

            def chunk(c, carry):
                start = pl.multiple_of(c * _CHUNK_ROWS, _CHUNK_ROWS)
                x = x_ref[pl.ds(start, _CHUNK_ROWS), :].astype(jnp.float32)
                # BCE-with-logits vs an all-ones target == softplus(-x):
                #   softplus(-x) = max(-x, 0) + log(1 + exp(-|x|))
                bce = jnp.maximum(-x, 0.0) + jnp.log(1.0 + jnp.exp(-jnp.abs(x)))
                if valid_rows is not None:
                    # Row mask only for the ragged last block (OOB rows -> 0).
                    r = jax.lax.broadcasted_iota(jnp.int32, (_CHUNK_ROWS, _LANES), 0)
                    bce = jnp.where(r + c * _CHUNK_ROWS < valid_rows, bce, 0.0)
                # Lane-parallel partial sum (VPU only): (128,128) -> (8,128).
                part = bce.reshape(_CHUNK_ROWS // 8, 8, _LANES).sum(axis=0)
                out_ref[...] += part[None, :, :]
                return carry

            jax.lax.fori_loop(0, n_chunks, chunk, 0, unroll=True)

        if ragged:
            @pl.when(g < num_blocks - 1)
            def _full():
                accumulate(None)

            @pl.when(g == num_blocks - 1)
            def _last():
                accumulate(last_rows)
        elif has_overhang:
            # Only the overhang grid point(s) of the parallel split are skipped.
            @pl.when(g < num_blocks)
            def _guarded():
                accumulate(None)
        else:
            accumulate(None)

    return kernel


def ns_generator_loss(fake_p):
    """NSGeneratorLoss.forward == mean(softplus(-fake_p)) over all elements."""
    flat = jnp.ravel(jnp.asarray(fake_p))
    n = flat.size
    if flat.dtype not in (jnp.float32, jnp.bfloat16, jnp.float16):
        flat = flat.astype(jnp.float32)

    if n < _SMALL_N:
        # Tiny inputs (e.g. (B, 1) discriminator logits): XLA fuses this into a
        # single pass; pallas_call dispatch + DMA overhead would dominate.
        return _softplus_neg_sum(flat) / n

    rows = -(-n // _LANES)
    if n % _LANES != 0:
        # TODO(synk): the lane-ragged tail still materializes one padded copy;
        # the aligned (n % 128 == 0) path below is copy-free.
        flat = jnp.pad(flat, (0, rows * _LANES - n), constant_values=_PAD_VALUE)
    x2d = flat.reshape(rows, _LANES)   # contiguous reshape: bitcast, no HBM copy

    itemsize = flat.dtype.itemsize
    max_tile_rows = 2048 * (4 // itemsize)           # ~1 MiB per input buffer
    tile_rows = min(max_tile_rows, _round_up(rows, _CHUNK_ROWS))

    num_blocks = -(-rows // tile_rows)
    num_cores = 2 if num_blocks >= 2 else 1          # v7x: split across both TCs
    inner_blocks = -(-num_blocks // num_cores)
    has_overhang = num_cores * inner_blocks != num_blocks
    last_rows = rows - (num_blocks - 1) * tile_rows

    kernel = _make_kernel(tile_rows, inner_blocks, num_blocks, last_rows, has_overhang)

    partials = pl.pallas_call(
        kernel,
        out_shape=jax.ShapeDtypeStruct((num_cores, 8, _LANES), jnp.float32),
        grid_spec=pltpu.PrefetchScalarGridSpec(
            num_scalar_prefetch=0,
            grid=(num_cores, inner_blocks),
            in_specs=[pl.BlockSpec(
                (tile_rows, _LANES),
                lambda p, i: (jnp.minimum(p * inner_blocks + i, num_blocks - 1), 0))],
            out_specs=pl.BlockSpec((1, 8, _LANES), lambda p, i: (p, 0, 0)),
        ),
        compiler_params=pltpu.CompilerParams(
            dimension_semantics=("parallel", "arbitrary"),
        ),
    )(x2d)
    # Tiny final reduction over (num_cores, 8, 128) partials + 1/N scale in XLA.
    return jnp.sum(partials) / n


def _reference(fake_p):
    x = jnp.asarray(fake_p, jnp.float32).ravel()
    return jnp.mean(jnp.maximum(-x, 0.0) + jnp.log1p(jnp.exp(-jnp.abs(x))))


if __name__ == "__main__":
    key = jax.random.PRNGKey(0)
    k1, k2, k3, k4, k5 = jax.random.split(key, 5)

    cases = []

    # (B, 1) discriminator logits -- the module's typical input (XLA bypass path).
    cases.append(jax.random.normal(k1, (8, 1), dtype=jnp.float32))

    # Single-block Pallas path, lane-aligned (no pad, no mask).
    cases.append(jax.random.normal(k2, (1024, 160), dtype=jnp.float32))

    # Multi-block: 3 row-blocks split across the 2-way parallel axis
    # (ragged last block masked, overhang grid point skipped via pl.when).
    cases.append(jax.random.normal(k3, (2048, 288), dtype=jnp.float32))

    # Lane-unaligned element count -> large-positive-constant pad fallback.
    cases.append(jax.random.normal(k4, (999, 173), dtype=jnp.float32))

    # bf16 on the wire, f32 accumulation inside the kernel.
    cases.append(jax.random.normal(k5, (2048, 160), dtype=jnp.float32).astype(jnp.bfloat16))

    for x in cases:
        got = jax.block_until_ready(ns_generator_loss(x))
        want = _reference(x)
        assert jnp.allclose(got, want, atol=1e-6, rtol=2e-5), (x.shape, got, want)

    print("KERNEL_OK")
</pallas_src>

<mosaic_0001>
module attributes {stable_mosaic.version = 11 : i64} {
  func.func @kernel(%arg0: i32, %arg1: i32, %arg2: memref<1280x128xf32, #tpu.memory_space<vmem>>, %arg3: memref<1x8x128xf32, #tpu.memory_space<vmem>>) attributes {dimension_semantics = [#tpu.dimension_semantics<parallel>, #tpu.dimension_semantics<arbitrary>], iteration_bounds = array<i64: 1, 1>, scalar_prefetch = 0 : i64, scratch_operands = 0 : i64, tpu.core_type = #tpu.core_type<tc>, window_params = [{transform_indices = @transform_0, window_bounds = array<i64: 1280, 128>}, {transform_indices = @transform_1, window_bounds = array<i64: 1, 8, 128>}]} {
    %c0_i32 = arith.constant 0 : i32
    %0 = arith.cmpi eq, %arg1, %c0_i32 : i32
    %1 = arith.extui %0 : i1 to i32
    %c0_i32_0 = arith.constant 0 : i32
    %2 = arith.cmpi ne, %1, %c0_i32_0 : i32
    scf.if %2 {
      %cst_129 = arith.constant 0.000000e+00 : f32
      %223 = vector.broadcast %cst_129 : f32 to vector<1x8x128xf32>
      %c0_130 = arith.constant 0 : index
      %c0_131 = arith.constant 0 : index
      %c0_132 = arith.constant 0 : index
      %224 = vector.load %arg3[%c0_130, %c0_131, %c0_132] : memref<1x8x128xf32, #tpu.memory_space<vmem>>, vector<1x8x128xf32>
      tpu.vector_store %arg3[%c0_130, %c0_131, %c0_132], %223 {strides = array<i32>} : memref<1x8x128xf32, #tpu.memory_space<vmem>>, vector<1x8x128xf32>,
    } else {
    }
    %c0_i32_1 = arith.constant 0 : i32
    %c128_i32 = arith.constant 128 : i32
    %3 = arith.muli %c0_i32_1, %c128_i32 : i32
    %4 = tpu.assume_multiple %3, 128 : i32
    %5 = arith.index_cast %4 : i32 to index
    %c0 = arith.constant 0 : index
    %6 = vector.load %arg2[%5, %c0] : memref<1280x128xf32, #tpu.memory_space<vmem>>, vector<128x128xf32>
    %cst = arith.constant 0.000000e+00 : f32
    %7 = vector.broadcast %cst : f32 to vector<128x128xf32>
    %8 = arith.subf %7, %6 : vector<128x128xf32>
    %cst_2 = arith.constant 0.000000e+00 : f32
    %9 = vector.broadcast %cst_2 : f32 to vector<128x128xf32>
    %10 = arith.maximumf %8, %9 : vector<128x128xf32>
    %11 = math.absf %6 : vector<128x128xf32>
    %cst_3 = arith.constant 0.000000e+00 : f32
    %12 = vector.broadcast %cst_3 : f32 to vector<128x128xf32>
    %13 = arith.subf %12, %11 : vector<128x128xf32>
    %14 = math.exp %13 : vector<128x128xf32>
    %cst_4 = arith.constant 1.000000e+00 : f32
    %15 = vector.broadcast %cst_4 : f32 to vector<128x128xf32>
    %16 = arith.addf %15, %14 : vector<128x128xf32>
    %17 = math.log %16 : vector<128x128xf32>
    %18 = arith.addf %10, %17 : vector<128x128xf32>
    %19 = vector.shape_cast %18 : vector<128x128xf32> to vector<16x8x128xf32>
    %cst_5 = arith.constant dense<0.000000e+00> : vector<8x128xf32>
    %20 = vector.multi_reduction <add>, %19, %cst_5 [0] : vector<16x8x128xf32> to vector<8x128xf32>
    %c0_6 = arith.constant 0 : index
    %c0_7 = arith.constant 0 : index
    %c0_8 = arith.constant 0 : index
    %21 = vector.load %arg3[%c0_6, %c0_7, %c0_8] : memref<1x8x128xf32, #tpu.memory_space<vmem>>, vector<1x8x128xf32>
    %22 = vector.shape_cast %20 : vector<8x128xf32> to vector<1x8x128xf32>
    %23 = arith.addf %21, %22 : vector<1x8x128xf32>
    %c0_9 = arith.constant 0 : index
    %c0_10 = arith.constant 0 : index
    %c0_11 = arith.constant 0 : index
    %24 = vector.load %arg3[%c0_9, %c0_10, %c0_11] : memref<1x8x128xf32, #tpu.memory_space<vmem>>, vector<1x8x128xf32>
    tpu.vector_store %arg3[%c0_9, %c0_10, %c0_11], %23 {strides = array<i32>} : memref<1x8x128xf32, #tpu.memory_space<vmem>>, vector<1x8x128xf32>,
    %c1_i32 = arith.constant 1 : i32
    %c128_i32_12 = arith.constant 128 : i32
    %25 = arith.muli %c1_i32, %c128_i32_12 : i32
    %26 = tpu.assume_multiple %25, 128 : i32
    %27 = arith.index_cast %26 : i32 to index
    %c0_13 = arith.constant 0 : index
    %28 = vector.load %arg2[%27, %c0_13] : memref<1280x128xf32, #tpu.memory_space<vmem>>, vector<128x128xf32>
    %cst_14 = arith.constant 0.000000e+00 : f32
    %29 = vector.broadcast %cst_14 : f32 to vector<128x128xf32>
    %30 = arith.subf %29, %28 : vector<128x128xf32>
    %cst_15 = arith.constant 0.000000e+00 : f32
    %31 = vector.broadcast %cst_15 : f32 to vector<128x128xf32>
    %32 = arith.maximumf %30, %31 : vector<128x128xf32>
    %33 = math.absf %28 : vector<128x128xf32>
    %cst_16 = arith.constant 0.000000e+00 : f32
    %34 = vector.broadcast %cst_16 : f32 to vector<128x128xf32>
    %35 = arith.subf %34, %33 : vector<128x128xf32>
    %36 = math.exp %35 : vector<128x128xf32>
    %cst_17 = arith.constant 1.000000e+00 : f32
    %37 = vector.broadcast %cst_17 : f32 to vector<128x128xf32>
    %38 = arith.addf %37, %36 : vector<128x128xf32>
    %39 = math.log %38 : vector<128x128xf32>
    %40 = arith.addf %32, %39 : vector<128x128xf32>
    %41 = vector.shape_cast %40 : vector<128x128xf32> to vector<16x8x128xf32>
    %cst_18 = arith.constant dense<0.000000e+00> : vector<8x128xf32>
    %42 = vector.multi_reduction <add>, %41, %cst_18 [0] : vector<16x8x128xf32> to vector<8x128xf32>
    %c0_19 = arith.constant 0 : index
    %c0_20 = arith.constant 0 : index
    %c0_21 = arith.constant 0 : index
    %43 = vector.load %arg3[%c0_19, %c0_20, %c0_21] : memref<1x8x128xf32, #tpu.memory_space<vmem>>, vector<1x8x128xf32>
    %44 = vector.shape_cast %42 : vector<8x128xf32> to vector<1x8x128xf32>
    %45 = arith.addf %43, %44 : vector<1x8x128xf32>
    %c0_22 = arith.constant 0 : index
    %c0_23 = arith.constant 0 : index
    %c0_24 = arith.constant 0 : index
    %46 = vector.load %arg3[%c0_22, %c0_23, %c0_24] : memref<1x8x128xf32, #tpu.memory_space<vmem>>, vector<1x8x128xf32>
    tpu.vector_store %arg3[%c0_22, %c0_23, %c0_24], %45 {strides = array<i32>} : memref<1x8x128xf32, #tpu.memory_space<vmem>>, vector<1x8x128xf32>,
    %c2_i32 = arith.constant 2 : i32
    %c128_i32_25 = arith.constant 128 : i32
    %47 = arith.muli %c2_i32, %c128_i32_25 : i32
    %48 = tpu.assume_multiple %47, 128 : i32
    %49 = arith.index_cast %48 : i32 to index
    %c0_26 = arith.constant 0 : index
    %50 = vector.load %arg2[%49, %c0_26] : memref<1280x128xf32, #tpu.memory_space<vmem>>, vector<128x128xf32>
    %cst_27 = arith.constant 0.000000e+00 : f32
    %51 = vector.broadcast %cst_27 : f32 to vector<128x128xf32>
    %52 = arith.subf %51, %50 : vector<128x128xf32>
    %cst_28 = arith.constant 0.000000e+00 : f32
    %53 = vector.broadcast %cst_28 : f32 to vector<128x128xf32>
    %54 = arith.maximumf %52, %53 : vector<128x128xf32>
    %55 = math.absf %50 : vector<128x128xf32>
    %cst_29 = arith.constant 0.000000e+00 : f32
    %56 = vector.broadcast %cst_29 : f32 to vector<128x128xf32>
    %57 = arith.subf %56, %55 : vector<128x128xf32>
    %58 = math.exp %57 : vector<128x128xf32>
    %cst_30 = arith.constant 1.000000e+00 : f32
    %59 = vector.broadcast %cst_30 : f32 to vector<128x128xf32>
    %60 = arith.addf %59, %58 : vector<128x128xf32>
    %61 = math.log %60 : vector<128x128xf32>
    %62 = arith.addf %54, %61 : vector<128x128xf32>
    %63 = vector.shape_cast %62 : vector<128x128xf32> to vector<16x8x128xf32>
    %cst_31 = arith.constant dense<0.000000e+00> : vector<8x128xf32>
    %64 = vector.multi_reduction <add>, %63, %cst_31 [0] : vector<16x8x128xf32> to vector<8x128xf32>
    %c0_32 = arith.constant 0 : index
    %c0_33 = arith.constant 0 : index
    %c0_34 = arith.constant 0 : index
    %65 = vector.load %arg3[%c0_32, %c0_33, %c0_34] : memref<1x8x128xf32, #tpu.memory_space<vmem>>, vector<1x8x128xf32>
    %66 = vector.shape_cast %64 : vector<8x128xf32> to vector<1x8x128xf32>
    %67 = arith.addf %65, %66 : vector<1x8x128xf32>
    %c0_35 = arith.constant 0 : index
    %c0_36 = arith.constant 0 : index
    %c0_37 = arith.constant 0 : index
    %68 = vector.load %arg3[%c0_35, %c0_36, %c0_37] : memref<1x8x128xf32, #tpu.memory_space<vmem>>, vector<1x8x128xf32>
    tpu.vector_store %arg3[%c0_35, %c0_36, %c0_37], %67 {strides = array<i32>} : memref<1x8x128xf32, #tpu.memory_space<vmem>>, vector<1x8x128xf32>,
    %c3_i32 = arith.constant 3 : i32
    %c128_i32_38 = arith.constant 128 : i32
    %69 = arith.muli %c3_i32, %c128_i32_38 : i32
    %70 = tpu.assume_multiple %69, 128 : i32
    %71 = arith.index_cast %70 : i32 to index
    %c0_39 = arith.constant 0 : index
    %72 = vector.load %arg2[%71, %c0_39] : memref<1280x128xf32, #tpu.memory_space<vmem>>, vector<128x128xf32>
    %cst_40 = arith.constant 0.000000e+00 : f32
    %73 = vector.broadcast %cst_40 : f32 to vector<128x128xf32>
    %74 = arith.subf %73, %72 : vector<128x128xf32>
    %cst_41 = arith.constant 0.000000e+00 : f32
    %75 = vector.broadcast %cst_41 : f32 to vector<128x128xf32>
    %76 = arith.maximumf %74, %75 : vector<128x128xf32>
    %77 = math.absf %72 : vector<128x128xf32>
    %cst_42 = arith.constant 0.000000e+00 : f32
    %78 = vector.broadcast %cst_42 : f32 to vector<128x128xf32>
    %79 = arith.subf %78, %77 : vector<128x128xf32>
    %80 = math.exp %79 : vector<128x128xf32>
    %cst_43 = arith.constant 1.000000e+00 : f32
    %81 = vector.broadcast %cst_43 : f32 to vector<128x128xf32>
    %82 = arith.addf %81, %80 : vector<128x128xf32>
    %83 = math.log %82 : vector<128x128xf32>
    %84 = arith.addf %76, %83 : vector<128x128xf32>
    %85 = vector.shape_cast %84 : vector<128x128xf32> to vector<16x8x128xf32>
    %cst_44 = arith.constant dense<0.000000e+00> : vector<8x128xf32>
    %86 = vector.multi_reduction <add>, %85, %cst_44 [0] : vector<16x8x128xf32> to vector<8x128xf32>
    %c0_45 = arith.constant 0 : index
    %c0_46 = arith.constant 0 : index
    %c0_47 = arith.constant 0 : index
    %87 = vector.load %arg3[%c0_45, %c0_46, %c0_47] : memref<1x8x128xf32, #tpu.memory_space<vmem>>, vector<1x8x128xf32>
    %88 = vector.shape_cast %86 : vector<8x128xf32> to vector<1x8x128xf32>
    %89 = arith.addf %87, %88 : vector<1x8x128xf32>
    %c0_48 = arith.constant 0 : index
    %c0_49 = arith.constant 0 : index
    %c0_50 = arith.constant 0 : index
    %90 = vector.load %arg3[%c0_48, %c0_49, %c0_50] : memref<1x8x128xf32, #tpu.memory_space<vmem>>, vector<1x8x128xf32>
    tpu.vector_store %arg3[%c0_48, %c0_49, %c0_50], %89 {strides = array<i32>} : memref<1x8x128xf32, #tpu.memory_space<vmem>>, vector<1x8x128xf32>,
    %c4_i32 = arith.constant 4 : i32
    %c128_i32_51 = arith.constant 128 : i32
    %91 = arith.muli %c4_i32, %c128_i32_51 : i32
    %92 = tpu.assume_multiple %91, 128 : i32
    %93 = arith.index_cast %92 : i32 to index
    %c0_52 = arith.constant 0 : index
    %94 = vector.load %arg2[%93, %c0_52] : memref<1280x128xf32, #tpu.memory_space<vmem>>, vector<128x128xf32>
    %cst_53 = arith.constant 0.000000e+00 : f32
    %95 = vector.broadcast %cst_53 : f32 to vector<128x128xf32>
    %96 = arith.subf %95, %94 : vector<128x128xf32>
    %cst_54 = arith.constant 0.000000e+00 : f32
    %97 = vector.broadcast %cst_54 : f32 to vector<128x128xf32>
    %98 = arith.maximumf %96, %97 : vector<128x128xf32>
    %99 = math.absf %94 : vector<128x128xf32>
    %cst_55 = arith.constant 0.000000e+00 : f32
    %100 = vector.broadcast %cst_55 : f32 to vector<128x128xf32>
    %101 = arith.subf %100, %99 : vector<128x128xf32>
    %102 = math.exp %101 : vector<128x128xf32>
    %cst_56 = arith.constant 1.000000e+00 : f32
    %103 = vector.broadcast %cst_56 : f32 to vector<128x128xf32>
    %104 = arith.addf %103, %102 : vector<128x128xf32>
    %105 = math.log %104 : vector<128x128xf32>
    %106 = arith.addf %98, %105 : vector<128x128xf32>
    %107 = vector.shape_cast %106 : vector<128x128xf32> to vector<16x8x128xf32>
    %cst_57 = arith.constant dense<0.000000e+00> : vector<8x128xf32>
    %108 = vector.multi_reduction <add>, %107, %cst_57 [0] : vector<16x8x128xf32> to vector<8x128xf32>
    %c0_58 = arith.constant 0 : index
    %c0_59 = arith.constant 0 : index
    %c0_60 = arith.constant 0 : index
    %109 = vector.load %arg3[%c0_58, %c0_59, %c0_60] : memref<1x8x128xf32, #tpu.memory_space<vmem>>, vector<1x8x128xf32>
    %110 = vector.shape_cast %108 : vector<8x128xf32> to vector<1x8x128xf32>
    %111 = arith.addf %109, %110 : vector<1x8x128xf32>
    %c0_61 = arith.constant 0 : index
    %c0_62 = arith.constant 0 : index
    %c0_63 = arith.constant 0 : index
    %112 = vector.load %arg3[%c0_61, %c0_62, %c0_63] : memref<1x8x128xf32, #tpu.memory_space<vmem>>, vector<1x8x128xf32>
    tpu.vector_store %arg3[%c0_61, %c0_62, %c0_63], %111 {strides = array<i32>} : memref<1x8x128xf32, #tpu.memory_space<vmem>>, vector<1x8x128xf32>,
    %c5_i32 = arith.constant 5 : i32
    %c128_i32_64 = arith.constant 128 : i32
    %113 = arith.muli %c5_i32, %c128_i32_64 : i32
    %114 = tpu.assume_multiple %113, 128 : i32
    %115 = arith.index_cast %114 : i32 to index
    %c0_65 = arith.constant 0 : index
    %116 = vector.load %arg2[%115, %c0_65] : memref<1280x128xf32, #tpu.memory_space<vmem>>, vector<128x128xf32>
    %cst_66 = arith.constant 0.000000e+00 : f32
    %117 = vector.broadcast %cst_66 : f32 to vector<128x128xf32>
    %118 = arith.subf %117, %116 : vector<128x128xf32>
    %cst_67 = arith.constant 0.000000e+00 : f32
    %119 = vector.broadcast %cst_67 : f32 to vector<128x128xf32>
    %120 = arith.maximumf %118, %119 : vector<128x128xf32>
    %121 = math.absf %116 : vector<128x128xf32>
    %cst_68 = arith.constant 0.000000e+00 : f32
    %122 = vector.broadcast %cst_68 : f32 to vector<128x128xf32>
    %123 = arith.subf %122, %121 : vector<128x128xf32>
    %124 = math.exp %123 : vector<128x128xf32>
    %cst_69 = arith.constant 1.000000e+00 : f32
    %125 = vector.broadcast %cst_69 : f32 to vector<128x128xf32>
    %126 = arith.addf %125, %124 : vector<128x128xf32>
    %127 = math.log %126 : vector<128x128xf32>
    %128 = arith.addf %120, %127 : vector<128x128xf32>
    %129 = vector.shape_cast %128 : vector<128x128xf32> to vector<16x8x128xf32>
    %cst_70 = arith.constant dense<0.000000e+00> : vector<8x128xf32>
    %130 = vector.multi_reduction <add>, %129, %cst_70 [0] : vector<16x8x128xf32> to vector<8x128xf32>
    %c0_71 = arith.constant 0 : index
    %c0_72 = arith.constant 0 : index
    %c0_73 = arith.constant 0 : index
    %131 = vector.load %arg3[%c0_71, %c0_72, %c0_73] : memref<1x8x128xf32, #tpu.memory_space<vmem>>, vector<1x8x128xf32>
    %132 = vector.shape_cast %130 : vector<8x128xf32> to vector<1x8x128xf32>
    %133 = arith.addf %131, %132 : vector<1x8x128xf32>
    %c0_74 = arith.constant 0 : index
    %c0_75 = arith.constant 0 : index
    %c0_76 = arith.constant 0 : index
    %134 = vector.load %arg3[%c0_74, %c0_75, %c0_76] : memref<1x8x128xf32, #tpu.memory_space<vmem>>, vector<1x8x128xf32>
    tpu.vector_store %arg3[%c0_74, %c0_75, %c0_76], %133 {strides = array<i32>} : memref<1x8x128xf32, #tpu.memory_space<vmem>>, vector<1x8x128xf32>,
    %c6_i32 = arith.constant 6 : i32
    %c128_i32_77 = arith.constant 128 : i32
    %135 = arith.muli %c6_i32, %c128_i32_77 : i32
    %136 = tpu.assume_multiple %135, 128 : i32
    %137 = arith.index_cast %136 : i32 to index
    %c0_78 = arith.constant 0 : index
    %138 = vector.load %arg2[%137, %c0_78] : memref<1280x128xf32, #tpu.memory_space<vmem>>, vector<128x128xf32>
    %cst_79 = arith.constant 0.000000e+00 : f32
    %139 = vector.broadcast %cst_79 : f32 to vector<128x128xf32>
    %140 = arith.subf %139, %138 : vector<128x128xf32>
    %cst_80 = arith.constant 0.000000e+00 : f32
    %141 = vector.broadcast %cst_80 : f32 to vector<128x128xf32>
    %142 = arith.maximumf %140, %141 : vector<128x128xf32>
    %143 = math.absf %138 : vector<128x128xf32>
    %cst_81 = arith.constant 0.000000e+00 : f32
    %144 = vector.broadcast %cst_81 : f32 to vector<128x128xf32>
    %145 = arith.subf %144, %143 : vector<128x128xf32>
    %146 = math.exp %145 : vector<128x128xf32>
    %cst_82 = arith.constant 1.000000e+00 : f32
    %147 = vector.broadcast %cst_82 : f32 to vector<128x128xf32>
    %148 = arith.addf %147, %146 : vector<128x128xf32>
    %149 = math.log %148 : vector<128x128xf32>
    %150 = arith.addf %142, %149 : vector<128x128xf32>
    %151 = vector.shape_cast %150 : vector<128x128xf32> to vector<16x8x128xf32>
    %cst_83 = arith.constant dense<0.000000e+00> : vector<8x128xf32>
    %152 = vector.multi_reduction <add>, %151, %cst_83 [0] : vector<16x8x128xf32> to vector<8x128xf32>
    %c0_84 = arith.constant 0 : index
    %c0_85 = arith.constant 0 : index
    %c0_86 = arith.constant 0 : index
    %153 = vector.load %arg3[%c0_84, %c0_85, %c0_86] : memref<1x8x128xf32, #tpu.memory_space<vmem>>, vector<1x8x128xf32>
    %154 = vector.shape_cast %152 : vector<8x128xf32> to vector<1x8x128xf32>
    %155 = arith.addf %153, %154 : vector<1x8x128xf32>
    %c0_87 = arith.constant 0 : index
    %c0_88 = arith.constant 0 : index
    %c0_89 = arith.constant 0 : index
    %156 = vector.load %arg3[%c0_87, %c0_88, %c0_89] : memref<1x8x128xf32, #tpu.memory_space<vmem>>, vector<1x8x128xf32>
    tpu.vector_store %arg3[%c0_87, %c0_88, %c0_89], %155 {strides = array<i32>} : memref<1x8x128xf32, #tpu.memory_space<vmem>>, vector<1x8x128xf32>,
    %c7_i32 = arith.constant 7 : i32
    %c128_i32_90 = arith.constant 128 : i32
    %157 = arith.muli %c7_i32, %c128_i32_90 : i32
    %158 = tpu.assume_multiple %157, 128 : i32
    %159 = arith.index_cast %158 : i32 to index
    %c0_91 = arith.constant 0 : index
    %160 = vector.load %arg2[%159, %c0_91] : memref<1280x128xf32, #tpu.memory_space<vmem>>, vector<128x128xf32>
    %cst_92 = arith.constant 0.000000e+00 : f32
    %161 = vector.broadcast %cst_92 : f32 to vector<128x128xf32>
    %162 = arith.subf %161, %160 : vector<128x128xf32>
    %cst_93 = arith.constant 0.000000e+00 : f32
    %163 = vector.broadcast %cst_93 : f32 to vector<128x128xf32>
    %164 = arith.maximumf %162, %163 : vector<128x128xf32>
    %165 = math.absf %160 : vector<128x128xf32>
    %cst_94 = arith.constant 0.000000e+00 : f32
    %166 = vector.broadcast %cst_94 : f32 to vector<128x128xf32>
    %167 = arith.subf %166, %165 : vector<128x128xf32>
    %168 = math.exp %167 : vector<128x128xf32>
    %cst_95 = arith.constant 1.000000e+00 : f32
    %169 = vector.broadcast %cst_95 : f32 to vector<128x128xf32>
    %170 = arith.addf %169, %168 : vector<128x128xf32>
    %171 = math.log %170 : vector<128x128xf32>
    %172 = arith.addf %164, %171 : vector<128x128xf32>
    %173 = vector.shape_cast %172 : vector<128x128xf32> to vector<16x8x128xf32>
    %cst_96 = arith.constant dense<0.000000e+00> : vector<8x128xf32>
    %174 = vector.multi_reduction <add>, %173, %cst_96 [0] : vector<16x8x128xf32> to vector<8x128xf32>
    %c0_97 = arith.constant 0 : index
    %c0_98 = arith.constant 0 : index
    %c0_99 = arith.constant 0 : index
    %175 = vector.load %arg3[%c0_97, %c0_98, %c0_99] : memref<1x8x128xf32, #tpu.memory_space<vmem>>, vector<1x8x128xf32>
    %176 = vector.shape_cast %174 : vector<8x128xf32> to vector<1x8x128xf32>
    %177 = arith.addf %175, %176 : vector<1x8x128xf32>
    %c0_100 = arith.constant 0 : index
    %c0_101 = arith.constant 0 : index
    %c0_102 = arith.constant 0 : index
    %178 = vector.load %arg3[%c0_100, %c0_101, %c0_102] : memref<1x8x128xf32, #tpu.memory_space<vmem>>, vector<1x8x128xf32>
    tpu.vector_store %arg3[%c0_100, %c0_101, %c0_102], %177 {strides = array<i32>} : memref<1x8x128xf32, #tpu.memory_space<vmem>>, vector<1x8x128xf32>,
    %c8_i32 = arith.constant 8 : i32
    %c128_i32_103 = arith.constant 128 : i32
    %179 = arith.muli %c8_i32, %c128_i32_103 : i32
    %180 = tpu.assume_multiple %179, 128 : i32
    %181 = arith.index_cast %180 : i32 to index
    %c0_104 = arith.constant 0 : index
    %182 = vector.load %arg2[%181, %c0_104] : memref<1280x128xf32, #tpu.memory_space<vmem>>, vector<128x128xf32>
    %cst_105 = arith.constant 0.000000e+00 : f32
    %183 = vector.broadcast %cst_105 : f32 to vector<128x128xf32>
    %184 = arith.subf %183, %182 : vector<128x128xf32>
    %cst_106 = arith.constant 0.000000e+00 : f32
    %185 = vector.broadcast %cst_106 : f32 to vector<128x128xf32>
    %186 = arith.maximumf %184, %185 : vector<128x128xf32>
    %187 = math.absf %182 : vector<128x128xf32>
    %cst_107 = arith.constant 0.000000e+00 : f32
    %188 = vector.broadcast %cst_107 : f32 to vector<128x128xf32>
    %189 = arith.subf %188, %187 : vector<128x128xf32>
    %190 = math.exp %189 : vector<128x128xf32>
    %cst_108 = arith.constant 1.000000e+00 : f32
    %191 = vector.broadcast %cst_108 : f32 to vector<128x128xf32>
    %192 = arith.addf %191, %190 : vector<128x128xf32>
    %193 = math.log %192 : vector<128x128xf32>
    %194 = arith.addf %186, %193 : vector<128x128xf32>
    %195 = vector.shape_cast %194 : vector<128x128xf32> to vector<16x8x128xf32>
    %cst_109 = arith.constant dense<0.000000e+00> : vector<8x128xf32>
    %196 = vector.multi_reduction <add>, %195, %cst_109 [0] : vector<16x8x128xf32> to vector<8x128xf32>
    %c0_110 = arith.constant 0 : index
    %c0_111 = arith.constant 0 : index
    %c0_112 = arith.constant 0 : index
    %197 = vector.load %arg3[%c0_110, %c0_111, %c0_112] : memref<1x8x128xf32, #tpu.memory_space<vmem>>, vector<1x8x128xf32>
    %198 = vector.shape_cast %196 : vector<8x128xf32> to vector<1x8x128xf32>
    %199 = arith.addf %197, %198 : vector<1x8x128xf32>
    %c0_113 = arith.constant 0 : index
    %c0_114 = arith.constant 0 : index
    %c0_115 = arith.constant 0 : index
    %200 = vector.load %arg3[%c0_113, %c0_114, %c0_115] : memref<1x8x128xf32, #tpu.memory_space<vmem>>, vector<1x8x128xf32>
    tpu.vector_store %arg3[%c0_113, %c0_114, %c0_115], %199 {strides = array<i32>} : memref<1x8x128xf32, #tpu.memory_space<vmem>>, vector<1x8x128xf32>,
    %c9_i32 = arith.constant 9 : i32
    %c128_i32_116 = arith.constant 128 : i32
    %201 = arith.muli %c9_i32, %c128_i32_116 : i32
    %202 = tpu.assume_multiple %201, 128 : i32
    %203 = arith.index_cast %202 : i32 to index
    %c0_117 = arith.constant 0 : index
    %204 = vector.load %arg2[%203, %c0_117] : memref<1280x128xf32, #tpu.memory_space<vmem>>, vector<128x128xf32>
    %cst_118 = arith.constant 0.000000e+00 : f32
    %205 = vector.broadcast %cst_118 : f32 to vector<128x128xf32>
    %206 = arith.subf %205, %204 : vector<128x128xf32>
    %cst_119 = arith.constant 0.000000e+00 : f32
    %207 = vector.broadcast %cst_119 : f32 to vector<128x128xf32>
    %208 = arith.maximumf %206, %207 : vector<128x128xf32>
    %209 = math.absf %204 : vector<128x128xf32>
    %cst_120 = arith.constant 0.000000e+00 : f32
    %210 = vector.broadcast %cst_120 : f32 to vector<128x128xf32>
    %211 = arith.subf %210, %209 : vector<128x128xf32>
    %212 = math.exp %211 : vector<128x128xf32>
    %cst_121 = arith.constant 1.000000e+00 : f32
    %213 = vector.broadcast %cst_121 : f32 to vector<128x128xf32>
    %214 = arith.addf %213, %212 : vector<128x128xf32>
    %215 = math.log %214 : vector<128x128xf32>
    %216 = arith.addf %208, %215 : vector<128x128xf32>
    %217 = vector.shape_cast %216 : vector<128x128xf32> to vector<16x8x128xf32>
    %cst_122 = arith.constant dense<0.000000e+00> : vector<8x128xf32>
    %218 = vector.multi_reduction <add>, %217, %cst_122 [0] : vector<16x8x128xf32> to vector<8x128xf32>
    %c0_123 = arith.constant 0 : index
    %c0_124 = arith.constant 0 : index
    %c0_125 = arith.constant 0 : index
    %219 = vector.load %arg3[%c0_123, %c0_124, %c0_125] : memref<1x8x128xf32, #tpu.memory_space<vmem>>, vector<1x8x128xf32>
    %220 = vector.shape_cast %218 : vector<8x128xf32> to vector<1x8x128xf32>
    %221 = arith.addf %219, %220 : vector<1x8x128xf32>
    %c0_126 = arith.constant 0 : index
    %c0_127 = arith.constant 0 : index
    %c0_128 = arith.constant 0 : index
    %222 = vector.load %arg3[%c0_126, %c0_127, %c0_128] : memref<1x8x128xf32, #tpu.memory_space<vmem>>, vector<1x8x128xf32>
    tpu.vector_store %arg3[%c0_126, %c0_127, %c0_128], %221 {strides = array<i32>} : memref<1x8x128xf32, #tpu.memory_space<vmem>>, vector<1x8x128xf32>,
    %c10_i32 = arith.constant 10 : i32
    return
  }
  func.func @transform_0(%arg0: i32, %arg1: i32) -> (i32, i32) {
    %c1_i32 = arith.constant 1 : i32
    %0 = arith.muli %arg0, %c1_i32 : i32
    %1 = arith.addi %0, %arg1 : i32
    %c0_i32 = arith.constant 0 : i32
    %2 = arith.minsi %1, %c0_i32 : i32
    %c0_i32_0 = arith.constant 0 : i32
    %c0_i32_1 = arith.constant 0 : i32
    return %2, %c0_i32_0 : i32, i32
  }
  func.func @transform_1(%arg0: i32, %arg1: i32) -> (i32, i32, i32) {
    %c0_i32 = arith.constant 0 : i32
    %c0_i32_0 = arith.constant 0 : i32
    %c0_i32_1 = arith.constant 0 : i32
    return %arg0, %c0_i32, %c0_i32_0 : i32, i32, i32
  }
}

</mosaic_0001>

<bundles_post_ra>
// kernel: tpu_custom_call.1
= control target key start
LH: loop header
LB: loop body
LE: loop exit
PB: predicated region body
PF: predicated region fallthrough
CT: control target
= control target key end

     0   :  { %6 = vsyncpa [#allocation3], 0  ;;  %s3907_s0 = inlined_call_operand.hbm [shape: f32[1280,128], index: 0, kind: input, shape index: {}]   ;;  %s3908_s1 = inlined_call_operand.hbm [shape: f32[1,8,128], index: 1, kind: output, shape index: {}]  }
   0x1   :  { %7 = vsyncpa [#allocation4], 0  ;;  %s18_s8 = sshll.u32 %s3907_s0, 4  ;;  %s2705_s9 = smov [#allocation2]   ;;  %s19_s8 = int_to_ptr.hbm [resolvable:$true] %s18_s8 }
   0x2   :  { %s20_s10 = sshll.u32 %s2705_s9, 4  ;;  %s2706_s11 = smov 128   ;;  %s21_s10 = int_to_ptr.vmem [resolvable:$true] %s20_s10 }
   0x3   :  { %s2707_s12 = smov 8  }
   0x4   :  { %26 = dma.hbm_to_vmem [thread:$0]  %s19_s8, 20480, %s21_s10, [#allocation3], %s2706_s11, %s2706_s11, %s2707_s12  }
   0x5   :  { %2701 = dma.done.wait [#allocation3], 20480  }
   0x6   :  { %2702 = vsyncadd [#allocation3], 4294946816  ;;  %v40_v0 = vld [vmem:[#allocation2] sm:$0xff]  ;;  %v2722_v1 = vld [vmem:[#allocation2 + $0x8] sm:$0xff]  ;;  %s2708_s0 = smov [#allocation5]   ;;  %s1996_s16 = sshll.u32 %s3908_s1, 4  ;;  %s1997_s16 = int_to_ptr.hbm [resolvable:$true] %s1996_s16 }
   0x7   :  { %v88_v2 = vand.u32 2147483647, %v40_v0  ;;  %v89_v3 = vand.u32 2147483647, %v2722_v1  ;;  %v42_v4 = vld [vmem:[#allocation2 + $0x10] sm:$0xff]  ;;  %v43_v8 = vld [vmem:[#allocation2 + $0x18] sm:$0xff] }
   0x8   :  { %v90_v6 = vand.u32 2147483647, %v42_v4  ;;  %v44_v10 = vld [vmem:[#allocation2 + $0x20] sm:$0xff]  ;;  %v91_v11 = vand.u32 2147483647, %v43_v8  ;;  %v45_v15 = vld [vmem:[#allocation2 + $0x28] sm:$0xff] }
   0x9   :  { %v104_v5 = vsub.f32 0.0, %v88_v2  ;;  %v105_v7 = vsub.f32 0.0, %v89_v3  ;;  %v92_v14 = vand.u32 2147483647, %v44_v10  ;;  %v93_v18 = vand.u32 2147483647, %v45_v15 }
   0xa   :  { %v106_v12 = vsub.f32 0.0, %v90_v6  ;;  %v107_v16 = vsub.f32 0.0, %v91_v11  ;;  %v46_v20 = vld [vmem:[#allocation2 + $0x30] sm:$0xff]  ;;  %v56_v23 = vsub.f32 0.0, %v40_v0  ;;  %v57_v24 = vsub.f32 0.0, %v2722_v1  ;;  %v47_v27 = vld [vmem:[#allocation2 + $0x38] sm:$0xff] }
   0xb   :  { %v120_v9 = vmul.f32 1.442695, %v104_v5  ;;  %v122_v13 = vmul.f32 1.442695, %v105_v7  ;;  %v108_v19 = vsub.f32 0.0, %v92_v14  ;;  %v58_v25 = vsub.f32 0.0, %v42_v4 }
   0xc   :  { %v124_v17 = vmul.f32 1.442695, %v106_v12  ;;  %v126_v21 = vmul.f32 1.442695, %v107_v16  ;;  %v48_v28 = vld [vmem:[#allocation2 + $0x40] sm:$0xff]  ;;  %v2726_v29 = vld [vmem:[#allocation2 + $0x48] sm:$0xff] }
   0xd   :  { %2013 = vpow2.f32 %v120_v9  ;;  %v59_v30 = vsub.f32 0.0, %v43_v8  ;;  %v60_v31 = vsub.f32 0.0, %v44_v10  ;;  %v61_v32 = vsub.f32 0.0, %v45_v15  ;;  %v50_v37 = vld [vmem:[#allocation2 + $0x50] sm:$0xff]  ;;  %v51_v38 = vld [vmem:[#allocation2 + $0x58] sm:$0xff]  ;;  %v52_v39 = vld [vmem:[#allocation2 + $0x60] sm:$0xff] }
   0xe   :  { %2015 = vpow2.f32 %v122_v13  ;;  %v62_v33 = vsub.f32 0.0, %v46_v20  ;;  %v94_v34 = vand.u32 2147483647, %v46_v20  ;;  %v109_v35 = vsub.f32 0.0, %v93_v18  ;;  %v53_v43 = vld [vmem:[#allocation2 + $0x68] sm:$0xff]  ;;  %v2728_v44 = vld [vmem:[#allocation2 + $0x70] sm:$0xff] }
   0xf   :  { %2017 = vpow2.f32 %v124_v17  ;;  %v128_v36 = vmul.f32 1.442695, %v108_v19  ;;  %v63_v40 = vsub.f32 0.0, %v47_v27  ;;  %v64_v41 = vsub.f32 0.0, %v48_v28  ;;  %v55_v54 = vld [vmem:[#allocation2 + $0x78] sm:$0xff]  ;;  %s1994_s13 = sshll.u32 %s2708_s0, 4  ;;  %s1995_s13 = int_to_ptr.vmem [resolvable:$true] %s1994_s13 }
  0x10   :  { %2019 = vpow2.f32 %v126_v21  ;;  %v65_v45 = vsub.f32 0.0, %v2726_v29  ;;  %v66_v46 = vsub.f32 0.0, %v50_v37  ;;  %v67_v47 = vsub.f32 0.0, %v51_v38 }
  0x11   :  { %v68_v50 = vsub.f32 0.0, %v52_v39  ;;  %v69_v51 = vsub.f32 0.0, %v53_v43  ;;  %v70_v52 = vsub.f32 0.0, %v2728_v44  ;;  %v2732_v53 = vmax.f32 %v56_v23, 0.0 }
  0x12   :  { %v95_v55 = vand.u32 2147483647, %v47_v27  ;;  %v110_v56 = vsub.f32 0.0, %v94_v34  ;;  %2021 = vpow2.f32 %v128_v36  ;;  %v130_v57 = vmul.f32 1.442695, %v109_v35 }
  0x13   :  { %v2014_v22 = vpop.eup %2013  ;;  %v71_v58 = vsub.f32 0.0, %v55_v54  ;;  %v2734_v59 = vmax.f32 %v57_v24, 0.0  ;;  %v2736_v60 = vmax.f32 %v58_v25, 0.0  ;;  %v2738_v61 = vmax.f32 %v59_v30, 0.0 }
  0x14   :  { %v2016_v26 = vpop.eup %2015  ;;  %v152_v42 = vadd.f32 1.0, %v2014_v22  ;;  %v2740_v62 = vmax.f32 %v60_v31, 0.0  ;;  %v2742_v1 = vmax.f32 %v61_v32, 0.0  ;;  %v2744_v2 = vmax.f32 %v62_v33, 0.0 }
  0x15   :  { %v153_v48 = vadd.f32 1.0, %v2016_v26  ;;  %v2018_v49 = vpop.eup %2017  ;;  %v2746_v3 = vmax.f32 %v63_v40, 0.0  ;;  %v96_v4 = vand.u32 2147483647, %v48_v28  ;;  %v97_v5 = vand.u32 2147483647, %v2726_v29 }
  0x16   :  { %2023 = vlog2.f32 %v152_v42  ;;  %v154_v63 = vadd.f32 1.0, %v2018_v49  ;;  %v2020_v0 = vpop.eup %2019  ;;  %v111_v6 = vsub.f32 0.0, %v95_v55  ;;  %v132_v7 = vmul.f32 1.442695, %v110_v56  ;;  %v2762_v40 = vld [vmem:[#allocation2 + $0x80] sm:$0xff]  ;;  %v237_v55 = vld [vmem:[#allocation2 + $0x90] sm:$0xff] }
  0x17   :  { %2025 = vlog2.f32 %v153_v48  ;;  %v2749_v8 = vmax.f32 %v64_v41, 0.0  ;;  %v2751_v9 = vmax.f32 %v65_v45, 0.0  ;;  %v98_v10 = vand.u32 2147483647, %v50_v37 }
  0x18   :  { %2027 = vpow2.f32 %v130_v57  ;;  %v99_v11 = vand.u32 2147483647, %v51_v38  ;;  %v2022_v12 = vpop.eup %2021  ;;  %v100_v13 = vand.u32 2147483647, %v52_v39  ;;  %v101_v14 = vand.u32 2147483647, %v53_v43 }
  0x19   :  { %v155_v15 = vadd.f32 1.0, %v2020_v0  ;;  %2029 = vlog2.f32 %v154_v63  ;;  %v2753_v17 = vmax.f32 %v66_v46, 0.0  ;;  %v2755_v18 = vmax.f32 %v67_v47, 0.0  ;;  %v238_v0 = vld [vmem:[#allocation2 + $0x98] sm:$0xff] }
  0x1a   :  { %v102_v19 = vand.u32 2147483647, %v2728_v44  ;;  %v112_v20 = vsub.f32 0.0, %v96_v4  ;;  %v103_v22 = vand.u32 2147483647, %v55_v54  ;;  %v113_v23 = vsub.f32 0.0, %v97_v5 }
  0x1b   :  { %2031 = vpow2.f32 %v132_v7  ;;  %v134_v24 = vmul.f32 1.442695, %v111_v6  ;;  %v2758_v25 = vmax.f32 %v68_v50, 0.0  ;;  %v2760_v26 = vmax.f32 %v69_v51, 0.0  ;;  %v236_v54 = vld [vmem:[#allocation2 + $0x88] sm:$0xff]  ;;  %v2774_v7 = vld [vmem:[#allocation2 + $0xa0] sm:$0xff] }
  0x1c   :  { %v2024_v16 = vpop.eup %2023  ;;  %v114_v27 = vsub.f32 0.0, %v98_v10  ;;  %v115_v28 = vsub.f32 0.0, %v99_v11  ;;  %v116_v30 = vsub.f32 0.0, %v100_v13  ;;  %v117_v31 = vsub.f32 0.0, %v101_v14  ;;  %v2777_v14 = vld [vmem:[#allocation2 + $0xa8] sm:$0xff] }
  0x1d   :  { %v2026_v21 = vpop.eup %2025  ;;  %v156_v32 = vadd.f32 1.0, %v2022_v12  ;;  %2033 = vlog2.f32 %v155_v15  ;;  %v136_v33 = vmul.f32 1.442695, %v112_v20  ;;  %v169_v34 = vmul.f32 0.6931472, %v2024_v16  ;;  %v2779_v15 = vld [vmem:[#allocation2 + $0xb0] sm:$0xff] }
  0x1e   :  { %v2028_v29 = vpop.eup %2027  ;;  %v171_v35 = vmul.f32 0.6931472, %v2026_v21  ;;  %v118_v37 = vsub.f32 0.0, %v102_v19  ;;  %v119_v38 = vsub.f32 0.0, %v103_v22  ;;  %2035 = vpow2.f32 %v134_v24  ;;  %v2781_v20 = vld [vmem:[#allocation2 + $0xb8] sm:$0xff] }
  0x1f   :  { %v2030_v36 = vpop.eup %2029  ;;  %v138_v39 = vmul.f32 1.442695, %v113_v23  ;;  %v2764_v41 = vmax.f32 %v70_v52, 0.0  ;;  %v2766_v42 = vmax.f32 %v71_v58, 0.0  ;;  %v157_v43 = vadd.f32 1.0, %v2028_v29 }
  0x20   :  { %v251_v44 = vsub.f32 0.0, %v2762_v40  ;;  %v140_v46 = vmul.f32 1.442695, %v114_v27  ;;  %v142_v47 = vmul.f32 1.442695, %v115_v28  ;;  %2037 = vlog2.f32 %v156_v32 }
  0x21   :  { %v2032_v45 = vpop.eup %2031  ;;  %v144_v48 = vmul.f32 1.442695, %v116_v30  ;;  %2039 = vpow2.f32 %v136_v33  ;;  %v173_v49 = vmul.f32 0.6931472, %v2030_v36  ;;  %v200_v50 = vadd.f32 %v169_v34, %v2732_v53 }
  0x22   :  { %v201_v51 = vadd.f32 %v171_v35, %v2734_v59  ;;  %2041 = vpow2.f32 %v138_v39  ;;  %v146_v56 = vmul.f32 1.442695, %v117_v31  ;;  %v148_v57 = vmul.f32 1.442695, %v118_v37 }
  0x23   :  { %v2034_v52 = vpop.eup %2033  ;;  %v2771_v58 = vmul.f32 1.442695, %v119_v38  ;;  %v158_v63 = vadd.f32 1.0, %v2032_v45  ;;  %2043 = vlog2.f32 %v157_v43  ;;  %v252_v4 = vsub.f32 0.0, %v236_v54 }
  0x24   :  { %v283_v5 = vand.u32 2147483647, %v2762_v40  ;;  %v2036_v6 = vpop.eup %2035  ;;  %2045 = vpow2.f32 %v140_v46  ;;  %v253_v53 = vsub.f32 0.0, %v237_v55  ;;  %v254_v59 = vsub.f32 0.0, %v238_v0 }
  0x25   :  { %v284_v10 = vand.u32 2147483647, %v236_v54  ;;  %v175_v11 = vmul.f32 0.6931472, %v2034_v52  ;;  %v202_v12 = vadd.f32 %v173_v49, %v2736_v60  ;;  %v216_v13 = vadd.f32 %v201_v51, %v200_v50  ;;  %v2786_v60 = vld [vmem:[#allocation2 + $0xc0] sm:$0xff] }
  0x26   :  { %v285_v16 = vand.u32 2147483647, %v237_v55  ;;  %v2038_v19 = vpop.eup %2037  ;;  %2047 = vpow2.f32 %v142_v47  ;;  %v255_v21 = vsub.f32 0.0, %v2774_v7  ;;  %v256_v22 = vsub.f32 0.0, %v2777_v14 }
  0x27   :  { %v257_v23 = vsub.f32 0.0, %v2779_v15  ;;  %v2040_v24 = vpop.eup %2039  ;;  %v159_v27 = vadd.f32 1.0, %v2036_v6  ;;  %2049 = vlog2.f32 %v158_v63  ;;  %v258_v28 = vsub.f32 0.0, %v2781_v20 }
  0x28   :  { %v299_v29 = vsub.f32 0.0, %v283_v5  ;;  %v2042_v30 = vpop.eup %2041  ;;  %2051 = vpow2.f32 %v144_v48  ;;  %v259_v31 = vsub.f32 0.0, %v2786_v60  ;;  %v286_v32 = vand.u32 2147483647, %v238_v0 }
  0x29   :  { %v300_v33 = vsub.f32 0.0, %v284_v10  ;;  %v2044_v34 = vpop.eup %2043  ;;  %v177_v35 = vmul.f32 0.6931472, %v2038_v19  ;;  %v203_v36 = vadd.f32 %v175_v11, %v2738_v61  ;;  %v217_v37 = vadd.f32 %v216_v13, %v202_v12 }
  0x2a   :  { %v301_v38 = vsub.f32 0.0, %v285_v16  ;;  %v2046_v39 = vpop.eup %2045  ;;  %2053 = vpow2.f32 %v146_v56  ;;  %v160_v40 = vadd.f32 1.0, %v2040_v24  ;;  %v2791_v43 = vmax.f32 %v251_v44, 0.0  ;;  %v2801_v44 = vld [vmem:[#allocation2 + $0xc8] sm:$0xff]  ;;  %v2816_v24 = vld [vmem:[#allocation2 + $0xd8] sm:$0xff] }
  0x2b   :  { %v2793_v45 = vmax.f32 %v252_v4, 0.0  ;;  %2055 = vlog2.f32 %v159_v27  ;;  %v2795_v46 = vmax.f32 %v253_v53, 0.0  ;;  %v2797_v47 = vmax.f32 %v254_v59, 0.0  ;;  %v2808_v53 = vld [vmem:[#allocation2 + $0xd0] sm:$0xff] }
  0x2c   :  { %v315_v48 = vmul.f32 1.442695, %v299_v29  ;;  %v2048_v49 = vpop.eup %2047  ;;  %2057 = vpow2.f32 %v148_v57  ;;  %v179_v50 = vmul.f32 0.6931472, %v2044_v34  ;;  %v287_v61 = vand.u32 2147483647, %v2774_v7 }
  0x2d   :  { %v317_v51 = vmul.f32 1.442695, %v300_v33  ;;  %v2050_v54 = vpop.eup %2049  ;;  %v204_v55 = vadd.f32 %v177_v35, %v2740_v62  ;;  %v218_v52 = vadd.f32 %v217_v37, %v203_v36  ;;  %v302_v56 = vsub.f32 0.0, %v286_v32 }
  0x2e   :  { %v319_v63 = vmul.f32 1.442695, %v301_v38  ;;  %v2052_v0 = vpop.eup %2051  ;;  %2059 = vlog2.f32 %v160_v40  ;;  %v260_v4 = vsub.f32 0.0, %v2801_v44  ;;  %v2804_v5 = vmax.f32 %v255_v21, 0.0 }
  0x2f   :  { %v2806_v6 = vmax.f32 %v256_v22, 0.0  ;;  %v161_v57 = vadd.f32 1.0, %v2042_v30  ;;  %v2810_v7 = vmax.f32 %v257_v23, 0.0  ;;  %v288_v62 = vand.u32 2147483647, %v2777_v14 }
  0x30   :  { %2061 = vpow2.f32 %v315_v48  ;;  %v2054_v59 = vpop.eup %2053  ;;  %v181_v10 = vmul.f32 0.6931472, %v2050_v54  ;;  %v205_v11 = vadd.f32 %v179_v50, %v2742_v1  ;;  %v261_v12 = vsub.f32 0.0, %v2808_v53 }
  0x31   :  { %2063 = vpow2.f32 %v317_v51  ;;  %v2056_v13 = vpop.eup %2055  ;;  %v219_v16 = vadd.f32 %v218_v52, %v204_v55  ;;  %v303_v19 = vsub.f32 0.0, %v287_v61  ;;  %v321_v21 = vmul.f32 1.442695, %v302_v56 }
  0x32   :  { %2065 = vpow2.f32 %v319_v63  ;;  %v2058_v22 = vpop.eup %2057  ;;  %v162_v23 = vadd.f32 1.0, %v2046_v39  ;;  %v2818_v14 = vmax.f32 %v258_v28, 0.0  ;;  %v2820_v27 = vmax.f32 %v259_v31, 0.0  ;;  %v2827_v28 = vld [vmem:[#allocation2 + $0xe0] sm:$0xff] }
  0x33   :  { %2067 = vpow2.f32 %v2771_v58  ;;  %v163_v29 = vadd.f32 1.0, %v2048_v49  ;;  %v262_v1 = vsub.f32 0.0, %v2816_v24  ;;  %v304_v30 = vsub.f32 0.0, %v288_v62 }
  0x34   :  { %2069 = vlog2.f32 %v161_v57  ;;  %v2060_v32 = vpop.eup %2059  ;;  %v164_v33 = vadd.f32 1.0, %v2052_v0  ;;  %v183_v34 = vmul.f32 0.6931472, %v2056_v13  ;;  %v2823_v35 = vmax.f32 %v260_v4, 0.0  ;;  %v2836_v0 = vld [vmem:[#allocation2 + $0xe8] sm:$0xff]  ;;  %v2838_v4 = vld [vmem:[#allocation2 + $0xf0] sm:$0xff] }
  0x35   :  { %v289_v36 = vand.u32 2147483647, %v2779_v15  ;;  %v206_v37 = vadd.f32 %v181_v10, %v2744_v2  ;;  %v220_v38 = vadd.f32 %v219_v16, %v205_v11  ;;  %2071 = vpow2.f32 %v321_v21 }
  0x36   :  { %v2062_v58 = vpop.eup %2061  ;;  %v323_v31 = vmul.f32 1.442695, %v303_v19  ;;  %v165_v40 = vadd.f32 1.0, %v2054_v59  ;;  %2073 = vlog2.f32 %v162_v23  ;;  %v263_v48 = vsub.f32 0.0, %v2827_v28  ;;  %v2840_v59 = vld [vmem:[#allocation2 + $0xf8] sm:$0xff] }
  0x37   :  { %v2064_v39 = vpop.eup %2063  ;;  %v2830_v49 = vmax.f32 %v261_v12, 0.0  ;;  %2075 = vlog2.f32 %v163_v29  ;;  %v2832_v61 = vmax.f32 %v262_v1, 0.0  ;;  %v290_v15 = vand.u32 2147483647, %v2781_v20 }
  0x38   :  { %v2066_v50 = vpop.eup %2065  ;;  %v325_v51 = vmul.f32 1.442695, %v304_v30  ;;  %v185_v54 = vmul.f32 0.6931472, %v2060_v32  ;;  %2077 = vlog2.f32 %v164_v33  ;;  %v207_v55 = vadd.f32 %v183_v34, %v2746_v3 }
  0x39   :  { %v2068_v2 = vpop.eup %2067  ;;  %v347_v52 = vadd.f32 1.0, %v2062_v58  ;;  %v221_v63 = vadd.f32 %v220_v38, %v206_v37  ;;  %v305_v57 = vsub.f32 0.0, %v289_v36  ;;  %2079 = vpow2.f32 %v323_v31 }
  0x3a   :  { %v2070_v56 = vpop.eup %2069  ;;  %v348_v62 = vadd.f32 1.0, %v2064_v39  ;;  %2081 = vlog2.f32 %v165_v40  ;;  %v264_v20 = vsub.f32 0.0, %v2836_v0  ;;  %v265_v10 = vsub.f32 0.0, %v2838_v4 }
  0x3b   :  { %v349_v11 = vadd.f32 1.0, %v2066_v50  ;;  %v2072_v12 = vpop.eup %2071  ;;  %v166_v3 = vadd.f32 1.0, %v2058_v22  ;;  %v266_v13 = vsub.f32 0.0, %v2840_v59  ;;  %v291_v16 = vand.u32 2147483647, %v2786_v60 }
  0x3c   :  { %2083 = vpow2.f32 %v325_v51  ;;  %v2074_v19 = vpop.eup %2073  ;;  %v167_v21 = vadd.f32 1.0, %v2068_v2  ;;  %v187_v23 = vmul.f32 0.6931472, %v2070_v56  ;;  %v208_v29 = vadd.f32 %v185_v54, %v2749_v8 }
  0x3d   :  { %2085 = vlog2.f32 %v347_v52  ;;  %v2076_v1 = vpop.eup %2075  ;;  %v222_v30 = vadd.f32 %v221_v63, %v207_v55  ;;  %v306_v32 = vsub.f32 0.0, %v290_v15  ;;  %v327_v33 = vmul.f32 1.442695, %v305_v57 }
  0x3e   :  { %2087 = vlog2.f32 %v348_v62  ;;  %v2078_v34 = vpop.eup %2077  ;;  %v2847_v36 = vmax.f32 %v263_v48, 0.0  ;;  %v2849_v22 = vmax.f32 %v264_v20, 0.0  ;;  %v350_v58 = vadd.f32 1.0, %v2072_v12 }
  0x3f   :  { %2089 = vlog2.f32 %v349_v11  ;;  %v2080_v60 = vpop.eup %2079  ;;  %v2851_v37 = vmax.f32 %v265_v10, 0.0  ;;  %v2853_v38 = vmax.f32 %v266_v13, 0.0  ;;  %v292_v8 = vand.u32 2147483647, %v2801_v44 }
  0x40   :  { %2091 = vlog2.f32 %v166_v3  ;;  %v2082_v31 = vpop.eup %2081  ;;  %v189_v39 = vmul.f32 0.6931472, %v2074_v19  ;;  %v209_v40 = vadd.f32 %v187_v23, %v2751_v9  ;;  %v293_v48 = vand.u32 2147483647, %v2808_v53 }
  0x41   :  { %2093 = vlog2.f32 %v167_v21  ;;  %v223_v15 = vadd.f32 %v222_v30, %v208_v29  ;;  %v307_v51 = vsub.f32 0.0, %v291_v16  ;;  %v329_v2 = vmul.f32 1.442695, %v306_v32 }
  0x42   :  { %v2084_v50 = vpop.eup %2083  ;;  %2095 = vpow2.f32 %v327_v33  ;;  %v294_v55 = vand.u32 2147483647, %v2816_v24  ;;  %v295_v52 = vand.u32 2147483647, %v2827_v28  ;;  %v351_v56 = vadd.f32 1.0, %v2080_v60 }
  0x43   :  { %v2086_v54 = vpop.eup %2085  ;;  %2097 = vlog2.f32 %v350_v58  ;;  %v191_v63 = vmul.f32 0.6931472, %v2076_v1  ;;  %v296_v57 = vand.u32 2147483647, %v2836_v0  ;;  %v193_v20 = vmul.f32 0.6931472, %v2078_v34 }
  0x44   :  { %v2088_v44 = vpop.eup %2087  ;;  %v364_v62 = vmul.f32 0.6931472, %v2086_v54  ;;  %v210_v53 = vadd.f32 %v189_v39, %v2753_v17  ;;  %v297_v10 = vand.u32 2147483647, %v2838_v4  ;;  %v224_v3 = vadd.f32 %v223_v15, %v209_v40 }
  0x45   :  { %v2090_v9 = vpop.eup %2089  ;;  %v366_v11 = vmul.f32 0.6931472, %v2088_v44  ;;  %v308_v13 = vsub.f32 0.0, %v292_v8  ;;  %2099 = vpow2.f32 %v329_v2  ;;  %v331_v24 = vmul.f32 1.442695, %v307_v51 }
  0x46   :  { %v2092_v12 = vpop.eup %2091  ;;  %v195_v16 = vmul.f32 0.6931472, %v2082_v31  ;;  %v298_v19 = vand.u32 2147483647, %v2840_v59  ;;  %v352_v21 = vadd.f32 1.0, %v2084_v50  ;;  %2101 = vlog2.f32 %v351_v56 }
  0x47   :  { %v2094_v28 = vpop.eup %2093  ;;  %v211_v23 = vadd.f32 %v191_v63, %v2755_v18  ;;  %v368_v29 = vmul.f32 0.6931472, %v2090_v9  ;;  %v395_v17 = vadd.f32 %v364_v62, %v2791_v43  ;;  %v396_v4 = vadd.f32 %v366_v11, %v2793_v45  ;;  %v2881_v11 = vld [vmem:[#allocation2 + $0x118] sm:$0xff] }
  0x48   :  { %v2096_v0 = vpop.eup %2095  ;;  %v197_v30 = vmul.f32 0.6931472, %v2092_v12  ;;  %v212_v32 = vadd.f32 %v193_v20, %v2758_v25  ;;  %v309_v33 = vsub.f32 0.0, %v293_v48  ;;  %v310_v34 = vsub.f32 0.0, %v294_v55  ;;  %v431_v20 = vld [vmem:[#allocation2 + $0x108] sm:$0xff] }
  0x49   :  { %v2098_v1 = vpop.eup %2097  ;;  %v199_v58 = vmul.f32 0.6931472, %v2094_v28  ;;  %v225_v60 = vadd.f32 %v224_v3, %v210_v53  ;;  %2103 = vpow2.f32 %v331_v24  ;;  %v333_v59 = vmul.f32 1.442695, %v308_v13  ;;  %v2883_v24 = vld [vmem:[#allocation2 + $0x120] sm:$0xff]  ;;  %v2885_v28 = vld [vmem:[#allocation2 + $0x128] sm:$0xff] }
  0x4a   :  { %v311_v8 = vsub.f32 0.0, %v295_v52  ;;  %v312_v31 = vsub.f32 0.0, %v296_v57  ;;  %v353_v39 = vadd.f32 1.0, %v2096_v0  ;;  %2105 = vlog2.f32 %v352_v21 }
  0x4b   :  { %v2100_v18 = vpop.eup %2099  ;;  %v313_v40 = vsub.f32 0.0, %v297_v10  ;;  %v370_v50 = vmul.f32 0.6931472, %v2098_v1  ;;  %v397_v43 = vadd.f32 %v368_v29, %v2795_v46  ;;  %v411_v45 = vadd.f32 %v396_v4, %v395_v17  ;;  %v2892_v1 = vld [vmem:[#allocation2 + $0x130] sm:$0xff] }
  0x4c   :  { %v2102_v15 = vpop.eup %2101  ;;  %v213_v51 = vadd.f32 %v195_v16, %v2760_v26  ;;  %v2871_v25 = vadd.f32 %v197_v30, %v2764_v41  ;;  %v314_v48 = vsub.f32 0.0, %v298_v19  ;;  %v335_v2 = vmul.f32 1.442695, %v309_v33  ;;  %v430_v41 = vld [vmem:[#allocation2 + $0x100] sm:$0xff]  ;;  %v2894_v30 = vld [vmem:[#allocation2 + $0x138] sm:$0xff] }
  0x4d   :  { %v2874_v54 = vadd.f32 %v199_v58, %v2766_v42  ;;  %v226_v55 = vadd.f32 %v225_v60, %v211_v23  ;;  %2107 = vpow2.f32 %v333_v59  ;;  %v337_v52 = vmul.f32 1.442695, %v310_v34  ;;  %v2879_v42 = vld [vmem:[#allocation2 + $0x110] sm:$0xff]  ;;  %v2896_v34 = vld [vmem:[#allocation2 + $0x140] sm:$0xff]  ;;  %v2898_v58 = vld [vmem:[#allocation2 + $0x148] sm:$0xff] }
  0x4e   :  { %v339_v56 = vmul.f32 1.442695, %v311_v8  ;;  %v341_v44 = vmul.f32 1.442695, %v312_v31  ;;  %v354_v63 = vadd.f32 1.0, %v2100_v18  ;;  %2109 = vlog2.f32 %v353_v39 }
  0x4f   :  { %v2104_v46 = vpop.eup %2103  ;;  %v343_v57 = vmul.f32 1.442695, %v313_v40  ;;  %v372_v62 = vmul.f32 0.6931472, %v2102_v15  ;;  %v398_v26 = vadd.f32 %v370_v50, %v2797_v47  ;;  %v412_v9 = vadd.f32 %v411_v45, %v397_v43 }
  0x50   :  { %v2106_v53 = vpop.eup %2105  ;;  %2111 = vpow2.f32 %v335_v2  ;;  %v2877_v10 = vmul.f32 1.442695, %v314_v48  ;;  %v446_v12 = vsub.f32 0.0, %v430_v41  ;;  %v447_v3 = vsub.f32 0.0, %v431_v20 }
  0x51   :  { %v227_v13 = vadd.f32 %v226_v55, %v212_v32  ;;  %2113 = vpow2.f32 %v337_v52  ;;  %v448_v47 = vsub.f32 0.0, %v2879_v42  ;;  %v449_v16 = vsub.f32 0.0, %v2881_v11 }
  0x52   :  { %v355_v19 = vadd.f32 1.0, %v2104_v46  ;;  %2115 = vlog2.f32 %v354_v63  ;;  %v450_v21 = vsub.f32 0.0, %v2883_v24  ;;  %v451_v0 = vsub.f32 0.0, %v2885_v28 }
  0x53   :  { %v2108_v23 = vpop.eup %2107  ;;  %v374_v29 = vmul.f32 0.6931472, %v2106_v53  ;;  %v399_v17 = vadd.f32 %v372_v62, %v2804_v5  ;;  %v413_v4 = vadd.f32 %v412_v9, %v398_v26  ;;  %v478_v32 = vand.u32 2147483647, %v430_v41  ;;  %v2902_v5 = vld [vmem:[#allocation2 + $0x150] sm:$0xff]  ;;  %v2915_v9 = vld [vmem:[#allocation2 + $0x160] sm:$0xff] }
  0x54   :  { %v2110_v33 = vpop.eup %2109  ;;  %2117 = vpow2.f32 %v339_v56  ;;  %v452_v60 = vsub.f32 0.0, %v2892_v1  ;;  %v453_v59 = vsub.f32 0.0, %v2894_v30  ;;  %v479_v8 = vand.u32 2147483647, %v431_v20 }
  0x55   :  { %v228_v31 = vadd.f32 %v227_v13, %v213_v51  ;;  %2119 = vpow2.f32 %v341_v44  ;;  %v454_v39 = vsub.f32 0.0, %v2896_v34  ;;  %v455_v18 = vsub.f32 0.0, %v2898_v58  ;;  %v2910_v51 = vld [vmem:[#allocation2 + $0x158] sm:$0xff] }
  0x56   :  { %v2112_v40 = vpop.eup %2111  ;;  %v356_v50 = vadd.f32 1.0, %v2108_v23  ;;  %2121 = vlog2.f32 %v355_v19  ;;  %v456_v43 = vsub.f32 0.0, %v2902_v5  ;;  %v2907_v45 = vmax.f32 %v446_v12, 0.0 }
  0x57   :  { %v2114_v15 = vpop.eup %2113  ;;  %v376_v48 = vmul.f32 0.6931472, %v2110_v33  ;;  %v400_v2 = vadd.f32 %v374_v29, %v2806_v6  ;;  %v414_v55 = vadd.f32 %v413_v4, %v399_v17  ;;  %v494_v52 = vsub.f32 0.0, %v478_v32 }
  0x58   :  { %v2116_v56 = vpop.eup %2115  ;;  %2123 = vpow2.f32 %v343_v57  ;;  %v457_v44 = vsub.f32 0.0, %v2910_v51  ;;  %v480_v63 = vand.u32 2147483647, %v2879_v42  ;;  %v495_v46 = vsub.f32 0.0, %v479_v8 }
  0x59   :  { %v229_v62 = vadd.f32 %v228_v31, %v2871_v25  ;;  %v357_v26 = vadd.f32 1.0, %v2112_v40  ;;  %v2917_v41 = vmax.f32 %v447_v3, 0.0  ;;  %v2919_v20 = vmax.f32 %v448_v47, 0.0 }
  0x5a   :  { %v2118_v6 = vpop.eup %2117  ;;  %v358_v53 = vadd.f32 1.0, %v2114_v15  ;;  %2125 = vlog2.f32 %v356_v50  ;;  %v458_v12 = vsub.f32 0.0, %v2915_v9  ;;  %v2922_v57 = vmax.f32 %v449_v16, 0.0  ;;  %v2930_v16 = vld [vmem:[#allocation2 + $0x168] sm:$0xff]  ;;  %v2937_v15 = vld [vmem:[#allocation2 + $0x170] sm:$0xff] }
  0x5b   :  { %v2120_v13 = vpop.eup %2119  ;;  %v378_v19 = vmul.f32 0.6931472, %v2116_v56  ;;  %v401_v42 = vadd.f32 %v376_v48, %v2810_v7  ;;  %v415_v23 = vadd.f32 %v414_v55, %v400_v2  ;;  %v510_v25 = vmul.f32 1.442695, %v494_v52  ;;  %v2943_v52 = vld [vmem:[#allocation2 + $0x178] sm:$0xff] }
  0x5c   :  { %v2122_v29 = vpop.eup %2121  ;;  %2127 = vpow2.f32 %v2877_v10  ;;  %v481_v3 = vand.u32 2147483647, %v2881_v11  ;;  %v496_v47 = vsub.f32 0.0, %v480_v63  ;;  %v512_v17 = vmul.f32 1.442695, %v495_v46 }
  0x5d   :  { %v2928_v4 = vadd.f32 %v229_v62, %v2874_v54  ;;  %v359_v32 = vadd.f32 1.0, %v2118_v6  ;;  %2129 = vlog2.f32 %v357_v26  ;;  %v2932_v33 = vmax.f32 %v450_v21, 0.0 }
  0x5e   :  { %v2124_v8 = vpop.eup %2123  ;;  %v360_v7 = vadd.f32 1.0, %v2120_v13  ;;  %2131 = vlog2.f32 %v358_v53  ;;  %v459_v31 = vsub.f32 0.0, %v2930_v16  ;;  %v482_v10 = vand.u32 2147483647, %v2883_v24 }
  0x5f   :  { %v380_v40 = vmul.f32 0.6931472, %v2122_v29  ;;  %v402_v11 = vadd.f32 %v378_v19, %v2818_v14  ;;  %v416_v50 = vadd.f32 %v415_v23, %v401_v42  ;;  %2133 = vpow2.f32 %v510_v25 }
  0x60   :  { %v2126_v54 = vpop.eup %2125  ;;  %v2941_v48 = vmax.f32 %v451_v0, 0.0  ;;  %v497_v21 = vsub.f32 0.0, %v481_v3  ;;  %2135 = vpow2.f32 %v512_v17  ;;  %v514_v2 = vmul.f32 1.442695, %v496_v47 }
  0x61   :  { %v361_v55 = vadd.f32 1.0, %v2124_v8  ;;  %2137 = vlog2.f32 %v359_v32  ;;  %v460_v24 = vsub.f32 0.0, %v2937_v15  ;;  %v2948_v14 = vmax.f32 %v452_v60, 0.0 }
  0x62   :  { %v2128_v56 = vpop.eup %2127  ;;  %2139 = vlog2.f32 %v360_v7  ;;  %v461_v63 = vsub.f32 0.0, %v2943_v52  ;;  %v2953_v0 = vmax.f32 %v453_v59, 0.0  ;;  %v2957_v46 = vmax.f32 %v454_v39, 0.0 }
  0x63   :  { %v2130_v62 = vpop.eup %2129  ;;  %v382_v26 = vmul.f32 0.6931472, %v2126_v54  ;;  %v403_v6 = vadd.f32 %v380_v40, %v2820_v27  ;;  %v417_v53 = vadd.f32 %v416_v50, %v402_v11  ;;  %v498_v13 = vsub.f32 0.0, %v482_v10 }
  0x64   :  { %v2132_v60 = vpop.eup %2131  ;;  %v2962_v19 = vmax.f32 %v455_v18, 0.0  ;;  %v483_v42 = vand.u32 2147483647, %v2885_v28  ;;  %2141 = vpow2.f32 %v514_v2  ;;  %v516_v59 = vmul.f32 1.442695, %v497_v21 }
  0x65   :  { %v2134_v23 = vpop.eup %2133  ;;  %v362_v25 = vadd.f32 1.0, %v2128_v56  ;;  %2143 = vlog2.f32 %v361_v55  ;;  %v2967_v39 = vmax.f32 %v456_v43, 0.0  ;;  %v2971_v27 = vmax.f32 %v457_v44, 0.0 }
  0x66   :  { %v2136_v29 = vpop.eup %2135  ;;  %v2973_v3 = vmax.f32 %v458_v12, 0.0  ;;  %v2975_v18 = vmax.f32 %v459_v31, 0.0  ;;  %v2977_v47 = vmax.f32 %v460_v24, 0.0  ;;  %v2979_v28 = vmax.f32 %v461_v63, 0.0 }
  0x67   :  { %v2138_v17 = vpop.eup %2137  ;;  %v384_v32 = vmul.f32 0.6931472, %v2130_v62  ;;  %v404_v8 = vadd.f32 %v382_v26, %v2823_v35  ;;  %v418_v7 = vadd.f32 %v417_v53, %v403_v6  ;;  %v518_v43 = vmul.f32 1.442695, %v498_v13 }
  0x68   :  { %v2140_v10 = vpop.eup %2139  ;;  %v484_v40 = vand.u32 2147483647, %v2892_v1  ;;  %v499_v44 = vsub.f32 0.0, %v483_v42  ;;  %2145 = vpow2.f32 %v516_v59  ;;  %v542_v11 = vadd.f32 1.0, %v2134_v23 }
  0x69   :  { %2147 = vlog2.f32 %v362_v25  ;;  %v485_v12 = vand.u32 2147483647, %v2894_v30  ;;  %v486_v31 = vand.u32 2147483647, %v2896_v34  ;;  %v543_v50 = vadd.f32 1.0, %v2136_v29 }
  0x6a   :  { %v2142_v54 = vpop.eup %2141  ;;  %v386_v21 = vmul.f32 0.6931472, %v2132_v60  ;;  %v487_v2 = vand.u32 2147483647, %v2898_v58  ;;  %v488_v35 = vand.u32 2147483647, %v2902_v5  ;;  %v405_v56 = vadd.f32 %v384_v32, %v2830_v49 }
  0x6b   :  { %v2144_v55 = vpop.eup %2143  ;;  %v388_v24 = vmul.f32 0.6931472, %v2138_v17  ;;  %v419_v1 = vadd.f32 %v418_v7, %v404_v8  ;;  %2149 = vpow2.f32 %v518_v43  ;;  %v489_v63 = vand.u32 2147483647, %v2910_v51 }
  0x6c   :  { %v500_v62 = vsub.f32 0.0, %v484_v40  ;;  %v520_v26 = vmul.f32 1.442695, %v499_v44  ;;  %2151 = vlog2.f32 %v542_v11  ;;  %v490_v30 = vand.u32 2147483647, %v2915_v9 }
  0x6d   :  { %v491_v34 = vand.u32 2147483647, %v2930_v16  ;;  %v544_v6 = vadd.f32 1.0, %v2142_v54  ;;  %2153 = vlog2.f32 %v543_v50  ;;  %v390_v53 = vmul.f32 0.6931472, %v2140_v10 }
  0x6e   :  { %v2146_v58 = vpop.eup %2145  ;;  %v392_v5 = vmul.f32 0.6931472, %v2144_v55  ;;  %v406_v13 = vadd.f32 %v386_v21, %v2832_v61  ;;  %v492_v49 = vand.u32 2147483647, %v2937_v15  ;;  %v407_v42 = vadd.f32 %v388_v24, %v2847_v36 }
  0x6f   :  { %v2148_v60 = vpop.eup %2147  ;;  %v420_v51 = vadd.f32 %v419_v1, %v405_v56  ;;  %v493_v59 = vand.u32 2147483647, %v2943_v52  ;;  %v501_v23 = vsub.f32 0.0, %v485_v12  ;;  %v502_v25 = vsub.f32 0.0, %v486_v31 }
  0x70   :  { %v503_v9 = vsub.f32 0.0, %v487_v2  ;;  %2155 = vpow2.f32 %v520_v26  ;;  %v522_v16 = vmul.f32 1.442695, %v500_v62  ;;  %v504_v17 = vsub.f32 0.0, %v488_v35  ;;  %v625_v26 = vld [vmem:[#allocation2 + $0x180] sm:$0xff] }
  0x71   :  { %v2150_v29 = vpop.eup %2149  ;;  %v505_v32 = vsub.f32 0.0, %v489_v63  ;;  %v545_v8 = vadd.f32 1.0, %v2146_v58  ;;  %2157 = vlog2.f32 %v544_v6  ;;  %v394_v61 = vmul.f32 0.6931472, %v2148_v60  ;;  %v3006_v6 = vld [vmem:[#allocation2 + $0x190] sm:$0xff]  ;;  %v3008_v58 = vld [vmem:[#allocation2 + $0x198] sm:$0xff] }
  0x72   :  { %v2152_v7 = vpop.eup %2151  ;;  %v408_v15 = vadd.f32 %v390_v53, %v2849_v22  ;;  %v2997_v43 = vadd.f32 %v392_v5, %v2851_v37  ;;  %v506_v36 = vsub.f32 0.0, %v490_v30  ;;  %v421_v52 = vadd.f32 %v420_v51, %v406_v13  ;;  %v626_v30 = vld [vmem:[#allocation2 + $0x188] sm:$0xff] }
  0x73   :  { %v2154_v10 = vpop.eup %2153  ;;  %v507_v40 = vsub.f32 0.0, %v491_v34  ;;  %v508_v44 = vsub.f32 0.0, %v492_v49  ;;  %v524_v11 = vmul.f32 1.442695, %v501_v23  ;;  %v509_v12 = vsub.f32 0.0, %v493_v59  ;;  %v3014_v23 = vld [vmem:[#allocation2 + $0x1a0] sm:$0xff] }
  0x74   :  { %2159 = vpow2.f32 %v522_v16  ;;  %v526_v31 = vmul.f32 1.442695, %v502_v25  ;;  %v528_v50 = vmul.f32 1.442695, %v503_v9  ;;  %v530_v54 = vmul.f32 1.442695, %v504_v17 }
  0x75   :  { %v532_v21 = vmul.f32 1.442695, %v505_v32  ;;  %v546_v2 = vadd.f32 1.0, %v2150_v29  ;;  %2161 = vlog2.f32 %v545_v8  ;;  %v3000_v22 = vadd.f32 %v394_v61, %v2853_v38  ;;  %v3016_v25 = vld [vmem:[#allocation2 + $0x1a8] sm:$0xff]  ;;  %v3018_v29 = vld [vmem:[#allocation2 + $0x1b0] sm:$0xff]  ;;  %v3020_v17 = vld [vmem:[#allocation2 + $0x1b8] sm:$0xff] }
  0x76   :  { %v2156_v35 = vpop.eup %2155  ;;  %v534_v37 = vmul.f32 1.442695, %v506_v36  ;;  %v559_v55 = vmul.f32 0.6931472, %v2152_v7  ;;  %v561_v24 = vmul.f32 0.6931472, %v2154_v10  ;;  %v422_v1 = vadd.f32 %v421_v52, %v407_v42 }
  0x77   :  { %v2158_v56 = vpop.eup %2157  ;;  %2163 = vpow2.f32 %v524_v11  ;;  %v536_v63 = vmul.f32 1.442695, %v507_v40  ;;  %v3002_v62 = vmul.f32 1.442695, %v508_v44  ;;  %v3004_v34 = vmul.f32 1.442695, %v509_v12 }
  0x78   :  { %2165 = vpow2.f32 %v526_v31  ;;  %v641_v38 = vsub.f32 0.0, %v625_v26  ;;  %v642_v53 = vsub.f32 0.0, %v626_v30  ;;  %v547_v5 = vadd.f32 1.0, %v2156_v35  ;;  %v3024_v7 = vld [vmem:[#allocation2 + $0x1c0] sm:$0xff]  ;;  %v3030_v31 = vld [vmem:[#allocation2 + $0x1c8] sm:$0xff] }
  0x79   :  { %2167 = vlog2.f32 %v546_v2  ;;  %v643_v13 = vsub.f32 0.0, %v3006_v6  ;;  %v644_v49 = vsub.f32 0.0, %v3008_v58  ;;  %v563_v42 = vmul.f32 0.6931472, %v2158_v56  ;;  %v3034_v2 = vld [vmem:[#allocation2 + $0x1d0] sm:$0xff] }
  0x7a   :  { %v2160_v60 = vpop.eup %2159  ;;  %2169 = vpow2.f32 %v528_v50  ;;  %v590_v51 = vadd.f32 %v559_v55, %v2907_v45  ;;  %v591_v59 = vadd.f32 %v561_v24, %v2917_v41  ;;  %v423_v16 = vadd.f32 %v422_v1, %v408_v15 }
  0x7b   :  { %v2162_v9 = vpop.eup %2161  ;;  %2171 = vpow2.f32 %v530_v54  ;;  %v645_v32 = vsub.f32 0.0, %v3014_v23  ;;  %v646_v8 = vsub.f32 0.0, %v3016_v25  ;;  %v647_v45 = vsub.f32 0.0, %v3018_v29 }
  0x7c   :  { %2173 = vpow2.f32 %v532_v21  ;;  %v648_v41 = vsub.f32 0.0, %v3020_v17  ;;  %v673_v61 = vand.u32 2147483647, %v625_v26  ;;  %v548_v10 = vadd.f32 1.0, %v2160_v60 }
  0x7d   :  { %v2164_v36 = vpop.eup %2163  ;;  %2175 = vlog2.f32 %v547_v5  ;;  %v649_v15 = vsub.f32 0.0, %v3024_v7  ;;  %v674_v52 = vand.u32 2147483647, %v626_v30  ;;  %v565_v44 = vmul.f32 0.6931472, %v2162_v9 }
  0x7e   :  { %v2166_v40 = vpop.eup %2165  ;;  %v592_v11 = vadd.f32 %v563_v42, %v2919_v20  ;;  %v606_v12 = vadd.f32 %v591_v59, %v590_v51  ;;  %v675_v50 = vand.u32 2147483647, %v3006_v6  ;;  %v424_v21 = vadd.f32 %v423_v16, %v2997_v43  ;;  %v3048_v59 = vld [vmem:[#allocation2 + $0x1d8] sm:$0xff] }
  0x7f   :  { %v2168_v54 = vpop.eup %2167  ;;  %2177 = vpow2.f32 %v534_v37  ;;  %v650_v35 = vsub.f32 0.0, %v3030_v31  ;;  %v3037_v55 = vmax.f32 %v641_v38, 0.0  ;;  %v651_v56 = vsub.f32 0.0, %v3034_v2 }
  0x80   :  { %v2170_v24 = vpop.eup %2169  ;;  %2179 = vpow2.f32 %v536_v63  ;;  %v3040_v20 = vmax.f32 %v642_v53, 0.0  ;;  %v689_v1 = vsub.f32 0.0, %v673_v61  ;;  %v549_v30 = vadd.f32 1.0, %v2164_v36 }
  0x81   :  { %v2172_v26 = vpop.eup %2171  ;;  %2181 = vlog2.f32 %v548_v10  ;;  %v676_v6 = vand.u32 2147483647, %v3008_v58  ;;  %v690_v43 = vsub.f32 0.0, %v674_v52  ;;  %v567_v5 = vmul.f32 0.6931472, %v2168_v54 }
  0x82   :  { %v2174_v37 = vpop.eup %2173  ;;  %v593_v60 = vadd.f32 %v565_v44, %v2922_v57  ;;  %v607_v42 = vadd.f32 %v606_v12, %v592_v11  ;;  %v691_v38 = vsub.f32 0.0, %v675_v50  ;;  %v3045_v63 = vadd.f32 %v424_v21, %v3000_v22 }
  0x83   :  { %v2176_v51 = vpop.eup %2175  ;;  %2183 = vpow2.f32 %v3002_v62  ;;  %v550_v53 = vadd.f32 1.0, %v2166_v40  ;;  %v3050_v9 = vmax.f32 %v643_v13, 0.0  ;;  %v652_v58 = vsub.f32 0.0, %v3048_v59  ;;  %v3058_v13 = vld [vmem:[#allocation2 + $0x1e0] sm:$0xff] }
  0x84   :  { %2185 = vpow2.f32 %v3004_v34  ;;  %v3054_v16 = vmax.f32 %v644_v49, 0.0  ;;  %v705_v57 = vmul.f32 1.442695, %v689_v1  ;;  %v677_v36 = vand.u32 2147483647, %v3014_v23 }
  0x85   :  { %v2178_v61 = vpop.eup %2177  ;;  %2187 = vlog2.f32 %v549_v30  ;;  %v692_v22 = vsub.f32 0.0, %v676_v6  ;;  %v707_v10 = vmul.f32 1.442695, %v690_v43  ;;  %v569_v62 = vmul.f32 0.6931472, %v2176_v51 }
  0x86   :  { %v2180_v52 = vpop.eup %2179  ;;  %v594_v40 = vadd.f32 %v567_v5, %v2932_v33  ;;  %v608_v44 = vadd.f32 %v607_v42, %v593_v60  ;;  %v709_v11 = vmul.f32 1.442695, %v691_v38  ;;  %v551_v12 = vadd.f32 1.0, %v2170_v24 }
  0x87   :  { %v2182_v34 = vpop.eup %2181  ;;  %2189 = vlog2.f32 %v550_v53  ;;  %v653_v49 = vsub.f32 0.0, %v3058_v13  ;;  %v3063_v50 = vmax.f32 %v645_v32, 0.0  ;;  %v552_v54 = vadd.f32 1.0, %v2172_v26 }
  0x88   :  { %v3067_v21 = vmax.f32 %v646_v8, 0.0  ;;  %v678_v33 = vand.u32 2147483647, %v3016_v25  ;;  %2191 = vpow2.f32 %v705_v57  ;;  %v553_v30 = vadd.f32 1.0, %v2174_v37  ;;  %v3073_v8 = vld [vmem:[#allocation2 + $0x1e8] sm:$0xff] }
  0x89   :  { %v2184_v1 = vpop.eup %2183  ;;  %v693_v6 = vsub.f32 0.0, %v677_v36  ;;  %2193 = vpow2.f32 %v707_v10  ;;  %v711_v24 = vmul.f32 1.442695, %v692_v22  ;;  %v571_v5 = vmul.f32 0.6931472, %v2182_v34 }
  0x8a   :  { %v3070_v43 = vpop.eup %2185  ;;  %v595_v23 = vadd.f32 %v569_v62, %v2941_v48  ;;  %v609_v32 = vadd.f32 %v608_v44, %v594_v40  ;;  %2195 = vpow2.f32 %v709_v11  ;;  %v554_v60 = vadd.f32 1.0, %v2178_v61  ;;  %v3090_v62 = vld [vmem:[#allocation2 + $0x1f0] sm:$0xff] }
  0x8b   :  { %v2188_v26 = vpop.eup %2187  ;;  %2197 = vlog2.f32 %v551_v12  ;;  %v3077_v25 = vmax.f32 %v647_v45, 0.0  ;;  %v3081_v37 = vmax.f32 %v648_v41, 0.0  ;;  %v555_v42 = vadd.f32 1.0, %v2180_v52 }
  0x8c   :  { %2199 = vlog2.f32 %v552_v54  ;;  %v654_v38 = vsub.f32 0.0, %v3073_v8  ;;  %v694_v48 = vsub.f32 0.0, %v678_v33  ;;  %v3086_v53 = vmax.f32 %v649_v15, 0.0 }
  0x8d   :  { %v2190_v51 = vpop.eup %2189  ;;  %v679_v57 = vand.u32 2147483647, %v3018_v29  ;;  %2201 = vpow2.f32 %v711_v24  ;;  %v713_v61 = vmul.f32 1.442695, %v693_v6  ;;  %v573_v36 = vmul.f32 0.6931472, %v2188_v26 }
  0x8e   :  { %v2192_v45 = vpop.eup %2191  ;;  %2203 = vlog2.f32 %v553_v30  ;;  %v596_v41 = vadd.f32 %v571_v5, %v2948_v14  ;;  %v610_v22 = vadd.f32 %v609_v32, %v595_v23  ;;  %v556_v52 = vadd.f32 1.0, %v2184_v1  ;;  %v3105_v5 = vld [vmem:[#allocation2 + $0x1f8] sm:$0xff] }
  0x8f   :  { %v2194_v10 = vpop.eup %2193  ;;  %2205 = vlog2.f32 %v554_v60  ;;  %v3094_v40 = vmax.f32 %v650_v35, 0.0  ;;  %v3098_v29 = vmax.f32 %v651_v56, 0.0  ;;  %v655_v44 = vsub.f32 0.0, %v3090_v62 }
  0x90   :  { %v2196_v15 = vpop.eup %2195  ;;  %2207 = vlog2.f32 %v555_v42  ;;  %v3101_v11 = vmax.f32 %v652_v58, 0.0  ;;  %v715_v14 = vmul.f32 1.442695, %v694_v48  ;;  %v680_v12 = vand.u32 2147483647, %v3020_v17 }
  0x91   :  { %v2198_v34 = vpop.eup %2197  ;;  %v695_v54 = vsub.f32 0.0, %v679_v57  ;;  %2209 = vpow2.f32 %v713_v61  ;;  %v737_v33 = vadd.f32 1.0, %v2192_v45  ;;  %v575_v35 = vmul.f32 0.6931472, %v2190_v51 }
  0x92   :  { %v2200_v1 = vpop.eup %2199  ;;  %v597_v30 = vadd.f32 %v573_v36, %v2953_v0  ;;  %v611_v6 = vadd.f32 %v610_v22, %v596_v41  ;;  %v738_v56 = vadd.f32 1.0, %v2194_v10  ;;  %2211 = vlog2.f32 %v556_v52 }
  0x93   :  { %v2202_v24 = vpop.eup %2201  ;;  %v3107_v23 = vmax.f32 %v653_v49, 0.0  ;;  %v3109_v58 = vmax.f32 %v654_v38, 0.0  ;;  %v739_v32 = vadd.f32 1.0, %v2196_v15  ;;  %v656_v17 = vsub.f32 0.0, %v3105_v5 }
  0x94   :  { %v2204_v26 = vpop.eup %2203  ;;  %v3112_v60 = vmax.f32 %v655_v44, 0.0  ;;  %v681_v42 = vand.u32 2147483647, %v3024_v7  ;;  %2213 = vpow2.f32 %v715_v14  ;;  %v577_v48 = vmul.f32 0.6931472, %v2198_v34 }
  0x95   :  { %v2206_v0 = vpop.eup %2205  ;;  %v696_v51 = vsub.f32 0.0, %v680_v12  ;;  %v717_v57 = vmul.f32 1.442695, %v695_v54  ;;  %2215 = vlog2.f32 %v737_v33  ;;  %v598_v49 = vadd.f32 %v575_v35, %v2957_v46 }
  0x96   :  { %v2208_v61 = vpop.eup %2207  ;;  %v612_v45 = vadd.f32 %v611_v6, %v597_v30  ;;  %v740_v38 = vadd.f32 1.0, %v2202_v24  ;;  %2217 = vlog2.f32 %v738_v56  ;;  %v557_v41 = vadd.f32 1.0, %v3070_v43 }
  0x97   :  { %v2210_v36 = vpop.eup %2209  ;;  %v682_v22 = vand.u32 2147483647, %v3030_v31  ;;  %v683_v10 = vand.u32 2147483647, %v3034_v2  ;;  %2219 = vlog2.f32 %v739_v32  ;;  %v3121_v7 = vadd.f32 %v3045_v63, %v2928_v4 }
  0x98   :  { %v579_v52 = vmul.f32 0.6931472, %v2200_v1  ;;  %v684_v15 = vand.u32 2147483647, %v3048_v59  ;;  %v685_v46 = vand.u32 2147483647, %v3058_v13  ;;  %v2212_v44 = vpop.eup %2211  ;;  %2221 = vpow2.f32 %v717_v57 }
  0x99   :  { %v686_v14 = vand.u32 2147483647, %v3073_v8  ;;  %v697_v34 = vsub.f32 0.0, %v681_v42  ;;  %v719_v43 = vmul.f32 1.442695, %v696_v51  ;;  %v599_v31 = vadd.f32 %v577_v48, %v2962_v19 }
  0x9a   :  { %v2214_v12 = vpop.eup %2213  ;;  %v613_v2 = vadd.f32 %v612_v45, %v598_v49  ;;  %v741_v54 = vadd.f32 1.0, %v2210_v36  ;;  %2223 = vlog2.f32 %v740_v38  ;;  %v581_v4 = vmul.f32 0.6931472, %v2204_v26 }
  0x9b   :  { %v2216_v33 = vpop.eup %2215  ;;  %2225 = vlog2.f32 %v557_v41  ;;  %v687_v63 = vand.u32 2147483647, %v3090_v62  ;;  %v688_v59 = vand.u32 2147483647, %v3105_v5  ;;  %v583_v1 = vmul.f32 0.6931472, %v2206_v0 }
  0x9c   :  { %v2218_v13 = vpop.eup %2217  ;;  %v3129_v35 = vmax.f32 %v656_v17, 0.0  ;;  %v698_v8 = vsub.f32 0.0, %v682_v22  ;;  %v754_v30 = vmul.f32 0.6931472, %v2216_v33  ;;  %v699_v56 = vsub.f32 0.0, %v683_v10 }
  0x9d   :  { %v2220_v6 = vpop.eup %2219  ;;  %2227 = vpow2.f32 %v719_v43  ;;  %v721_v19 = vmul.f32 1.442695, %v697_v34  ;;  %v756_v24 = vmul.f32 0.6931472, %v2218_v13  ;;  %v600_v32 = vadd.f32 %v579_v52, %v2967_v39 }
  0x9e   :  { %v614_v42 = vadd.f32 %v613_v2, %v599_v31  ;;  %v742_v26 = vadd.f32 1.0, %v2214_v12  ;;  %2229 = vlog2.f32 %v741_v54  ;;  %v2222_v48 = vpop.eup %2221  ;;  %v585_v62 = vmul.f32 0.6931472, %v2208_v61  ;;  %v3141_v2 = vld [vmem:[#allocation2 + $0x200] sm:$0xff] }
  0x9f   :  { %v758_v51 = vmul.f32 0.6931472, %v2220_v6  ;;  %v785_v5 = vadd.f32 %v754_v30, %v3037_v55  ;;  %v786_v17 = vadd.f32 %v756_v24, %v3040_v20  ;;  %v587_v57 = vmul.f32 0.6931472, %v2212_v44 }
  0xa0   :  { %v2224_v0 = vpop.eup %2223  ;;  %v601_v49 = vadd.f32 %v581_v4, %v2971_v27  ;;  %v602_v45 = vadd.f32 %v583_v1, %v2973_v3  ;;  %v723_v38 = vmul.f32 1.442695, %v698_v8  ;;  %v700_v41 = vsub.f32 0.0, %v684_v15  ;;  %v3146_v8 = vld [vmem:[#allocation2 + $0x210] sm:$0xff] }
  0xa1   :  { %v2226_v36 = vpop.eup %2225  ;;  %v701_v39 = vsub.f32 0.0, %v685_v46  ;;  %2231 = vpow2.f32 %v721_v19  ;;  %v725_v22 = vmul.f32 1.442695, %v699_v56  ;;  %v615_v10 = vadd.f32 %v614_v42, %v600_v32  ;;  %v3151_v56 = vld [vmem:[#allocation2 + $0x218] sm:$0xff] }
  0xa2   :  { %v702_v52 = vsub.f32 0.0, %v686_v14  ;;  %v743_v61 = vadd.f32 1.0, %v2222_v48  ;;  %2233 = vlog2.f32 %v742_v26  ;;  %v703_v55 = vsub.f32 0.0, %v687_v63 }
  0xa3   :  { %v2228_v34 = vpop.eup %2227  ;;  %v760_v43 = vmul.f32 0.6931472, %v2224_v0  ;;  %v787_v20 = vadd.f32 %v758_v51, %v3050_v9  ;;  %v801_v44 = vadd.f32 %v786_v17, %v785_v5  ;;  %v589_v27 = vmul.f32 0.6931472, %v2226_v36  ;;  %v3143_v9 = vld [vmem:[#allocation2 + $0x208] sm:$0xff] }
  0xa4   :  { %v2230_v12 = vpop.eup %2229  ;;  %v603_v3 = vadd.f32 %v585_v62, %v2975_v18  ;;  %v704_v31 = vsub.f32 0.0, %v688_v59  ;;  %2235 = vpow2.f32 %v723_v38  ;;  %v3139_v15 = vadd.f32 %v587_v57, %v2977_v47  ;;  %v3163_v38 = vld [vmem:[#allocation2 + $0x228] sm:$0xff] }
  0xa5   :  { %2237 = vpow2.f32 %v725_v22  ;;  %v727_v46 = vmul.f32 1.442695, %v700_v41  ;;  %v729_v14 = vmul.f32 1.442695, %v701_v39  ;;  %v616_v54 = vadd.f32 %v615_v10, %v601_v49  ;;  %v3161_v49 = vld [vmem:[#allocation2 + $0x220] sm:$0xff]  ;;  %v3165_v41 = vld [vmem:[#allocation2 + $0x230] sm:$0xff] }
  0xa6   :  { %v731_v33 = vmul.f32 1.442695, %v702_v52  ;;  %v744_v4 = vadd.f32 1.0, %v2228_v34  ;;  %2239 = vlog2.f32 %v743_v61  ;;  %v733_v13 = vmul.f32 1.442695, %v703_v55  ;;  %v3167_v39 = vld [vmem:[#allocation2 + $0x238] sm:$0xff] }
  0xa7   :  { %v2232_v63 = vpop.eup %2231  ;;  %v762_v1 = vmul.f32 0.6931472, %v2230_v12  ;;  %v788_v18 = vadd.f32 %v760_v43, %v3054_v16  ;;  %v802_v59 = vadd.f32 %v801_v44, %v787_v20  ;;  %v3149_v30 = vadd.f32 %v589_v27, %v2979_v28 }
  0xa8   :  { %v2234_v47 = vpop.eup %2233  ;;  %v735_v6 = vmul.f32 1.442695, %v704_v31  ;;  %v836_v19 = vsub.f32 0.0, %v3141_v2  ;;  %v868_v24 = vand.u32 2147483647, %v3141_v2  ;;  %v837_v32 = vsub.f32 0.0, %v3143_v9 }
  0xa9   :  { %v838_v42 = vsub.f32 0.0, %v3146_v8  ;;  %v839_v16 = vsub.f32 0.0, %v3151_v56  ;;  %v869_v26 = vand.u32 2147483647, %v3143_v9  ;;  %v617_v62 = vadd.f32 %v616_v54, %v602_v45  ;;  %v3175_v31 = vld [vmem:[#allocation2 + $0x240] sm:$0xff]  ;;  %v3177_v2 = vld [vmem:[#allocation2 + $0x248] sm:$0xff] }
  0xaa   :  { %v2236_v48 = vpop.eup %2235  ;;  %v745_v51 = vadd.f32 1.0, %v2232_v63  ;;  %2241 = vlog2.f32 %v744_v4  ;;  %v870_v28 = vand.u32 2147483647, %v3146_v8  ;;  %v764_v17 = vmul.f32 0.6931472, %v2234_v47 }
  0xab   :  { %v2238_v5 = vpop.eup %2237  ;;  %2243 = vpow2.f32 %v727_v46  ;;  %v789_v0 = vadd.f32 %v762_v1, %v3063_v50  ;;  %v803_v57 = vadd.f32 %v802_v59, %v788_v18  ;;  %v840_v45 = vsub.f32 0.0, %v3161_v49 }
  0xac   :  { %v2240_v36 = vpop.eup %2239  ;;  %2245 = vpow2.f32 %v729_v14  ;;  %v841_v22 = vsub.f32 0.0, %v3163_v38  ;;  %v884_v10 = vsub.f32 0.0, %v868_v24  ;;  %v842_v52 = vsub.f32 0.0, %v3165_v41 }
  0xad   :  { %2247 = vpow2.f32 %v731_v33  ;;  %v843_v50 = vsub.f32 0.0, %v3167_v39  ;;  %v885_v61 = vsub.f32 0.0, %v869_v26  ;;  %v746_v34 = vadd.f32 1.0, %v2236_v48 }
  0xae   :  { %2249 = vlog2.f32 %v745_v51  ;;  %v871_v55 = vand.u32 2147483647, %v3151_v56  ;;  %v886_v43 = vsub.f32 0.0, %v870_v28  ;;  %v747_v20 = vadd.f32 1.0, %v2238_v5 }
  0xaf   :  { %v766_v44 = vmul.f32 0.6931472, %v2240_v36  ;;  %v790_v12 = vadd.f32 %v764_v17, %v3067_v21  ;;  %v804_v27 = vadd.f32 %v803_v57, %v789_v0  ;;  %v618_v14 = vadd.f32 %v617_v62, %v603_v3  ;;  %v3185_v62 = vld [vmem:[#allocation2 + $0x250] sm:$0xff]  ;;  %v3192_v17 = vld [vmem:[#allocation2 + $0x258] sm:$0xff] }
  0xb0   :  { %v2242_v46 = vpop.eup %2241  ;;  %2251 = vpow2.f32 %v733_v13  ;;  %v844_v54 = vsub.f32 0.0, %v3175_v31  ;;  %v900_v33 = vmul.f32 1.442695, %v884_v10  ;;  %v845_v63 = vsub.f32 0.0, %v3177_v2 }
  0xb1   :  { %v2244_v4 = vpop.eup %2243  ;;  %2253 = vpow2.f32 %v735_v6  ;;  %v3181_v1 = vmax.f32 %v836_v19, 0.0  ;;  %v902_v18 = vmul.f32 1.442695, %v885_v61  ;;  %v872_v21 = vand.u32 2147483647, %v3161_v49 }
  0xb2   :  { %v2246_v59 = vpop.eup %2245  ;;  %2255 = vlog2.f32 %v746_v34  ;;  %v887_v47 = vsub.f32 0.0, %v871_v55  ;;  %v904_v24 = vmul.f32 1.442695, %v886_v43  ;;  %v768_v13 = vmul.f32 0.6931472, %v2242_v46 }
  0xb3   :  { %v2248_v3 = vpop.eup %2247  ;;  %2257 = vlog2.f32 %v747_v20  ;;  %v791_v26 = vadd.f32 %v766_v44, %v3077_v25  ;;  %v805_v48 = vadd.f32 %v804_v27, %v790_v12  ;;  %v3188_v51 = vadd.f32 %v618_v14, %v3139_v15  ;;  %v3204_v20 = vld [vmem:[#allocation2 + $0x260] sm:$0xff] }
  0xb4   :  { %v2250_v6 = vpop.eup %2249  ;;  %v846_v19 = vsub.f32 0.0, %v3185_v62  ;;  %v873_v28 = vand.u32 2147483647, %v3163_v38  ;;  %2259 = vpow2.f32 %v900_v33  ;;  %v748_v5 = vadd.f32 1.0, %v2244_v4 }
  0xb5   :  { %v3196_v0 = vmax.f32 %v837_v32, 0.0  ;;  %v3200_v25 = vmax.f32 %v838_v42, 0.0  ;;  %2261 = vpow2.f32 %v902_v18  ;;  %v847_v15 = vsub.f32 0.0, %v3192_v17 }
  0xb6   :  { %v2252_v57 = vpop.eup %2251  ;;  %v888_v49 = vsub.f32 0.0, %v872_v21  ;;  %2263 = vpow2.f32 %v904_v24  ;;  %v906_v36 = vmul.f32 1.442695, %v887_v47  ;;  %v749_v61 = vadd.f32 1.0, %v2246_v59  ;;  %v3223_v21 = vld [vmem:[#allocation2 + $0x268] sm:$0xff] }
  0xb7   :  { %v2254_v10 = vpop.eup %2253  ;;  %v770_v34 = vmul.f32 0.6931472, %v2250_v6  ;;  %v792_v55 = vadd.f32 %v768_v13, %v3081_v37  ;;  %v806_v43 = vadd.f32 %v805_v48, %v791_v26  ;;  %v750_v32 = vadd.f32 1.0, %v2248_v3 }
  0xb8   :  { %v2256_v9 = vpop.eup %2255  ;;  %v3208_v8 = vmax.f32 %v839_v16, 0.0  ;;  %v3210_v42 = vmax.f32 %v840_v45, 0.0  ;;  %v889_v44 = vsub.f32 0.0, %v873_v28  ;;  %v751_v27 = vadd.f32 1.0, %v2252_v57 }
  0xb9   :  { %v2258_v12 = vpop.eup %2257  ;;  %2265 = vlog2.f32 %v748_v5  ;;  %v848_v46 = vsub.f32 0.0, %v3204_v20  ;;  %v3215_v37 = vmax.f32 %v841_v22, 0.0  ;;  %v3219_v33 = vmax.f32 %v842_v52, 0.0  ;;  %v3238_v5 = vld [vmem:[#allocation2 + $0x270] sm:$0xff] }
  0xba   :  { %v2260_v14 = vpop.eup %2259  ;;  %v874_v56 = vand.u32 2147483647, %v3165_v41  ;;  %2267 = vpow2.f32 %v906_v36  ;;  %v908_v16 = vmul.f32 1.442695, %v888_v49  ;;  %v772_v4 = vmul.f32 0.6931472, %v2256_v9 }
  0xbb   :  { %v2262_v45 = vpop.eup %2261  ;;  %2269 = vlog2.f32 %v749_v61  ;;  %v793_v18 = vadd.f32 %v770_v34, %v3086_v53  ;;  %v807_v59 = vadd.f32 %v806_v43, %v792_v55  ;;  %v849_v22 = vsub.f32 0.0, %v3223_v21 }
  0xbc   :  { %v2264_v38 = vpop.eup %2263  ;;  %2271 = vlog2.f32 %v750_v32  ;;  %v3228_v52 = vmax.f32 %v843_v50, 0.0  ;;  %v910_v47 = vmul.f32 1.442695, %v889_v44  ;;  %v3232_v41 = vmax.f32 %v844_v54, 0.0 }
  0xbd   :  { %2273 = vlog2.f32 %v751_v27  ;;  %v3234_v24 = vmax.f32 %v845_v63, 0.0  ;;  %v932_v53 = vadd.f32 1.0, %v2260_v14  ;;  %v875_v3 = vand.u32 2147483647, %v3167_v39 }
  0xbe   :  { %v890_v13 = vsub.f32 0.0, %v874_v56  ;;  %2275 = vpow2.f32 %v908_v16  ;;  %v933_v26 = vadd.f32 1.0, %v2262_v45  ;;  %v774_v6 = vmul.f32 0.6931472, %v2258_v12 }
  0xbf   :  { %v2266_v48 = vpop.eup %2265  ;;  %v794_v28 = vadd.f32 %v772_v4, %v3094_v40  ;;  %v808_v50 = vadd.f32 %v807_v59, %v793_v18  ;;  %v934_v57 = vadd.f32 1.0, %v2264_v38  ;;  %v752_v36 = vadd.f32 1.0, %v2254_v10 }
  0xc0   :  { %v2268_v49 = vpop.eup %2267  ;;  %v850_v54 = vsub.f32 0.0, %v3238_v5  ;;  %v3241_v63 = vmax.f32 %v846_v19, 0.0  ;;  %2277 = vpow2.f32 %v910_v47  ;;  %v3243_v39 = vmax.f32 %v847_v15, 0.0  ;;  %v3249_v19 = vld [vmem:[#allocation2 + $0x278] sm:$0xff] }
  0xc1   :  { %v2270_v61 = vpop.eup %2269  ;;  %v3245_v34 = vmax.f32 %v848_v46, 0.0  ;;  %v876_v55 = vand.u32 2147483647, %v3175_v31  ;;  %2279 = vlog2.f32 %v932_v53  ;;  %v776_v43 = vmul.f32 0.6931472, %v2266_v48 }
  0xc2   :  { %v2272_v40 = vpop.eup %2271  ;;  %v891_v9 = vsub.f32 0.0, %v875_v3  ;;  %v912_v32 = vmul.f32 1.442695, %v890_v13  ;;  %2281 = vlog2.f32 %v933_v26  ;;  %v795_v10 = vadd.f32 %v774_v6, %v3098_v29 }
  0xc3   :  { %v2274_v44 = vpop.eup %2273  ;;  %v809_v12 = vadd.f32 %v808_v50, %v794_v28  ;;  %v935_v27 = vadd.f32 1.0, %v2268_v49  ;;  %2283 = vlog2.f32 %v934_v57  ;;  %v851_v46 = vsub.f32 0.0, %v3249_v19 }
  0xc4   :  { %v2276_v15 = vpop.eup %2275  ;;  %2285 = vlog2.f32 %v752_v36  ;;  %v3252_v14 = vmax.f32 %v849_v22, 0.0  ;;  %v3254_v31 = vmax.f32 %v850_v54, 0.0  ;;  %v620_v56 = vadd.f32 %v3188_v51, %v3149_v30 }
  0xc5   :  { %v877_v16 = vand.u32 2147483647, %v3177_v2  ;;  %v878_v29 = vand.u32 2147483647, %v3185_v62  ;;  %v879_v45 = vand.u32 2147483647, %v3192_v17  ;;  %2287 = vpow2.f32 %v912_v32 }
  0xc6   :  { %v2278_v4 = vpop.eup %2277  ;;  %v778_v18 = vmul.f32 0.6931472, %v2270_v61  ;;  %v892_v59 = vsub.f32 0.0, %v876_v55  ;;  %v914_v38 = vmul.f32 1.442695, %v891_v9  ;;  %v796_v22 = vadd.f32 %v776_v43, %v3101_v11 }
  0xc7   :  { %v2280_v47 = vpop.eup %2279  ;;  %v810_v53 = vadd.f32 %v809_v12, %v795_v10  ;;  %v936_v3 = vadd.f32 1.0, %v2276_v15  ;;  %2289 = vlog2.f32 %v935_v27  ;;  %v880_v30 = vand.u32 2147483647, %v3204_v20 }
  0xc8   :  { %v2282_v13 = vpop.eup %2281  ;;  %v881_v2 = vand.u32 2147483647, %v3223_v21  ;;  %v949_v51 = vmul.f32 0.6931472, %v2280_v47  ;;  %v3265_v17 = vadd.f32 %v620_v56, %v3121_v7  ;;  %v780_v26 = vmul.f32 0.6931472, %v2272_v40 }
  0xc9   :  { %v2284_v62 = vpop.eup %2283  ;;  %v882_v48 = vand.u32 2147483647, %v3238_v5  ;;  %v951_v6 = vmul.f32 0.6931472, %v2282_v13  ;;  %v883_v11 = vand.u32 2147483647, %v3249_v19  ;;  %2291 = vpow2.f32 %v914_v38 }
  0xca   :  { %v2286_v28 = vpop.eup %2285  ;;  %v893_v50 = vsub.f32 0.0, %v877_v16  ;;  %v916_v57 = vmul.f32 1.442695, %v892_v59  ;;  %v797_v49 = vadd.f32 %v778_v18, %v3107_v23  ;;  %v811_v20 = vadd.f32 %v810_v53, %v796_v22  ;;  %v1015_v13 = vld [vmem:[#allocation2 + $0x280] sm:$0xff] }
  0xcb   :  { %v937_v36 = vadd.f32 1.0, %v2278_v4  ;;  %2293 = vlog2.f32 %v936_v3  ;;  %v2288_v21 = vpop.eup %2287  ;;  %v782_v54 = vmul.f32 0.6931472, %v2274_v44  ;;  %v953_v61 = vmul.f32 0.6931472, %v2284_v62  ;;  %v1016_v62 = vld [vmem:[#allocation2 + $0x288] sm:$0xff] }
  0xcc   :  { %v980_v7 = vadd.f32 %v949_v51, %v3181_v1  ;;  %v981_v55 = vadd.f32 %v951_v6, %v3196_v0  ;;  %v784_v40 = vmul.f32 0.6931472, %v2286_v28  ;;  %v798_v43 = vadd.f32 %v780_v26, %v3109_v58  ;;  %v3281_v26 = vld [vmem:[#allocation2 + $0x298] sm:$0xff]  ;;  %v3285_v6 = vld [vmem:[#allocation2 + $0x2a8] sm:$0xff] }
  0xcd   :  { %v2290_v5 = vpop.eup %2289  ;;  %v894_v9 = vsub.f32 0.0, %v878_v29  ;;  %v895_v32 = vsub.f32 0.0, %v879_v45  ;;  %v896_v10 = vsub.f32 0.0, %v880_v30  ;;  %v897_v12 = vsub.f32 0.0, %v881_v2 }
  0xce   :  { %2295 = vpow2.f32 %v916_v57  ;;  %v918_v23 = vmul.f32 1.442695, %v893_v50  ;;  %v812_v19 = vadd.f32 %v811_v20, %v797_v49  ;;  %v898_v27 = vsub.f32 0.0, %v882_v48  ;;  %v3283_v48 = vld [vmem:[#allocation2 + $0x2a0] sm:$0xff]  ;;  %v3288_v57 = vld [vmem:[#allocation2 + $0x2b0] sm:$0xff] }
  0xcf   :  { %v938_v15 = vadd.f32 1.0, %v2288_v21  ;;  %2297 = vlog2.f32 %v937_v36  ;;  %v2292_v44 = vpop.eup %2291  ;;  %v899_v56 = vsub.f32 0.0, %v883_v11  ;;  %v955_v16 = vmul.f32 0.6931472, %v2290_v5 }
  0xd0   :  { %v982_v1 = vadd.f32 %v953_v61, %v3200_v25  ;;  %v996_v0 = vadd.f32 %v981_v55, %v980_v7  ;;  %v799_v18 = vadd.f32 %v782_v54, %v3112_v60  ;;  %v800_v58 = vadd.f32 %v784_v40, %v3129_v35  ;;  %v3279_v35 = vld [vmem:[#allocation2 + $0x290] sm:$0xff]  ;;  %v3295_v40 = vld [vmem:[#allocation2 + $0x2b8] sm:$0xff] }
  0xd1   :  { %v2294_v4 = vpop.eup %2293  ;;  %v3276_v29 = vmax.f32 %v851_v46, 0.0  ;;  %v920_v45 = vmul.f32 1.442695, %v894_v9  ;;  %2299 = vpow2.f32 %v918_v23  ;;  %v922_v59 = vmul.f32 1.442695, %v895_v32 }
  0xd2   :  { %v924_v38 = vmul.f32 1.442695, %v896_v10  ;;  %v926_v47 = vmul.f32 1.442695, %v897_v12  ;;  %v813_v22 = vadd.f32 %v812_v19, %v798_v43  ;;  %v928_v53 = vmul.f32 1.442695, %v898_v27 }
  0xd3   :  { %v939_v3 = vadd.f32 1.0, %v2292_v44  ;;  %2301 = vlog2.f32 %v938_v15  ;;  %v930_v25 = vmul.f32 1.442695, %v899_v56  ;;  %v957_v2 = vmul.f32 0.6931472, %v2294_v4  ;;  %v3297_v43 = vld [vmem:[#allocation2 + $0x2c0] sm:$0xff] }
  0xd4   :  { %v2296_v30 = vpop.eup %2295  ;;  %v983_v51 = vadd.f32 %v955_v16, %v3208_v8  ;;  %v997_v60 = vadd.f32 %v996_v0, %v982_v1  ;;  %2303 = vpow2.f32 %v920_v45  ;;  %v1031_v28 = vsub.f32 0.0, %v1015_v13  ;;  %v3299_v10 = vld [vmem:[#allocation2 + $0x2c8] sm:$0xff]  ;;  %v3301_v12 = vld [vmem:[#allocation2 + $0x2d0] sm:$0xff] }
  0xd5   :  { %v2298_v46 = vpop.eup %2297  ;;  %v1032_v11 = vsub.f32 0.0, %v1016_v62  ;;  %v1033_v50 = vsub.f32 0.0, %v3279_v35  ;;  %2305 = vpow2.f32 %v922_v59  ;;  %v1034_v8 = vsub.f32 0.0, %v3281_v26 }
  0xd6   :  { %v1035_v49 = vsub.f32 0.0, %v3283_v48  ;;  %v1036_v20 = vsub.f32 0.0, %v3285_v6  ;;  %v814_v36 = vadd.f32 %v813_v22, %v799_v18  ;;  %v940_v21 = vadd.f32 1.0, %v2296_v30 }
  0xd7   :  { %2307 = vlog2.f32 %v939_v3  ;;  %v1037_v54 = vsub.f32 0.0, %v3288_v57  ;;  %v2300_v61 = vpop.eup %2299  ;;  %v959_v7 = vmul.f32 0.6931472, %v2298_v46  ;;  %v984_v55 = vadd.f32 %v957_v2, %v3210_v42  ;;  %v3316_v2 = vld [vmem:[#allocation2 + $0x2e0] sm:$0xff] }
  0xd8   :  { %v998_v5 = vadd.f32 %v997_v60, %v983_v51  ;;  %v1063_v9 = vand.u32 2147483647, %v1015_v13  ;;  %2309 = vpow2.f32 %v924_v38  ;;  %v1038_v23 = vsub.f32 0.0, %v3295_v40  ;;  %v3312_v38 = vld [vmem:[#allocation2 + $0x2d8] sm:$0xff] }
  0xd9   :  { %v2302_v32 = vpop.eup %2301  ;;  %v1039_v19 = vsub.f32 0.0, %v3297_v43  ;;  %v1064_v27 = vand.u32 2147483647, %v1016_v62  ;;  %2311 = vpow2.f32 %v926_v47  ;;  %v1040_v42 = vsub.f32 0.0, %v3299_v10 }
  0xda   :  { %v1041_v15 = vsub.f32 0.0, %v3301_v12  ;;  %v3307_v44 = vmax.f32 %v1031_v28, 0.0  ;;  %v2304_v56 = vpop.eup %2303  ;;  %v815_v16 = vadd.f32 %v814_v36, %v800_v58  ;;  %v941_v1 = vadd.f32 1.0, %v2300_v61  ;;  %v3327_v36 = vld [vmem:[#allocation2 + $0x2e8] sm:$0xff] }
  0xdb   :  { %2313 = vlog2.f32 %v940_v21  ;;  %v3309_v0 = vmax.f32 %v1032_v11, 0.0  ;;  %v2306_v4 = vpop.eup %2305  ;;  %v961_v18 = vmul.f32 0.6931472, %v2302_v32  ;;  %v985_v45 = vadd.f32 %v959_v7, %v3215_v37 }
  0xdc   :  { %v999_v59 = vadd.f32 %v998_v5, %v984_v55  ;;  %v1079_v47 = vsub.f32 0.0, %v1063_v9  ;;  %2315 = vpow2.f32 %v928_v53  ;;  %v1042_v3 = vsub.f32 0.0, %v3312_v38 }
  0xdd   :  { %v2308_v22 = vpop.eup %2307  ;;  %v1065_v13 = vand.u32 2147483647, %v3279_v35  ;;  %v1080_v30 = vsub.f32 0.0, %v1064_v27  ;;  %2317 = vpow2.f32 %v930_v25  ;;  %v942_v58 = vadd.f32 1.0, %v2304_v56 }
  0xde   :  { %v3318_v51 = vmax.f32 %v1033_v50, 0.0  ;;  %v3320_v60 = vmax.f32 %v1034_v8, 0.0  ;;  %v2310_v37 = vpop.eup %2309  ;;  %v3323_v62 = vadd.f32 %v815_v16, %v3265_v17  ;;  %v943_v46 = vadd.f32 1.0, %v2306_v4 }
  0xdf   :  { %2319 = vlog2.f32 %v941_v1  ;;  %v1043_v53 = vsub.f32 0.0, %v3316_v2  ;;  %v2312_v28 = vpop.eup %2311  ;;  %v963_v11 = vmul.f32 0.6931472, %v2308_v22  ;;  %v986_v35 = vadd.f32 %v961_v18, %v3219_v33  ;;  %v3339_v18 = vld [vmem:[#allocation2 + $0x2f0] sm:$0xff] }
  0xe0   :  { %v1000_v25 = vadd.f32 %v999_v59, %v985_v45  ;;  %v1095_v21 = vmul.f32 1.442695, %v1079_v47  ;;  %v3329_v61 = vmax.f32 %v1035_v49, 0.0  ;;  %v1066_v8 = vand.u32 2147483647, %v3281_v26 }
  0xe1   :  { %v2314_v50 = vpop.eup %2313  ;;  %v1081_v7 = vsub.f32 0.0, %v1065_v13  ;;  %v1097_v17 = vmul.f32 1.442695, %v1080_v30  ;;  %v944_v55 = vadd.f32 1.0, %v2310_v37  ;;  %2321 = vlog2.f32 %v942_v58 }
  0xe2   :  { %v1044_v5 = vsub.f32 0.0, %v3327_v36  ;;  %v3333_v9 = vmax.f32 %v1036_v20, 0.0  ;;  %v2316_v32 = vpop.eup %2315  ;;  %v945_v27 = vadd.f32 1.0, %v2312_v28  ;;  %2323 = vlog2.f32 %v943_v46 }
  0xe3   :  { %v3335_v33 = vmax.f32 %v1037_v54, 0.0  ;;  %v1067_v56 = vand.u32 2147483647, %v3283_v48  ;;  %v2318_v16 = vpop.eup %2317  ;;  %v965_v49 = vmul.f32 0.6931472, %v2314_v50  ;;  %v987_v1 = vadd.f32 %v963_v11, %v3228_v52  ;;  %v3354_v11 = vld [vmem:[#allocation2 + $0x2f8] sm:$0xff] }
  0xe4   :  { %v1001_v26 = vadd.f32 %v1000_v25, %v986_v35  ;;  %2325 = vpow2.f32 %v1095_v21  ;;  %v3341_v45 = vmax.f32 %v1038_v23, 0.0  ;;  %v1082_v20 = vsub.f32 0.0, %v1066_v8 }
  0xe5   :  { %v2320_v4 = vpop.eup %2319  ;;  %2327 = vpow2.f32 %v1097_v17  ;;  %v1099_v59 = vmul.f32 1.442695, %v1081_v7  ;;  %v946_v47 = vadd.f32 1.0, %v2316_v32  ;;  %v1045_v54 = vsub.f32 0.0, %v3339_v18 }
  0xe6   :  { %2329 = vlog2.f32 %v944_v55  ;;  %v3346_v48 = vmax.f32 %v1039_v19, 0.0  ;;  %v947_v22 = vadd.f32 1.0, %v2318_v16  ;;  %v3350_v52 = vmax.f32 %v1040_v42, 0.0 }
  0xe7   :  { %2331 = vlog2.f32 %v945_v27  ;;  %v1068_v23 = vand.u32 2147483647, %v3285_v6  ;;  %v2322_v13 = vpop.eup %2321  ;;  %v967_v30 = vmul.f32 0.6931472, %v2320_v4  ;;  %v988_v58 = vadd.f32 %v965_v49, %v3232_v41 }
  0xe8   :  { %v1002_v37 = vadd.f32 %v1001_v26, %v987_v1  ;;  %v1083_v46 = vsub.f32 0.0, %v1067_v56  ;;  %v2324_v28 = vpop.eup %2323  ;;  %v3358_v19 = vmax.f32 %v1041_v15, 0.0  ;;  %v3360_v35 = vmax.f32 %v1042_v3, 0.0 }
  0xe9   :  { %2333 = vpow2.f32 %v1099_v59  ;;  %v1101_v42 = vmul.f32 1.442695, %v1082_v20  ;;  %v1046_v6 = vsub.f32 0.0, %v3354_v11  ;;  %v3363_v21 = vmax.f32 %v1043_v53, 0.0 }
  0xea   :  { %v2326_v25 = vpop.eup %2325  ;;  %2335 = vlog2.f32 %v946_v47  ;;  %v3365_v41 = vmax.f32 %v1044_v5, 0.0  ;;  %v969_v8 = vmul.f32 0.6931472, %v2322_v13  ;;  %v3367_v7 = vmax.f32 %v1045_v54, 0.0 }
  0xeb   :  { %v2328_v50 = vpop.eup %2327  ;;  %2337 = vlog2.f32 %v947_v22  ;;  %v1069_v15 = vand.u32 2147483647, %v3288_v57  ;;  %v989_v3 = vadd.f32 %v967_v30, %v3234_v24  ;;  %v1003_v55 = vadd.f32 %v1002_v37, %v988_v58 }
  0xec   :  { %v2330_v17 = vpop.eup %2329  ;;  %v1084_v32 = vsub.f32 0.0, %v1068_v23  ;;  %v1103_v27 = vmul.f32 1.442695, %v1083_v46  ;;  %v1070_v16 = vand.u32 2147483647, %v3295_v40  ;;  %2339 = vpow2.f32 %v1101_v42 }
  0xed   :  { %v2332_v56 = vpop.eup %2331  ;;  %v1071_v53 = vand.u32 2147483647, %v3297_v43  ;;  %v1127_v5 = vadd.f32 1.0, %v2326_v25  ;;  %v3373_v49 = vmax.f32 %v1046_v6, 0.0  ;;  %v1072_v1 = vand.u32 2147483647, %v3299_v10 }
  0xee   :  { %v1073_v26 = vand.u32 2147483647, %v3301_v12  ;;  %v1128_v57 = vadd.f32 1.0, %v2328_v50  ;;  %v971_v20 = vmul.f32 0.6931472, %v2324_v28  ;;  %v990_v59 = vadd.f32 %v969_v8, %v3241_v63 }
  0xef   :  { %v2334_v4 = vpop.eup %2333  ;;  %v973_v24 = vmul.f32 0.6931472, %v2330_v17  ;;  %v1074_v47 = vand.u32 2147483647, %v3312_v38  ;;  %v1004_v40 = vadd.f32 %v1003_v55, %v989_v3  ;;  %v1085_v22 = vsub.f32 0.0, %v1069_v15 }
  0xf0   :  { %v2336_v54 = vpop.eup %2335  ;;  %2341 = vpow2.f32 %v1103_v27  ;;  %v1105_v43 = vmul.f32 1.442695, %v1084_v32  ;;  %v1075_v13 = vand.u32 2147483647, %v3316_v2  ;;  %v1076_v10 = vand.u32 2147483647, %v3327_v36 }
  0xf1   :  { %v2338_v23 = vpop.eup %2337  ;;  %v1077_v12 = vand.u32 2147483647, %v3339_v18  ;;  %2343 = vlog2.f32 %v1127_v5  ;;  %v975_v30 = vmul.f32 0.6931472, %v2332_v56  ;;  %v1078_v58 = vand.u32 2147483647, %v3354_v11 }
  0xf2   :  { %v1129_v37 = vadd.f32 1.0, %v2334_v4  ;;  %2345 = vlog2.f32 %v1128_v57  ;;  %v2340_v63 = vpop.eup %2339  ;;  %v977_v38 = vmul.f32 0.6931472, %v2336_v54  ;;  %v991_v46 = vadd.f32 %v971_v20, %v3243_v39 }
  0xf3   :  { %v992_v28 = vadd.f32 %v973_v24, %v3245_v34  ;;  %v1086_v42 = vsub.f32 0.0, %v1070_v16  ;;  %v1005_v25 = vadd.f32 %v1004_v40, %v990_v59  ;;  %v1087_v6 = vsub.f32 0.0, %v1071_v53 }
  0xf4   :  { %2347 = vpow2.f32 %v1105_v43  ;;  %v1107_v2 = vmul.f32 1.442695, %v1085_v22  ;;  %v979_v36 = vmul.f32 0.6931472, %v2338_v23  ;;  %v1088_v50 = vsub.f32 0.0, %v1072_v1 }
  0xf5   :  { %v1089_v18 = vsub.f32 0.0, %v1073_v26  ;;  %v1090_v8 = vsub.f32 0.0, %v1074_v47  ;;  %v1091_v17 = vsub.f32 0.0, %v1075_v13  ;;  %v1092_v11 = vsub.f32 0.0, %v1076_v10  ;;  %v3394_v13 = vld [vmem:[#allocation2 + $0x310] sm:$0xff] }
  0xf6   :  { %v2342_v15 = vpop.eup %2341  ;;  %v1130_v3 = vadd.f32 1.0, %v2340_v63  ;;  %2349 = vlog2.f32 %v1129_v37  ;;  %v993_v32 = vadd.f32 %v975_v30, %v3252_v14  ;;  %v3387_v39 = vadd.f32 %v977_v38, %v3254_v31  ;;  %v1210_v31 = vld [vmem:[#allocation2 + $0x300] sm:$0xff]  ;;  %v3396_v30 = vld [vmem:[#allocation2 + $0x318] sm:$0xff]  ;;  %v3400_v37 = vld [vmem:[#allocation2 + $0x328] sm:$0xff] }
  0xf7   :  { %v2344_v55 = vpop.eup %2343  ;;  %v1093_v34 = vsub.f32 0.0, %v1077_v12  ;;  %v1109_v27 = vmul.f32 1.442695, %v1086_v42  ;;  %v1006_v16 = vadd.f32 %v1005_v25, %v991_v46  ;;  %v1094_v53 = vsub.f32 0.0, %v1078_v58  ;;  %v3398_v58 = vld [vmem:[#allocation2 + $0x320] sm:$0xff] }
  0xf8   :  { %v2346_v56 = vpop.eup %2345  ;;  %2351 = vpow2.f32 %v1107_v2  ;;  %v1111_v5 = vmul.f32 1.442695, %v1087_v6  ;;  %v3390_v1 = vadd.f32 %v979_v36, %v3276_v29  ;;  %v1113_v26 = vmul.f32 1.442695, %v1088_v50  ;;  %v1211_v29 = vld [vmem:[#allocation2 + $0x308] sm:$0xff]  ;;  %v3408_v50 = vld [vmem:[#allocation2 + $0x330] sm:$0xff] }
  0xf9   :  { %v1115_v57 = vmul.f32 1.442695, %v1089_v18  ;;  %v1117_v4 = vmul.f32 1.442695, %v1090_v8  ;;  %v1119_v24 = vmul.f32 1.442695, %v1091_v17  ;;  %2353 = vlog2.f32 %v1130_v3 }
  0xfa   :  { %v2348_v20 = vpop.eup %2347  ;;  %v1121_v59 = vmul.f32 1.442695, %v1092_v11  ;;  %v1131_v14 = vadd.f32 1.0, %v2342_v15  ;;  %2355 = vpow2.f32 %v1109_v27  ;;  %v1123_v47 = vmul.f32 1.442695, %v1093_v34  ;;  %v3410_v18 = vld [vmem:[#allocation2 + $0x338] sm:$0xff] }
  0xfb   :  { %v1144_v54 = vmul.f32 0.6931472, %v2344_v55  ;;  %v1146_v40 = vmul.f32 0.6931472, %v2346_v56  ;;  %v1007_v43 = vadd.f32 %v1006_v16, %v992_v28  ;;  %2357 = vpow2.f32 %v1111_v5  ;;  %v3412_v17 = vld [vmem:[#allocation2 + $0x340] sm:$0xff]  ;;  %v3416_v27 = vld [vmem:[#allocation2 + $0x348] sm:$0xff] }
  0xfc   :  { %v2350_v22 = vpop.eup %2349  ;;  %v3392_v23 = vmul.f32 1.442695, %v1094_v53  ;;  %v1226_v10 = vsub.f32 0.0, %v1210_v31  ;;  %2359 = vpow2.f32 %v1113_v26  ;;  %v1132_v12 = vadd.f32 1.0, %v2348_v20 }
  0xfd   :  { %v1227_v63 = vsub.f32 0.0, %v1211_v29  ;;  %v1228_v38 = vsub.f32 0.0, %v3394_v13  ;;  %2361 = vlog2.f32 %v1131_v14  ;;  %v1229_v28 = vsub.f32 0.0, %v3396_v30 }
  0xfe   :  { %v2352_v46 = vpop.eup %2351  ;;  %v1230_v42 = vsub.f32 0.0, %v3398_v58  ;;  %v1231_v25 = vsub.f32 0.0, %v3400_v37  ;;  %2363 = vpow2.f32 %v1115_v57  ;;  %v1148_v6 = vmul.f32 0.6931472, %v2350_v22 }
  0xff   :  { %v1175_v2 = vadd.f32 %v1144_v54, %v3307_v44  ;;  %v1176_v36 = vadd.f32 %v1146_v40, %v3309_v0  ;;  %v2354_v8 = vpop.eup %2353  ;;  %v1008_v15 = vadd.f32 %v1007_v43, %v993_v32  ;;  %2365 = vpow2.f32 %v1117_v4  ;;  %v3425_v40 = vld [vmem:[#allocation2 + $0x350] sm:$0xff] }
 0x100   :  { %v1232_v11 = vsub.f32 0.0, %v3408_v50  ;;  %v1233_v3 = vsub.f32 0.0, %v3410_v18  ;;  %v2356_v55 = vpop.eup %2355  ;;  %v1133_v34 = vadd.f32 1.0, %v2352_v46  ;;  %2367 = vlog2.f32 %v1132_v12 }
 0x101   :  { %v1234_v44 = vsub.f32 0.0, %v3412_v17  ;;  %v1258_v0 = vand.u32 2147483647, %v1210_v31  ;;  %v2358_v56 = vpop.eup %2357  ;;  %2369 = vpow2.f32 %v1119_v24  ;;  %v1235_v16 = vsub.f32 0.0, %v3416_v27 }
 0x102   :  { %v3420_v32 = vmax.f32 %v1226_v10, 0.0  ;;  %v1259_v53 = vand.u32 2147483647, %v1211_v29  ;;  %v2360_v5 = vpop.eup %2359  ;;  %v1150_v26 = vmul.f32 0.6931472, %v2354_v8  ;;  %v1177_v57 = vadd.f32 %v1148_v6, %v3318_v51 }
 0x103   :  { %v1191_v4 = vadd.f32 %v1176_v36, %v1175_v2  ;;  %v1260_v20 = vand.u32 2147483647, %v3394_v13  ;;  %v2362_v14 = vpop.eup %2361  ;;  %v1009_v54 = vadd.f32 %v1008_v15, %v3387_v39  ;;  %2371 = vpow2.f32 %v1121_v59 }
 0x104   :  { %v3427_v31 = vmax.f32 %v1227_v63, 0.0  ;;  %v1261_v24 = vand.u32 2147483647, %v3396_v30  ;;  %v2364_v22 = vpop.eup %2363  ;;  %v1134_v43 = vadd.f32 1.0, %v2356_v55  ;;  %2373 = vlog2.f32 %v1133_v34 }
 0x105   :  { %v1236_v29 = vsub.f32 0.0, %v3425_v40  ;;  %v1274_v10 = vsub.f32 0.0, %v1258_v0  ;;  %v2366_v51 = vpop.eup %2365  ;;  %2375 = vpow2.f32 %v1123_v47  ;;  %v1135_v12 = vadd.f32 1.0, %v2358_v56 }
 0x106   :  { %v1262_v13 = vand.u32 2147483647, %v3398_v58  ;;  %v1275_v46 = vsub.f32 0.0, %v1259_v53  ;;  %v2368_v39 = vpop.eup %2367  ;;  %v1152_v59 = vmul.f32 0.6931472, %v2362_v14  ;;  %v1178_v6 = vadd.f32 %v1150_v26, %v3320_v60  ;;  %v3456_v58 = vld [vmem:[#allocation2 + $0x360] sm:$0xff] }
 0x107   :  { %v1192_v63 = vadd.f32 %v1191_v4, %v1177_v57  ;;  %v1276_v2 = vsub.f32 0.0, %v1260_v20  ;;  %v2370_v36 = vpop.eup %2369  ;;  %2377 = vpow2.f32 %v3392_v23  ;;  %v1136_v30 = vadd.f32 1.0, %v2360_v5 }
 0x108   :  { %v3434_v8 = vmax.f32 %v1228_v38, 0.0  ;;  %v1277_v15 = vsub.f32 0.0, %v1261_v24  ;;  %v3437_v55 = vadd.f32 %v1009_v54, %v3390_v1  ;;  %2379 = vlog2.f32 %v1134_v43  ;;  %v3443_v38 = vld [vmem:[#allocation2 + $0x358] sm:$0xff] }
 0x109   :  { %v3439_v47 = vmax.f32 %v1229_v28, 0.0  ;;  %v1290_v34 = vmul.f32 1.442695, %v1274_v10  ;;  %v2372_v0 = vpop.eup %2371  ;;  %v1154_v56 = vmul.f32 0.6931472, %v2368_v39  ;;  %2381 = vlog2.f32 %v1135_v12 }
 0x10a   :  { %v1263_v60 = vand.u32 2147483647, %v3400_v37  ;;  %v1292_v53 = vmul.f32 1.442695, %v1275_v46  ;;  %v2374_v26 = vpop.eup %2373  ;;  %v1179_v23 = vadd.f32 %v1152_v59, %v3329_v61  ;;  %v1193_v5 = vadd.f32 %v1192_v63, %v1178_v6 }
 0x10b   :  { %v1278_v57 = vsub.f32 0.0, %v1262_v13  ;;  %v1294_v4 = vmul.f32 1.442695, %v1276_v2  ;;  %v2376_v1 = vpop.eup %2375  ;;  %2383 = vlog2.f32 %v1136_v30  ;;  %v1237_v28 = vsub.f32 0.0, %v3443_v38 }
 0x10c   :  { %v3448_v20 = vmax.f32 %v1230_v42, 0.0  ;;  %v1296_v14 = vmul.f32 1.442695, %v1277_v15  ;;  %v1137_v54 = vadd.f32 1.0, %v2364_v22  ;;  %v3452_v24 = vmax.f32 %v1231_v25, 0.0 }
 0x10d   :  { %v1264_v61 = vand.u32 2147483647, %v3408_v50  ;;  %2385 = vpow2.f32 %v1290_v34  ;;  %v2378_v43 = vpop.eup %2377  ;;  %v1138_v10 = vadd.f32 1.0, %v2366_v51  ;;  %v1156_v12 = vmul.f32 0.6931472, %v2374_v26 }
 0x10e   :  { %v1180_v13 = vadd.f32 %v1154_v56, %v3333_v9  ;;  %2387 = vpow2.f32 %v1292_v53  ;;  %v2380_v46 = vpop.eup %2379  ;;  %v1194_v39 = vadd.f32 %v1193_v5, %v1179_v23  ;;  %v1279_v42 = vsub.f32 0.0, %v1263_v60 }
 0x10f   :  { %2389 = vpow2.f32 %v1294_v4  ;;  %v1298_v22 = vmul.f32 1.442695, %v1278_v57  ;;  %v2382_v59 = vpop.eup %2381  ;;  %v1139_v37 = vadd.f32 1.0, %v2370_v36  ;;  %v1238_v25 = vsub.f32 0.0, %v3456_v58 }
 0x110   :  { %v3461_v6 = vmax.f32 %v1232_v11, 0.0  ;;  %2391 = vpow2.f32 %v1296_v14  ;;  %v1140_v51 = vadd.f32 1.0, %v2372_v0  ;;  %v3465_v9 = vmax.f32 %v1233_v3, 0.0  ;;  %v3469_v11 = vld [vmem:[#allocation2 + $0x368] sm:$0xff] }
 0x111   :  { %2393 = vlog2.f32 %v1137_v54  ;;  %v1280_v63 = vsub.f32 0.0, %v1264_v61  ;;  %v2384_v2 = vpop.eup %2383  ;;  %v1141_v30 = vadd.f32 1.0, %v2376_v1  ;;  %v1158_v15 = vmul.f32 0.6931472, %v2380_v46 }
 0x112   :  { %2395 = vlog2.f32 %v1138_v10  ;;  %v1265_v36 = vand.u32 2147483647, %v3410_v18  ;;  %v1181_v56 = vadd.f32 %v1156_v12, %v3335_v33  ;;  %v1195_v50 = vadd.f32 %v1194_v39, %v1180_v13  ;;  %v3482_v12 = vld [vmem:[#allocation2 + $0x370] sm:$0xff] }
 0x113   :  { %v2386_v34 = vpop.eup %2385  ;;  %2397 = vpow2.f32 %v1298_v22  ;;  %v1300_v0 = vmul.f32 1.442695, %v1279_v42  ;;  %v1142_v53 = vadd.f32 1.0, %v2378_v43  ;;  %v1239_v3 = vsub.f32 0.0, %v3469_v11 }
 0x114   :  { %v2388_v60 = vpop.eup %2387  ;;  %2399 = vlog2.f32 %v1139_v37  ;;  %v3474_v26 = vmax.f32 %v1234_v44, 0.0  ;;  %v3478_v18 = vmax.f32 %v1235_v16, 0.0  ;;  %v1266_v33 = vand.u32 2147483647, %v3412_v17  ;;  %v3484_v16 = vld [vmem:[#allocation2 + $0x378] sm:$0xff] }
 0x115   :  { %v2390_v23 = vpop.eup %2389  ;;  %2401 = vlog2.f32 %v1140_v51  ;;  %v1302_v5 = vmul.f32 1.442695, %v1280_v63  ;;  %v1160_v4 = vmul.f32 0.6931472, %v2382_v59  ;;  %v1281_v1 = vsub.f32 0.0, %v1265_v36 }
 0x116   :  { %v2392_v57 = vpop.eup %2391  ;;  %2403 = vlog2.f32 %v1141_v30  ;;  %v1322_v14 = vadd.f32 1.0, %v2386_v34  ;;  %v1182_v61 = vadd.f32 %v1158_v15, %v3341_v45  ;;  %v1196_v43 = vadd.f32 %v1195_v50, %v1181_v56 }
 0x117   :  { %v2394_v54 = vpop.eup %2393  ;;  %2405 = vpow2.f32 %v1300_v0  ;;  %v1323_v44 = vadd.f32 1.0, %v2388_v60  ;;  %v3488_v17 = vmax.f32 %v1236_v29, 0.0  ;;  %v3490_v13 = vmax.f32 %v1237_v28, 0.0 }
 0x118   :  { %v2396_v10 = vpop.eup %2395  ;;  %2407 = vlog2.f32 %v1142_v53  ;;  %v1324_v46 = vadd.f32 1.0, %v2390_v23  ;;  %v1240_v42 = vsub.f32 0.0, %v3482_v12  ;;  %v1241_v45 = vsub.f32 0.0, %v3484_v16 }
 0x119   :  { %v2398_v39 = vpop.eup %2397  ;;  %2409 = vpow2.f32 %v1302_v5  ;;  %v1325_v22 = vadd.f32 1.0, %v2392_v57  ;;  %v1267_v37 = vand.u32 2147483647, %v3416_v27  ;;  %v1282_v51 = vsub.f32 0.0, %v1266_v33 }
 0x11a   :  { %v2400_v59 = vpop.eup %2399  ;;  %v1304_v63 = vmul.f32 1.442695, %v1281_v1  ;;  %2411 = vlog2.f32 %v1322_v14  ;;  %v1162_v15 = vmul.f32 0.6931472, %v2384_v2  ;;  %v1183_v29 = vadd.f32 %v1160_v4, %v3346_v48 }
 0x11b   :  { %v2402_v30 = vpop.eup %2401  ;;  %v1197_v28 = vadd.f32 %v1196_v43, %v1182_v61  ;;  %2413 = vlog2.f32 %v1323_v44  ;;  %v3496_v34 = vmax.f32 %v1238_v25, 0.0  ;;  %v3498_v56 = vmax.f32 %v1239_v3, 0.0 }
 0x11c   :  { %v2404_v36 = vpop.eup %2403  ;;  %v1326_v50 = vadd.f32 1.0, %v2398_v39  ;;  %2415 = vlog2.f32 %v1324_v46  ;;  %v3500_v60 = vmax.f32 %v1240_v42, 0.0  ;;  %v3502_v27 = vmax.f32 %v1241_v45, 0.0 }
 0x11d   :  { %v2406_v0 = vpop.eup %2405  ;;  %v1268_v53 = vand.u32 2147483647, %v3425_v40  ;;  %2417 = vlog2.f32 %v1325_v22  ;;  %v1269_v48 = vand.u32 2147483647, %v3443_v38  ;;  %v1283_v23 = vsub.f32 0.0, %v1267_v37 }
 0x11e   :  { %v2408_v2 = vpop.eup %2407  ;;  %2419 = vpow2.f32 %v1304_v63  ;;  %v1306_v33 = vmul.f32 1.442695, %v1282_v51  ;;  %v1164_v5 = vmul.f32 0.6931472, %v2394_v54  ;;  %v1184_v3 = vadd.f32 %v1162_v15, %v3350_v52 }
 0x11f   :  { %v2410_v25 = vpop.eup %2409  ;;  %v1198_v57 = vadd.f32 %v1197_v28, %v1183_v29  ;;  %v1270_v4 = vand.u32 2147483647, %v3456_v58  ;;  %v1271_v14 = vand.u32 2147483647, %v3469_v11  ;;  %v1272_v61 = vand.u32 2147483647, %v3482_v12 }
 0x120   :  { %v2412_v1 = vpop.eup %2411  ;;  %v1327_v40 = vadd.f32 1.0, %v2406_v0  ;;  %2421 = vlog2.f32 %v1326_v50  ;;  %v3512_v38 = vadd.f32 %v3437_v55, %v3323_v62  ;;  %v1166_v44 = vmul.f32 0.6931472, %v2396_v10 }
 0x121   :  { %v2414_v43 = vpop.eup %2413  ;;  %v1273_v54 = vand.u32 2147483647, %v3484_v16  ;;  %v1339_v46 = vmul.f32 0.6931472, %v2412_v1  ;;  %v1284_v39 = vsub.f32 0.0, %v1268_v53  ;;  %2423 = vpow2.f32 %v1306_v33 }
 0x122   :  { %v2416_v52 = vpop.eup %2415  ;;  %v1308_v58 = vmul.f32 1.442695, %v1283_v23  ;;  %v1341_v42 = vmul.f32 0.6931472, %v2414_v43  ;;  %v1185_v11 = vadd.f32 %v1164_v5, %v3358_v19  ;;  %v1199_v12 = vadd.f32 %v1198_v57, %v1184_v3 }
 0x123   :  { %v2418_v45 = vpop.eup %2417  ;;  %v1343_v22 = vmul.f32 0.6931472, %v2416_v52  ;;  %v1370_v37 = vadd.f32 %v1339_v46, %v3420_v32  ;;  %v1168_v63 = vmul.f32 0.6931472, %v2400_v59  ;;  %v1328_v62 = vadd.f32 1.0, %v2410_v25 }
 0x124   :  { %v2420_v51 = vpop.eup %2419  ;;  %2425 = vlog2.f32 %v1327_v40  ;;  %v1371_v55 = vadd.f32 %v1341_v42, %v3427_v31  ;;  %v1170_v10 = vmul.f32 0.6931472, %v2402_v30  ;;  %v1186_v16 = vadd.f32 %v1166_v44, %v3360_v35 }
 0x125   :  { %v1345_v15 = vmul.f32 0.6931472, %v2418_v45  ;;  %v1372_v29 = vadd.f32 %v1343_v22, %v3434_v8  ;;  %v1285_v50 = vsub.f32 0.0, %v1269_v48  ;;  %2427 = vpow2.f32 %v1308_v58  ;;  %v1408_v22 = vld [vmem:[#allocation2 + $0x398] sm:$0xff] }
 0x126   :  { %v2422_v28 = vpop.eup %2421  ;;  %v1310_v19 = vmul.f32 1.442695, %v1284_v39  ;;  %v1386_v0 = vadd.f32 %v1371_v55, %v1370_v37  ;;  %v1172_v53 = vmul.f32 0.6931472, %v2404_v36  ;;  %v1174_v23 = vmul.f32 0.6931472, %v2408_v2 }
 0x127   :  { %v1200_v32 = vadd.f32 %v1199_v12, %v1185_v11  ;;  %v1329_v33 = vadd.f32 1.0, %v2420_v51  ;;  %v2424_v59 = vpop.eup %2423  ;;  %v1286_v25 = vsub.f32 0.0, %v1270_v4  ;;  %v1287_v5 = vsub.f32 0.0, %v1271_v14  ;;  %v3523_v2 = vld [vmem:[#allocation2 + $0x380] sm:$0xff]  ;;  %v3534_v39 = vld [vmem:[#allocation2 + $0x390] sm:$0xff] }
 0x128   :  { %v1288_v3 = vsub.f32 0.0, %v1272_v61  ;;  %2429 = vlog2.f32 %v1328_v62  ;;  %v1187_v31 = vadd.f32 %v1168_v63, %v3363_v21  ;;  %v1347_v35 = vmul.f32 0.6931472, %v2422_v28  ;;  %v3528_v61 = vld [vmem:[#allocation2 + $0x388] sm:$0xff] }
 0x129   :  { %v1373_v30 = vadd.f32 %v1345_v15, %v3439_v47  ;;  %v1387_v8 = vadd.f32 %v1386_v0, %v1372_v29  ;;  %v1188_v48 = vadd.f32 %v1170_v10, %v3365_v41  ;;  %v1289_v1 = vsub.f32 0.0, %v1273_v54  ;;  %v3543_v29 = vld [vmem:[#allocation2 + $0x3a0] sm:$0xff]  ;;  %v3545_v28 = vld [vmem:[#allocation2 + $0x3a8] sm:$0xff] }
 0x12a   :  { %v2426_v57 = vpop.eup %2425  ;;  %2431 = vpow2.f32 %v1310_v19  ;;  %v1312_v36 = vmul.f32 1.442695, %v1285_v50  ;;  %v3526_v40 = vadd.f32 %v1172_v53, %v3367_v7  ;;  %v1201_v4 = vadd.f32 %v1200_v32, %v1186_v16  ;;  %v3547_v19 = vld [vmem:[#allocation2 + $0x3b0] sm:$0xff] }
 0x12b   :  { %v1330_v14 = vadd.f32 1.0, %v2424_v59  ;;  %2433 = vlog2.f32 %v1329_v33  ;;  %v2428_v21 = vpop.eup %2427  ;;  %v3531_v47 = vadd.f32 %v1174_v23, %v3373_v49  ;;  %v1314_v43 = vmul.f32 1.442695, %v1286_v25  ;;  %v3551_v59 = vld [vmem:[#allocation2 + $0x3b8] sm:$0xff] }
 0x12c   :  { %v1316_v44 = vmul.f32 1.442695, %v1287_v5  ;;  %v1318_v41 = vmul.f32 1.442695, %v1288_v3  ;;  %v1349_v54 = vmul.f32 0.6931472, %v2426_v57  ;;  %v1374_v46 = vadd.f32 %v1347_v35, %v3448_v20 }
 0x12d   :  { %v1388_v52 = vadd.f32 %v1387_v8, %v1373_v30  ;;  %v1453_v7 = vand.u32 2147483647, %v3523_v2  ;;  %2435 = vpow2.f32 %v1312_v36  ;;  %v1320_v42 = vmul.f32 1.442695, %v1289_v1  ;;  %v3556_v57 = vld [vmem:[#allocation2 + $0x3c0] sm:$0xff]  ;;  %v3558_v1 = vld [vmem:[#allocation2 + $0x3c8] sm:$0xff] }
 0x12e   :  { %v2430_v58 = vpop.eup %2429  ;;  %v1421_v45 = vsub.f32 0.0, %v3523_v2  ;;  %v1454_v11 = vand.u32 2147483647, %v3528_v61  ;;  %v1202_v49 = vadd.f32 %v1201_v4, %v1187_v31  ;;  %v1331_v12 = vadd.f32 1.0, %v2428_v21 }
 0x12f   :  { %2437 = vlog2.f32 %v1330_v14  ;;  %v1422_v37 = vsub.f32 0.0, %v3528_v61  ;;  %v1423_v20 = vsub.f32 0.0, %v3534_v39  ;;  %v1424_v63 = vsub.f32 0.0, %v1408_v22 }
 0x130   :  { %v2432_v51 = vpop.eup %2431  ;;  %2439 = vpow2.f32 %v1314_v43  ;;  %v1455_v62 = vand.u32 2147483647, %v3534_v39  ;;  %v1351_v10 = vmul.f32 0.6931472, %v2430_v58  ;;  %v1375_v16 = vadd.f32 %v1349_v54, %v3452_v24  ;;  %v3569_v58 = vld [vmem:[#allocation2 + $0x3d0] sm:$0xff] }
 0x131   :  { %v2434_v55 = vpop.eup %2433  ;;  %v1389_v15 = vadd.f32 %v1388_v52, %v1374_v46  ;;  %v1469_v50 = vsub.f32 0.0, %v1453_v7  ;;  %2441 = vpow2.f32 %v1316_v44  ;;  %v1425_v0 = vsub.f32 0.0, %v3543_v29 }
 0x132   :  { %v1426_v53 = vsub.f32 0.0, %v3545_v28  ;;  %v1470_v23 = vsub.f32 0.0, %v1454_v11  ;;  %v1203_v32 = vadd.f32 %v1202_v49, %v1188_v48  ;;  %v1332_v33 = vadd.f32 1.0, %v2432_v51  ;;  %v3571_v49 = vld [vmem:[#allocation2 + $0x3d8] sm:$0xff] }
 0x133   :  { %2443 = vlog2.f32 %v1331_v12  ;;  %v1427_v24 = vsub.f32 0.0, %v3547_v19  ;;  %v2436_v25 = vpop.eup %2435  ;;  %v1353_v5 = vmul.f32 0.6931472, %v2434_v55  ;;  %v1428_v3 = vsub.f32 0.0, %v3551_v59 }
 0x134   :  { %2445 = vpow2.f32 %v1318_v41  ;;  %v1456_v31 = vand.u32 2147483647, %v1408_v22  ;;  %v1376_v30 = vadd.f32 %v1351_v10, %v3461_v6  ;;  %v1390_v8 = vadd.f32 %v1389_v15, %v1375_v16 }
 0x135   :  { %v2438_v35 = vpop.eup %2437  ;;  %v1471_v48 = vsub.f32 0.0, %v1455_v62  ;;  %v1485_v36 = vmul.f32 1.442695, %v1469_v50  ;;  %2447 = vpow2.f32 %v1320_v42  ;;  %v1429_v4 = vsub.f32 0.0, %v3556_v57 }
 0x136   :  { %v2440_v2 = vpop.eup %2439  ;;  %v1430_v14 = vsub.f32 0.0, %v3558_v1  ;;  %v1487_v61 = vmul.f32 1.442695, %v1470_v23  ;;  %v1204_v21 = vadd.f32 %v1203_v32, %v3526_v40  ;;  %v1333_v43 = vadd.f32 1.0, %v2436_v25  ;;  %v3588_v32 = vld [vmem:[#allocation2 + $0x3e8] sm:$0xff] }
 0x137   :  { %2449 = vlog2.f32 %v1332_v33  ;;  %v3563_v44 = vmax.f32 %v1421_v45, 0.0  ;;  %v2442_v6 = vpop.eup %2441  ;;  %v1355_v41 = vmul.f32 0.6931472, %v2438_v35  ;;  %v1377_v54 = vadd.f32 %v1353_v5, %v3465_v9 }
 0x138   :  { %v3566_v46 = vmax.f32 %v1422_v37, 0.0  ;;  %v1457_v52 = vand.u32 2147483647, %v3543_v29  ;;  %v1391_v7 = vadd.f32 %v1390_v8, %v1376_v30  ;;  %v1472_v42 = vsub.f32 0.0, %v1456_v31 }
 0x139   :  { %v2444_v39 = vpop.eup %2443  ;;  %2451 = vpow2.f32 %v1485_v36  ;;  %v1489_v11 = vmul.f32 1.442695, %v1471_v48  ;;  %v1431_v45 = vsub.f32 0.0, %v3569_v58  ;;  %v3574_v12 = vmax.f32 %v1423_v20, 0.0 }
 0x13a   :  { %v2446_v40 = vpop.eup %2445  ;;  %v3576_v22 = vmax.f32 %v1424_v63, 0.0  ;;  %2453 = vpow2.f32 %v1487_v61  ;;  %v3579_v9 = vadd.f32 %v1204_v21, %v3531_v47  ;;  %v1334_v37 = vadd.f32 1.0, %v2440_v2  ;;  %v3586_v63 = vld [vmem:[#allocation2 + $0x3e0] sm:$0xff]  ;;  %v3600_v21 = vld [vmem:[#allocation2 + $0x3f0] sm:$0xff] }
 0x13b   :  { %2455 = vlog2.f32 %v1333_v43  ;;  %v1432_v51 = vsub.f32 0.0, %v3571_v49  ;;  %v2448_v62 = vpop.eup %2447  ;;  %v1357_v55 = vmul.f32 0.6931472, %v2444_v39  ;;  %v1378_v10 = vadd.f32 %v1355_v41, %v3474_v26  ;;  %v3602_v43 = vld [vmem:[#allocation2 + $0x3f8] sm:$0xff] }
 0x13c   :  { %v3583_v16 = vmax.f32 %v1425_v0, 0.0  ;;  %v1458_v15 = vand.u32 2147483647, %v3545_v28  ;;  %v1392_v29 = vadd.f32 %v1391_v7, %v1377_v54  ;;  %v1473_v50 = vsub.f32 0.0, %v1457_v52 }
 0x13d   :  { %v2450_v20 = vpop.eup %2449  ;;  %2457 = vpow2.f32 %v1489_v11  ;;  %v1491_v47 = vmul.f32 1.442695, %v1472_v42  ;;  %v1335_v23 = vadd.f32 1.0, %v2442_v6  ;;  %v1433_v33 = vsub.f32 0.0, %v3586_v63 }
 0x13e   :  { %v3591_v25 = vmax.f32 %v1426_v53, 0.0  ;;  %v3593_v5 = vmax.f32 %v1427_v24, 0.0  ;;  %v1336_v0 = vadd.f32 1.0, %v2446_v40  ;;  %2459 = vlog2.f32 %v1334_v37 }
 0x13f   :  { %v2452_v26 = vpop.eup %2451  ;;  %v1434_v28 = vsub.f32 0.0, %v3588_v32  ;;  %v3596_v31 = vmax.f32 %v1428_v3, 0.0  ;;  %v1337_v30 = vadd.f32 1.0, %v2448_v62  ;;  %v1359_v8 = vmul.f32 0.6931472, %v2450_v20 }
 0x140   :  { %v2454_v35 = vpop.eup %2453  ;;  %v1379_v48 = vadd.f32 %v1357_v55, %v3478_v18  ;;  %v1459_v36 = vand.u32 2147483647, %v3547_v19  ;;  %v1393_v61 = vadd.f32 %v1392_v29, %v1378_v10  ;;  %v1474_v53 = vsub.f32 0.0, %v1458_v15 }
 0x141   :  { %v2456_v2 = vpop.eup %2455  ;;  %2461 = vpow2.f32 %v1491_v47  ;;  %v1493_v24 = vmul.f32 1.442695, %v1473_v50  ;;  %v3604_v6 = vmax.f32 %v1429_v4, 0.0  ;;  %v3606_v3 = vmax.f32 %v1430_v14, 0.0 }
 0x142   :  { %2463 = vlog2.f32 %v1335_v23  ;;  %v1517_v41 = vadd.f32 1.0, %v2452_v26  ;;  %v1435_v18 = vsub.f32 0.0, %v3600_v21  ;;  %v1436_v19 = vsub.f32 0.0, %v3602_v43 }
 0x143   :  { %v2458_v54 = vpop.eup %2457  ;;  %2465 = vlog2.f32 %v1336_v0  ;;  %v1518_v52 = vadd.f32 1.0, %v2454_v35  ;;  %v1361_v39 = vmul.f32 0.6931472, %v2456_v2  ;;  %v1380_v7 = vadd.f32 %v1359_v8, %v3488_v17 }
 0x144   :  { %2467 = vlog2.f32 %v1337_v30  ;;  %v1460_v42 = vand.u32 2147483647, %v3551_v59  ;;  %v2460_v11 = vpop.eup %2459  ;;  %v1394_v40 = vadd.f32 %v1393_v61, %v1379_v48  ;;  %v1475_v4 = vsub.f32 0.0, %v1459_v36 }
 0x145   :  { %2469 = vpow2.f32 %v1493_v24  ;;  %v1495_v14 = vmul.f32 1.442695, %v1474_v53  ;;  %v3612_v37 = vmax.f32 %v1431_v45, 0.0  ;;  %v3614_v62 = vmax.f32 %v1432_v51, 0.0 }
 0x146   :  { %v1519_v55 = vadd.f32 1.0, %v2458_v54  ;;  %2471 = vlog2.f32 %v1517_v41  ;;  %v3616_v15 = vmax.f32 %v1433_v33, 0.0  ;;  %v3618_v20 = vmax.f32 %v1434_v28, 0.0 }
 0x147   :  { %v2462_v10 = vpop.eup %2461  ;;  %v3620_v29 = vmax.f32 %v1435_v18, 0.0  ;;  %2473 = vlog2.f32 %v1518_v52  ;;  %v1363_v59 = vmul.f32 0.6931472, %v2460_v11  ;;  %v1381_v50 = vadd.f32 %v1361_v39, %v3490_v13 }
 0x148   :  { %v2464_v17 = vpop.eup %2463  ;;  %v3623_v47 = vmax.f32 %v1436_v19, 0.0  ;;  %v1461_v45 = vand.u32 2147483647, %v3556_v57  ;;  %v1395_v23 = vadd.f32 %v1394_v40, %v1380_v7  ;;  %v1476_v26 = vsub.f32 0.0, %v1460_v42 }
 0x149   :  { %v2466_v51 = vpop.eup %2465  ;;  %2475 = vpow2.f32 %v1495_v14  ;;  %v1497_v0 = vmul.f32 1.442695, %v1475_v4  ;;  %v1462_v28 = vand.u32 2147483647, %v3558_v1  ;;  %v1463_v35 = vand.u32 2147483647, %v3569_v58 }
 0x14a   :  { %v2468_v33 = vpop.eup %2467  ;;  %v1520_v30 = vadd.f32 1.0, %v2462_v10  ;;  %2477 = vlog2.f32 %v1519_v55  ;;  %v3630_v13 = vadd.f32 %v3579_v9, %v3512_v38  ;;  %v1365_v48 = vmul.f32 0.6931472, %v2464_v17 }
 0x14b   :  { %v2470_v8 = vpop.eup %2469  ;;  %v1464_v57 = vand.u32 2147483647, %v3571_v49  ;;  %v1465_v36 = vand.u32 2147483647, %v3586_v63  ;;  %v1382_v61 = vadd.f32 %v1363_v59, %v3496_v34  ;;  %v1466_v53 = vand.u32 2147483647, %v3588_v32 }
 0x14c   :  { %3910 = vst [vmem:[#allocation8_spill] sm:$0xff] %v3630_v13  ;;  %v2472_v2 = vpop.eup %2471  ;;  %v1467_v1 = vand.u32 2147483647, %v3600_v21  ;;  %v1468_v58 = vand.u32 2147483647, %v3602_v43  ;;  %v1396_v41 = vadd.f32 %v1395_v23, %v1381_v50  ;;  %v1477_v54 = vsub.f32 0.0, %v1461_v45 }
 0x14d   :  { %v2474_v24 = vpop.eup %2473  ;;  %2479 = vpow2.f32 %v1497_v0  ;;  %v1499_v38 = vmul.f32 1.442695, %v1476_v26  ;;  %v1367_v9 = vmul.f32 0.6931472, %v2466_v51  ;;  %v1369_v18 = vmul.f32 0.6931472, %v2468_v33 }
 0x14e   :  { %v1521_v19 = vadd.f32 1.0, %v2470_v8  ;;  %2481 = vlog2.f32 %v1520_v30  ;;  %v1383_v63 = vadd.f32 %v1365_v48, %v3498_v56  ;;  %v1478_v52 = vsub.f32 0.0, %v1462_v28  ;;  %v3643_v30 = vld [vmem:[#allocation2 + $0x400] sm:$0xff] }
 0x14f   :  { %v2476_v49 = vpop.eup %2475  ;;  %v1534_v34 = vmul.f32 0.6931472, %v2472_v2  ;;  %v1536_v39 = vmul.f32 0.6931472, %v2474_v24  ;;  %v1479_v7 = vsub.f32 0.0, %v1463_v35  ;;  %v1480_v21 = vsub.f32 0.0, %v1464_v57 }
 0x150   :  { %v2478_v32 = vpop.eup %2477  ;;  %v1481_v42 = vsub.f32 0.0, %v1465_v36  ;;  %v1482_v43 = vsub.f32 0.0, %v1466_v53  ;;  %v1397_v11 = vadd.f32 %v1396_v41, %v1382_v61  ;;  %v1483_v40 = vsub.f32 0.0, %v1467_v1  ;;  %v3647_v57 = vld [vmem:[#allocation2 + $0x408] sm:$0xff]  ;;  %v3651_v61 = vld [vmem:[#allocation2 + $0x410] sm:$0xff]  ;;  %v3653_v53 = vld [vmem:[#allocation2 + $0x418] sm:$0xff] }
 0x151   :  { %2483 = vpow2.f32 %v1499_v38  ;;  %v1501_v4 = vmul.f32 1.442695, %v1477_v54  ;;  %v1384_v14 = vadd.f32 %v1367_v9, %v3500_v60  ;;  %v1484_v55 = vsub.f32 0.0, %v1468_v58  ;;  %v3655_v1 = vld [vmem:[#allocation2 + $0x420] sm:$0xff]  ;;  %v3658_v41 = vld [vmem:[#allocation2 + $0x428] sm:$0xff]  ;;  %v3660_v54 = vld [vmem:[#allocation2 + $0x430] sm:$0xff] }
 0x152   :  { %v1522_v10 = vadd.f32 1.0, %v2476_v49  ;;  %2485 = vlog2.f32 %v1521_v19  ;;  %v1503_v59 = vmul.f32 1.442695, %v1478_v52  ;;  %v1538_v56 = vmul.f32 0.6931472, %v2478_v32  ;;  %v3665_v19 = vld [vmem:[#allocation2 + $0x438] sm:$0xff] }
 0x153   :  { %v2480_v17 = vpop.eup %2479  ;;  %v1565_v50 = vadd.f32 %v1534_v34, %v3563_v44  ;;  %v1566_v45 = vadd.f32 %v1536_v39, %v3566_v46  ;;  %v1385_v23 = vadd.f32 %v1369_v18, %v3502_v27  ;;  %v1505_v26 = vmul.f32 1.442695, %v1479_v7  ;;  %v3667_v49 = vld [vmem:[#allocation2 + $0x440] sm:$0xff] }
 0x154   :  { %v2482_v51 = vpop.eup %2481  ;;  %v1507_v0 = vmul.f32 1.442695, %v1480_v21  ;;  %v1509_v33 = vmul.f32 1.442695, %v1481_v42  ;;  %v1398_v28 = vadd.f32 %v1397_v11, %v1383_v63  ;;  %2487 = vpow2.f32 %v1501_v4  ;;  %v3674_v11 = vld [vmem:[#allocation2 + $0x448] sm:$0xff] }
 0x155   :  { %v1511_v35 = vmul.f32 1.442695, %v1482_v43  ;;  %v1513_v60 = vmul.f32 1.442695, %v1483_v40  ;;  %v3645_v8 = vmul.f32 1.442695, %v1484_v55  ;;  %2489 = vlog2.f32 %v1522_v10 }
 0x156   :  { %v1523_v48 = vadd.f32 1.0, %v2480_v17  ;;  %v1616_v44 = vsub.f32 0.0, %v3643_v30  ;;  %v1540_v36 = vmul.f32 0.6931472, %v2482_v51  ;;  %v1567_v27 = vadd.f32 %v1538_v56, %v3574_v12  ;;  %v3676_v40 = vld [vmem:[#allocation2 + $0x450] sm:$0xff]  ;;  %v3686_v56 = vld [vmem:[#allocation2 + $0x458] sm:$0xff] }
 0x157   :  { %v2484_v46 = vpop.eup %2483  ;;  %v1581_v2 = vadd.f32 %v1566_v45, %v1565_v50  ;;  %v1617_v58 = vsub.f32 0.0, %v3647_v57  ;;  %2491 = vpow2.f32 %v1503_v59  ;;  %v1618_v38 = vsub.f32 0.0, %v3651_v61 }
 0x158   :  { %v2486_v24 = vpop.eup %2485  ;;  %v1619_v9 = vsub.f32 0.0, %v3653_v53  ;;  %v1620_v12 = vsub.f32 0.0, %v3655_v1  ;;  %v1399_v18 = vadd.f32 %v1398_v28, %v1384_v14  ;;  %2493 = vpow2.f32 %v1505_v26 }
 0x159   :  { %v1621_v63 = vsub.f32 0.0, %v3658_v41  ;;  %v1622_v52 = vsub.f32 0.0, %v3660_v54  ;;  %v1524_v34 = vadd.f32 1.0, %v2484_v46  ;;  %2495 = vlog2.f32 %v1523_v48 }
 0x15a   :  { %v1623_v39 = vsub.f32 0.0, %v3665_v19  ;;  %v1624_v32 = vsub.f32 0.0, %v3667_v49  ;;  %v2488_v7 = vpop.eup %2487  ;;  %2497 = vpow2.f32 %v1507_v0  ;;  %v1542_v21 = vmul.f32 0.6931472, %v2486_v24 }
 0x15b   :  { %v1568_v42 = vadd.f32 %v1540_v36, %v3576_v22  ;;  %v1582_v43 = vadd.f32 %v1581_v2, %v1567_v27  ;;  %v2490_v4 = vpop.eup %2489  ;;  %v1625_v14 = vsub.f32 0.0, %v3674_v11  ;;  %v1626_v55 = vsub.f32 0.0, %v3676_v40 }
 0x15c   :  { %v3680_v10 = vmax.f32 %v1616_v44, 0.0  ;;  %v3682_v17 = vmax.f32 %v1617_v58, 0.0  ;;  %v3684_v59 = vadd.f32 %v1399_v18, %v1385_v23  ;;  %2499 = vpow2.f32 %v1509_v33  ;;  %v3694_v33 = vld [vmem:[#allocation2 + $0x460] sm:$0xff] }
 0x15d   :  { %v3688_v22 = vmax.f32 %v1618_v38, 0.0  ;;  %v1648_v50 = vand.u32 2147483647, %v3643_v30  ;;  %v2492_v45 = vpop.eup %2491  ;;  %v1525_v51 = vadd.f32 1.0, %v2488_v7  ;;  %2501 = vlog2.f32 %v1524_v34  ;;  %v3708_v7 = vld [vmem:[#allocation2 + $0x468] sm:$0xff] }
 0x15e   :  { %3911 = vst [vmem:[#allocation9_spill] sm:$0xff] %v3684_v59  ;;  %v1627_v26 = vsub.f32 0.0, %v3686_v56  ;;  %v1649_v0 = vand.u32 2147483647, %v3647_v57  ;;  %v2494_v28 = vpop.eup %2493  ;;  %2503 = vpow2.f32 %v1511_v35  ;;  %v1544_v48 = vmul.f32 0.6931472, %v2490_v4 }
 0x15f   :  { %v1569_v23 = vadd.f32 %v1542_v21, %v3583_v16  ;;  %v1583_v44 = vadd.f32 %v1582_v43, %v1568_v42  ;;  %v2496_v46 = vpop.eup %2495  ;;  %2505 = vpow2.f32 %v1513_v60  ;;  %v1628_v36 = vsub.f32 0.0, %v3694_v33 }
 0x160   :  { %v3697_v30 = vmax.f32 %v1619_v9, 0.0  ;;  %v3699_v27 = vmax.f32 %v1620_v12, 0.0  ;;  %v2498_v2 = vpop.eup %2497  ;;  %2507 = vpow2.f32 %v3645_v8  ;;  %v3702_v57 = vmax.f32 %v1621_v63, 0.0  ;;  %v3710_v63 = vld [vmem:[#allocation2 + $0x470] sm:$0xff] }
 0x161   :  { %v3704_v35 = vmax.f32 %v1622_v52, 0.0  ;;  %v1664_v58 = vsub.f32 0.0, %v1648_v50  ;;  %v1526_v16 = vadd.f32 1.0, %v2492_v45  ;;  %2509 = vlog2.f32 %v1525_v51 }
 0x162   :  { %v1650_v24 = vand.u32 2147483647, %v3651_v61  ;;  %v1665_v38 = vsub.f32 0.0, %v1649_v0  ;;  %v2500_v60 = vpop.eup %2499  ;;  %v1527_v18 = vadd.f32 1.0, %v2494_v28  ;;  %v1546_v34 = vmul.f32 0.6931472, %v2496_v46 }
 0x163   :  { %v1570_v9 = vadd.f32 %v1544_v48, %v3591_v25  ;;  %v1584_v12 = vadd.f32 %v1583_v44, %v1569_v23  ;;  %v2502_v21 = vpop.eup %2501  ;;  %v1528_v8 = vadd.f32 1.0, %v2498_v2  ;;  %v1629_v52 = vsub.f32 0.0, %v3708_v7 }
 0x164   :  { %v3713_v42 = vmax.f32 %v1623_v39, 0.0  ;;  %v3715_v43 = vmax.f32 %v1624_v32, 0.0  ;;  %v2504_v61 = vpop.eup %2503  ;;  %v3718_v50 = vmax.f32 %v1625_v14, 0.0  ;;  %v1651_v25 = vand.u32 2147483647, %v3653_v53 }
 0x165   :  { %v1680_v45 = vmul.f32 1.442695, %v1664_v58  ;;  %v2506_v51 = vpop.eup %2505  ;;  %2511 = vlog2.f32 %v1526_v16  ;;  %v1652_v0 = vand.u32 2147483647, %v3655_v1  ;;  %v1666_v28 = vsub.f32 0.0, %v1650_v24 }
 0x166   :  { %v1682_v48 = vmul.f32 1.442695, %v1665_v38  ;;  %v2508_v23 = vpop.eup %2507  ;;  %v1548_v44 = vmul.f32 0.6931472, %v2502_v21  ;;  %2513 = vlog2.f32 %v1527_v18  ;;  %v1571_v39 = vadd.f32 %v1546_v34, %v3593_v5 }
 0x167   :  { %v1585_v32 = vadd.f32 %v1584_v12, %v1570_v9  ;;  %v2510_v46 = vpop.eup %2509  ;;  %v1529_v2 = vadd.f32 1.0, %v2500_v60  ;;  %2515 = vlog2.f32 %v1528_v8  ;;  %v3723_v14 = vmax.f32 %v1626_v55, 0.0 }
 0x168   :  { %v1653_v53 = vand.u32 2147483647, %v3658_v41  ;;  %v1530_v58 = vadd.f32 1.0, %v2504_v61  ;;  %v3726_v4 = vmax.f32 %v1627_v26, 0.0  ;;  %v1654_v1 = vand.u32 2147483647, %v3660_v54 }
 0x169   :  { %2517 = vpow2.f32 %v1680_v45  ;;  %v3729_v16 = vmax.f32 %v1628_v36, 0.0  ;;  %v1667_v24 = vsub.f32 0.0, %v1651_v25  ;;  %v1684_v38 = vmul.f32 1.442695, %v1666_v28 }
 0x16a   :  { %2519 = vpow2.f32 %v1682_v48  ;;  %v1550_v5 = vmul.f32 0.6931472, %v2510_v46  ;;  %v1572_v18 = vadd.f32 %v1548_v44, %v3596_v31  ;;  %v1586_v60 = vadd.f32 %v1585_v32, %v1571_v39 }
 0x16b   :  { %v1668_v34 = vsub.f32 0.0, %v1652_v0  ;;  %v2512_v55 = vpop.eup %2511  ;;  %v1531_v9 = vadd.f32 1.0, %v2506_v51  ;;  %2521 = vlog2.f32 %v1529_v2  ;;  %v1655_v41 = vand.u32 2147483647, %v3665_v19 }
 0x16c   :  { %v1669_v26 = vsub.f32 0.0, %v1653_v53  ;;  %v2514_v12 = vpop.eup %2513  ;;  %v1532_v21 = vadd.f32 1.0, %v2508_v23  ;;  %2523 = vlog2.f32 %v1530_v58  ;;  %v1656_v54 = vand.u32 2147483647, %v3667_v49 }
 0x16d   :  { %v1670_v36 = vsub.f32 0.0, %v1654_v1  ;;  %v2516_v8 = vpop.eup %2515  ;;  %v1657_v61 = vand.u32 2147483647, %v3674_v11  ;;  %v1658_v25 = vand.u32 2147483647, %v3676_v40  ;;  %2525 = vpow2.f32 %v1684_v38 }
 0x16e   :  { %v1686_v31 = vmul.f32 1.442695, %v1667_v24  ;;  %v1552_v0 = vmul.f32 0.6931472, %v2512_v55  ;;  %v1573_v51 = vadd.f32 %v1550_v5, %v3604_v6  ;;  %v1587_v28 = vadd.f32 %v1586_v60, %v1572_v18  ;;  %v1615_v60 = vld [vmem:[#allocation2 + $0x478] sm:$0xff] }
 0x16f   :  { %v2518_v45 = vpop.eup %2517  ;;  %v1688_v19 = vmul.f32 1.442695, %v1668_v34  ;;  %2527 = vlog2.f32 %v1531_v9  ;;  %v1659_v23 = vand.u32 2147483647, %v3686_v56  ;;  %v1671_v44 = vsub.f32 0.0, %v1655_v41 }
 0x170   :  { %v2520_v48 = vpop.eup %2519  ;;  %v1690_v49 = vmul.f32 1.442695, %v1669_v26  ;;  %v1554_v39 = vmul.f32 0.6931472, %v2514_v12  ;;  %2529 = vlog2.f32 %v1532_v21  ;;  %v1672_v32 = vsub.f32 0.0, %v1656_v54 }
 0x171   :  { %v1692_v11 = vmul.f32 1.442695, %v1670_v36  ;;  %v2522_v46 = vpop.eup %2521  ;;  %v1660_v40 = vand.u32 2147483647, %v3694_v33  ;;  %v1673_v2 = vsub.f32 0.0, %v1657_v61  ;;  %2531 = vpow2.f32 %v1686_v31 }
 0x172   :  { %v1712_v53 = vadd.f32 1.0, %v2518_v45  ;;  %v2524_v58 = vpop.eup %2523  ;;  %v1574_v6 = vadd.f32 %v1552_v0, %v3606_v3  ;;  %v1588_v1 = vadd.f32 %v1587_v28, %v1573_v51  ;;  %2533 = vpow2.f32 %v1688_v19 }
 0x173   :  { %v1713_v24 = vadd.f32 1.0, %v2520_v48  ;;  %v2526_v38 = vpop.eup %2525  ;;  %v1661_v56 = vand.u32 2147483647, %v3708_v7  ;;  %v1674_v5 = vsub.f32 0.0, %v1658_v25  ;;  %2535 = vpow2.f32 %v1690_v49 }
 0x174   :  { %v1694_v18 = vmul.f32 1.442695, %v1671_v44  ;;  %v1662_v34 = vand.u32 2147483647, %v3710_v63  ;;  %v1675_v55 = vsub.f32 0.0, %v1659_v23  ;;  %2537 = vpow2.f32 %v1692_v11 }
 0x175   :  { %v1696_v33 = vmul.f32 1.442695, %v1672_v32  ;;  %v2528_v9 = vpop.eup %2527  ;;  %v1556_v41 = vmul.f32 0.6931472, %v2516_v8  ;;  %v1676_v26 = vsub.f32 0.0, %v1660_v40  ;;  %2539 = vlog2.f32 %v1712_v53 }
 0x176   :  { %v1698_v12 = vmul.f32 1.442695, %v1673_v2  ;;  %v2530_v3 = vpop.eup %2529  ;;  %v1575_v21 = vadd.f32 %v1554_v39, %v3612_v37  ;;  %v1589_v54 = vadd.f32 %v1588_v1, %v1574_v6  ;;  %v1714_v36 = vadd.f32 1.0, %v2526_v38 }
 0x177   :  { %2541 = vlog2.f32 %v1713_v24  ;;  %v2532_v61 = vpop.eup %2531  ;;  %v1663_v25 = vand.u32 2147483647, %v1615_v60  ;;  %v1677_v31 = vsub.f32 0.0, %v1661_v56  ;;  %v1700_v45 = vmul.f32 1.442695, %v1674_v5 }
 0x178   :  { %2543 = vpow2.f32 %v1694_v18  ;;  %v2534_v0 = vpop.eup %2533  ;;  %v1631_v51 = vsub.f32 0.0, %v1615_v60  ;;  %v1678_v28 = vsub.f32 0.0, %v1662_v34  ;;  %v1702_v19 = vmul.f32 1.442695, %v1675_v55 }
 0x179   :  { %2545 = vpow2.f32 %v1696_v33  ;;  %v2536_v8 = vpop.eup %2535  ;;  %v1558_v48 = vmul.f32 0.6931472, %v2522_v46  ;;  %v3745_v23 = vmax.f32 %v1629_v52, 0.0  ;;  %v1704_v37 = vmul.f32 1.442695, %v1676_v26 }
 0x17a   :  { %2547 = vpow2.f32 %v1698_v12  ;;  %v2538_v44 = vpop.eup %2537  ;;  %v1576_v49 = vadd.f32 %v1556_v41, %v3614_v62  ;;  %v1590_v39 = vadd.f32 %v1589_v54, %v1575_v21  ;;  %v1715_v32 = vadd.f32 1.0, %v2532_v61  ;;  %v3763_v12 = vld [vmem:[#allocation2 + $0x480] sm:$0xff] }
 0x17b   :  { %2549 = vlog2.f32 %v1714_v36  ;;  %v2540_v11 = vpop.eup %2539  ;;  %v3912_v40 = vsub.f32 0.0, %v3710_v63  ;;  %v1679_v53 = vsub.f32 0.0, %v1663_v25  ;;  %v1706_v46 = vmul.f32 1.442695, %v1677_v31  ;;  %v3767_v36 = vld [vmem:[#allocation2 + $0x490] sm:$0xff] }
 0x17c   :  { %2551 = vpow2.f32 %v1700_v45  ;;  %v1560_v7 = vmul.f32 0.6931472, %v2524_v58  ;;  %v1562_v52 = vmul.f32 0.6931472, %v2528_v9  ;;  %v1708_v1 = vmul.f32 1.442695, %v1678_v28 }
 0x17d   :  { %v3750_v2 = vmax.f32 %v3912_v40, 0.0  ;;  %v2542_v6 = vpop.eup %2541  ;;  %2553 = vpow2.f32 %v1702_v19  ;;  %v1577_v38 = vadd.f32 %v1558_v48, %v3616_v15  ;;  %v3753_v62 = vmax.f32 %v1631_v51, 0.0 }
 0x17e   :  { %v2544_v24 = vpop.eup %2543  ;;  %2555 = vpow2.f32 %v1704_v37  ;;  %v1716_v56 = vadd.f32 1.0, %v2534_v0  ;;  %v3755_v18 = vmul.f32 0.6931472, %v2530_v3  ;;  %v1591_v63 = vadd.f32 %v1590_v39, %v1576_v49  ;;  %v3765_v3 = vld [vmem:[#allocation2 + $0x488] sm:$0xff]  ;;  %v3813_v49 = vld [vmem:[#allocation2 + $0x4e0] sm:$0xff] }
 0x17f   :  { %3913 = vst [vmem:[#allocation10_spill] sm:$0xff] %v3750_v2  ;;  %v2546_v5 = vpop.eup %2545  ;;  %v1717_v60 = vadd.f32 1.0, %v2536_v8  ;;  %2557 = vlog2.f32 %v1715_v32  ;;  %v1710_v55 = vmul.f32 1.442695, %v1679_v53  ;;  %v1729_v58 = vmul.f32 0.6931472, %v2540_v11 }
 0x180   :  { %3914 = vst [vmem:[#allocation11_spill] sm:$0xff] %v3753_v62  ;;  %v2548_v34 = vpop.eup %2547  ;;  %2559 = vpow2.f32 %v1706_v46  ;;  %v1731_v33 = vmul.f32 0.6931472, %v2542_v6  ;;  %v3758_v41 = vadd.f32 %v1560_v7, %v3618_v20  ;;  %v3761_v15 = vadd.f32 %v1562_v52, %v3620_v29  ;;  %v3776_v8 = vld [vmem:[#allocation2 + $0x498] sm:$0xff]  ;;  %v3786_v6 = vld [vmem:[#allocation2 + $0x4a8] sm:$0xff]  ;;  %v3788_v7 = vld [vmem:[#allocation2 + $0x4b0] sm:$0xff] }
 0x181   :  { %v2550_v9 = vpop.eup %2549  ;;  %2561 = vpow2.f32 %v1708_v1  ;;  %v1718_v26 = vadd.f32 1.0, %v2538_v44  ;;  %v1719_v54 = vadd.f32 1.0, %v2544_v24  ;;  %v3771_v31 = vadd.f32 %v1591_v63, %v1577_v38  ;;  %v3778_v44 = vld [vmem:[#allocation2 + $0x4a0] sm:$0xff] }
 0x182   :  { %v2552_v21 = vpop.eup %2551  ;;  %2563 = vlog2.f32 %v1716_v56  ;;  %v1720_v29 = vadd.f32 1.0, %v2546_v5  ;;  %v1733_v51 = vmul.f32 0.6931472, %v2550_v9  ;;  %v1760_v28 = vadd.f32 %v1729_v58, %v3680_v10  ;;  %v3792_v5 = vld [vmem:[#allocation2 + $0x4b8] sm:$0xff]  ;;  %v3798_v9 = vld [vmem:[#allocation2 + $0x4c0] sm:$0xff] }
 0x183   :  { %v2554_v20 = vpop.eup %2553  ;;  %2565 = vlog2.f32 %v1717_v60  ;;  %v1761_v19 = vadd.f32 %v1731_v33, %v3682_v17  ;;  %v1721_v37 = vadd.f32 1.0, %v2548_v34  ;;  %v1843_v39 = vand.u32 2147483647, %v3763_v12 }
 0x184   :  { %v2556_v0 = vpop.eup %2555  ;;  %2567 = vpow2.f32 %v1710_v55  ;;  %v1722_v11 = vadd.f32 1.0, %v2552_v21  ;;  %v1844_v10 = vand.u32 2147483647, %v3765_v3  ;;  %v1723_v17 = vadd.f32 1.0, %v2554_v20 }
 0x185   :  { %v2558_v48 = vpop.eup %2557  ;;  %2569 = vlog2.f32 %v1718_v26  ;;  %v1724_v46 = vadd.f32 1.0, %v2556_v0  ;;  %v1845_v52 = vand.u32 2147483647, %v3767_v36  ;;  %v1762_v38 = vadd.f32 %v1733_v51, %v3688_v22 }
 0x186   :  { %v2560_v32 = vpop.eup %2559  ;;  %2571 = vlog2.f32 %v1719_v54  ;;  %v1735_v24 = vmul.f32 0.6931472, %v2558_v48  ;;  %v1776_v56 = vadd.f32 %v1761_v19, %v1760_v28  ;;  %v1846_v63 = vand.u32 2147483647, %v3776_v8 }
 0x187   :  { %v3784_v53 = vpop.eup %2561  ;;  %2573 = vlog2.f32 %v1720_v29  ;;  %v1725_v34 = vadd.f32 1.0, %v2560_v32  ;;  %v1847_v55 = vand.u32 2147483647, %v3778_v44  ;;  %v1859_v58 = vsub.f32 0.0, %v1843_v39  ;;  %v3802_v29 = vld [vmem:[#allocation2 + $0x4c8] sm:$0xff]  ;;  %v3806_v39 = vld [vmem:[#allocation2 + $0x4d0] sm:$0xff] }
 0x188   :  { %v2564_v1 = vpop.eup %2563  ;;  %2575 = vlog2.f32 %v1721_v37  ;;  %v1848_v26 = vand.u32 2147483647, %v3786_v6  ;;  %v1849_v22 = vand.u32 2147483647, %v3788_v7  ;;  %v1860_v21 = vsub.f32 0.0, %v1844_v10  ;;  %v3810_v10 = vld [vmem:[#allocation2 + $0x4d8] sm:$0xff] }
 0x189   :  { %v2566_v60 = vpop.eup %2565  ;;  %2577 = vlog2.f32 %v1722_v11  ;;  %v1737_v20 = vmul.f32 0.6931472, %v2564_v1  ;;  %v1850_v0 = vand.u32 2147483647, %v3792_v5  ;;  %v1861_v51 = vsub.f32 0.0, %v1845_v52 }
 0x18a   :  { %v3796_v33 = vpop.eup %2567  ;;  %2579 = vlog2.f32 %v1723_v17  ;;  %v1739_v19 = vmul.f32 0.6931472, %v2566_v60  ;;  %v1763_v48 = vadd.f32 %v1735_v24, %v3697_v30  ;;  %v1777_v37 = vadd.f32 %v1776_v56, %v1762_v38  ;;  %v3819_v56 = vld [vmem:[#allocation2 + $0x4e8] sm:$0xff] }
 0x18b   :  { %v2570_v54 = vpop.eup %2569  ;;  %v1862_v32 = vsub.f32 0.0, %v1846_v63  ;;  %2581 = vlog2.f32 %v1724_v46  ;;  %v1851_v17 = vand.u32 2147483647, %v3798_v9  ;;  %v1863_v1 = vsub.f32 0.0, %v1847_v55  ;;  %3915 = vst [vmem:[#allocation12_spill] sm:$0xff] %v3819_v56 }
 0x18c   :  { %v2572_v28 = vpop.eup %2571  ;;  %v1875_v40 = vmul.f32 1.442695, %v1859_v58  ;;  %2583 = vlog2.f32 %v1725_v34  ;;  %v1852_v52 = vand.u32 2147483647, %v3802_v29  ;;  %v1864_v60 = vsub.f32 0.0, %v1848_v26 }
 0x18d   :  { %v3808_v11 = vpop.eup %2573  ;;  %v1877_v30 = vmul.f32 1.442695, %v1860_v21  ;;  %v1764_v38 = vadd.f32 %v1737_v20, %v3699_v27  ;;  %v1853_v46 = vand.u32 2147483647, %v3806_v39  ;;  %v1865_v63 = vsub.f32 0.0, %v1849_v22 }
 0x18e   :  { %v3816_v24 = vpop.eup %2575  ;;  %v1879_v45 = vmul.f32 1.442695, %v1861_v51  ;;  %v1778_v55 = vadd.f32 %v1777_v37, %v1763_v48  ;;  %v1854_v34 = vand.u32 2147483647, %v3810_v10  ;;  %v1866_v58 = vsub.f32 0.0, %v1850_v0 }
 0x18f   :  { %v3822_v25 = vpop.eup %2577  ;;  %v1881_v61 = vmul.f32 1.442695, %v1862_v32  ;;  %v1855_v26 = vand.u32 2147483647, %v3813_v49  ;;  %v1867_v21 = vsub.f32 0.0, %v1851_v17  ;;  %2585 = vpow2.f32 %v1875_v40 }
 0x190   :  { %v3825_v62 = vpop.eup %2579  ;;  %v1883_v27 = vmul.f32 1.442695, %v1863_v1  ;;  %v1856_v20 = vand.u32 2147483647, %v3819_v56  ;;  %v1868_v59 = vsub.f32 0.0, %v1852_v52  ;;  %2587 = vpow2.f32 %v1877_v30 }
 0x191   :  { %v1885_v22 = vmul.f32 1.442695, %v1864_v60  ;;  %v3829_v51 = vpop.eup %2581  ;;  %v1741_v13 = vmul.f32 0.6931472, %v2570_v54  ;;  %v1869_v48 = vsub.f32 0.0, %v1853_v46  ;;  %2589 = vpow2.f32 %v1879_v45 }
 0x192   :  { %v1887_v37 = vmul.f32 1.442695, %v1865_v63  ;;  %v3831_v0 = vpop.eup %2583  ;;  %v1765_v32 = vadd.f32 %v1739_v19, %v3702_v57  ;;  %v1870_v2 = vsub.f32 0.0, %v1854_v34  ;;  %2591 = vpow2.f32 %v1881_v61 }
 0x193   :  { %v1889_v17 = vmul.f32 1.442695, %v1866_v58  ;;  %v1779_v40 = vadd.f32 %v1778_v55, %v1764_v38  ;;  %v1871_v1 = vsub.f32 0.0, %v1855_v26  ;;  %2593 = vpow2.f32 %v1883_v27  ;;  %v3840_v38 = vld [vmem:[#allocation2 + $0x4f0] sm:$0xff] }
 0x194   :  { %v1891_v56 = vmul.f32 1.442695, %v1867_v21  ;;  %v1816_v52 = vsub.f32 0.0, %v3786_v6  ;;  %v1872_v60 = vsub.f32 0.0, %v1856_v20  ;;  %2595 = vpow2.f32 %v1885_v22 }
 0x195   :  { %v1893_v30 = vmul.f32 1.442695, %v1868_v59  ;;  %v2586_v54 = vpop.eup %2585  ;;  %v3837_v45 = vadd.f32 %v3771_v31, %v3758_v41  ;;  %v1817_v46 = vsub.f32 0.0, %v3788_v7  ;;  %2597 = vpow2.f32 %v1887_v37  ;;  %v3844_v31 = vld [vmem:[#allocation2 + $0x4f8] sm:$0xff] }
 0x196   :  { %v1895_v57 = vmul.f32 1.442695, %v1869_v48  ;;  %v2588_v61 = vpop.eup %2587  ;;  %v1743_v19 = vmul.f32 0.6931472, %v2572_v28  ;;  %v1818_v63 = vsub.f32 0.0, %v3792_v5  ;;  %2599 = vpow2.f32 %v1889_v17 }
 0x197   :  { %v1897_v55 = vmul.f32 1.442695, %v1870_v2  ;;  %v2590_v34 = vpop.eup %2589  ;;  %v1766_v59 = vadd.f32 %v1741_v13, %v3704_v35  ;;  %v1780_v58 = vadd.f32 %v1779_v40, %v1765_v32  ;;  %2601 = vpow2.f32 %v1891_v56 }
 0x198   :  { %v1899_v26 = vmul.f32 1.442695, %v1871_v1  ;;  %v2592_v41 = vpop.eup %2591  ;;  %v1819_v21 = vsub.f32 0.0, %v3798_v9  ;;  %2603 = vpow2.f32 %v1893_v30  ;;  %v1901_v28 = vmul.f32 1.442695, %v1872_v60 }
 0x199   :  { %v2594_v20 = vpop.eup %2593  ;;  %v1857_v2 = vand.u32 2147483647, %v3840_v38  ;;  %2605 = vpow2.f32 %v1895_v57  ;;  %v1907_v48 = vadd.f32 1.0, %v2586_v54  ;;  %v1745_v35 = vmul.f32 0.6931472, %v3808_v11 }
 0x19a   :  { %v2596_v13 = vpop.eup %2595  ;;  %v1767_v56 = vadd.f32 %v1743_v19, %v3713_v42  ;;  %2607 = vpow2.f32 %v1897_v55  ;;  %v1908_v37 = vadd.f32 1.0, %v2588_v61  ;;  %v1781_v17 = vadd.f32 %v1780_v58, %v1766_v59 }
 0x19b   :  { %v2598_v32 = vpop.eup %2597  ;;  %v1858_v40 = vand.u32 2147483647, %v3844_v31  ;;  %2609 = vpow2.f32 %v1899_v26  ;;  %v1909_v1 = vadd.f32 1.0, %v2590_v34  ;;  %v3916_v30 = vsub.f32 0.0, %v3763_v12 }
 0x19c   :  { %v2600_v60 = vpop.eup %2599  ;;  %v3917_v57 = vsub.f32 0.0, %v3765_v3  ;;  %2611 = vpow2.f32 %v1901_v28  ;;  %v1910_v27 = vadd.f32 1.0, %v2592_v41  ;;  %v3918_v42 = vsub.f32 0.0, %v3767_v36 }
 0x19d   :  { %v1827_v22 = vmax.f32 %v3916_v30, 0.0  ;;  %v2602_v11 = vpop.eup %2601  ;;  %v1873_v61 = vsub.f32 0.0, %v1857_v2  ;;  %v1911_v55 = vadd.f32 1.0, %v2594_v20  ;;  %2613 = vlog2.f32 %v1907_v48 }
 0x19e   :  { %v1828_v54 = vmax.f32 %v3917_v57, 0.0  ;;  %v1829_v19 = vmax.f32 %v3918_v42, 0.0  ;;  %v2604_v59 = vpop.eup %2603  ;;  %v1747_v58 = vmul.f32 0.6931472, %v3816_v24  ;;  %v1768_v34 = vadd.f32 %v1745_v35, %v3715_v43 }
 0x19f   :  { %v1912_v26 = vadd.f32 1.0, %v2596_v13  ;;  %2615 = vlog2.f32 %v1908_v37  ;;  %v2606_v12 = vpop.eup %2605  ;;  %v1782_v30 = vadd.f32 %v1781_v17, %v1767_v56  ;;  %v1874_v3 = vsub.f32 0.0, %v1858_v40 }
 0x1a0   :  { %v1913_v57 = vadd.f32 1.0, %v2598_v32  ;;  %2617 = vlog2.f32 %v1909_v1  ;;  %v2608_v41 = vpop.eup %2607  ;;  %v3919_v28 = vsub.f32 0.0, %v3776_v8  ;;  %v3920_v2 = vsub.f32 0.0, %v3778_v44 }
 0x1a1   :  { %v1914_v48 = vadd.f32 1.0, %v2600_v60  ;;  %2619 = vlog2.f32 %v1910_v27  ;;  %v2610_v42 = vpop.eup %2609  ;;  %v1749_v24 = vmul.f32 0.6931472, %v3822_v25  ;;  %v1832_v43 = vmax.f32 %v1816_v52, 0.0 }
 0x1a2   :  { %v1830_v36 = vmax.f32 %v3919_v28, 0.0  ;;  %v1831_v20 = vmax.f32 %v3920_v2, 0.0  ;;  %v1903_v13 = vmul.f32 1.442695, %v1873_v61  ;;  %2621 = vlog2.f32 %v1911_v55  ;;  %v2612_v35 = vpop.eup %2611 }
 0x1a3   :  { %v1726_v56 = vadd.f32 1.0, %v3784_v53  ;;  %v3871_v8 = vmax.f32 %v1817_v46, 0.0  ;;  %v1915_v37 = vadd.f32 1.0, %v2602_v11  ;;  %2623 = vlog2.f32 %v1912_v26  ;;  %v2614_v44 = vpop.eup %2613 }
 0x1a4   :  { %v1769_v27 = vadd.f32 %v1747_v58, %v3718_v50  ;;  %v1783_v32 = vadd.f32 %v1782_v30, %v1768_v34  ;;  %v1905_v17 = vmul.f32 1.442695, %v1874_v3  ;;  %2625 = vlog2.f32 %v1913_v57 }
 0x1a5   :  { %v2616_v25 = vpop.eup %2615  ;;  %v1727_v6 = vadd.f32 1.0, %v3796_v33  ;;  %v1916_v52 = vadd.f32 1.0, %v2604_v59  ;;  %v1924_v40 = vmul.f32 0.6931472, %v2614_v44  ;;  %2627 = vlog2.f32 %v1914_v48 }
 0x1a6   :  { %v2618_v1 = vpop.eup %2617  ;;  %v1751_v53 = vmul.f32 0.6931472, %v3825_v62  ;;  %v1770_v7 = vadd.f32 %v1749_v24, %v3723_v14  ;;  %2629 = vpow2.f32 %v1903_v13  ;;  %v1926_v46 = vmul.f32 0.6931472, %v2616_v25 }
 0x1a7   :  { %v2620_v60 = vpop.eup %2619  ;;  %v1917_v11 = vadd.f32 1.0, %v2606_v12  ;;  %v1928_v61 = vmul.f32 0.6931472, %v2618_v1  ;;  %2631 = vlog2.f32 %v1915_v37  ;;  %v1955_v50 = vadd.f32 %v1924_v40, %v1827_v22 }
 0x1a8   :  { %v2622_v55 = vpop.eup %2621  ;;  %v1784_v58 = vadd.f32 %v1783_v32, %v1769_v27  ;;  %2633 = vpow2.f32 %v1905_v17  ;;  %v1930_v34 = vmul.f32 0.6931472, %v2620_v60  ;;  %v1956_v33 = vadd.f32 %v1926_v46, %v1828_v54 }
 0x1a9   :  { %v2624_v59 = vpop.eup %2623  ;;  %v1918_v26 = vadd.f32 1.0, %v2608_v41  ;;  %v1932_v30 = vmul.f32 0.6931472, %v2622_v55  ;;  %2635 = vlog2.f32 %v1916_v52  ;;  %v1957_v3 = vadd.f32 %v1928_v61, %v1829_v19 }
 0x1aa   :  { %v2626_v62 = vpop.eup %2625  ;;  %2637 = vlog2.f32 %v1726_v56  ;;  %v1934_v14 = vmul.f32 0.6931472, %v2624_v59  ;;  %v1958_v57 = vadd.f32 %v1930_v34, %v1830_v36  ;;  %v1971_v28 = vadd.f32 %v1956_v33, %v1955_v50  ;;  %v3923_v59 = vld [vmem:[#allocation12_spill] sm:$0xff] }
 0x1ab   :  { %v2628_v2 = vpop.eup %2627  ;;  %v1753_v12 = vmul.f32 0.6931472, %v3829_v51  ;;  %v1771_v22 = vadd.f32 %v1751_v53, %v3726_v4  ;;  %v1919_v48 = vadd.f32 1.0, %v2610_v42  ;;  %2639 = vlog2.f32 %v1917_v11 }
 0x1ac   :  { %v2630_v24 = vpop.eup %2629  ;;  %v1785_v13 = vadd.f32 %v1784_v58, %v1770_v7  ;;  %v1936_v54 = vmul.f32 0.6931472, %v2626_v62  ;;  %v1959_v37 = vadd.f32 %v1932_v30, %v1831_v20  ;;  %v1972_v41 = vadd.f32 %v1971_v28, %v1957_v3 }
 0x1ad   :  { %v2632_v44 = vpop.eup %2631  ;;  %v1834_v19 = vmax.f32 %v1818_v63, 0.0  ;;  %v1835_v36 = vmax.f32 %v1819_v21, 0.0  ;;  %v1920_v56 = vadd.f32 1.0, %v2612_v35  ;;  %2641 = vlog2.f32 %v1918_v26 }
 0x1ae   :  { %v2634_v27 = vpop.eup %2633  ;;  %2643 = vlog2.f32 %v1727_v6  ;;  %v1938_v51 = vmul.f32 0.6931472, %v2628_v2  ;;  %v1960_v4 = vadd.f32 %v1934_v14, %v1832_v43  ;;  %v1973_v42 = vadd.f32 %v1972_v41, %v1958_v57  ;;  %v3924_v57 = vld [vmem:[#allocation10_spill] sm:$0xff] }
 0x1af   :  { %v2636_v32 = vpop.eup %2635  ;;  %v1755_v17 = vmul.f32 0.6931472, %v3831_v0  ;;  %v1772_v20 = vadd.f32 %v1753_v12, %v3729_v16  ;;  %v1921_v25 = vadd.f32 1.0, %v2630_v24  ;;  %2645 = vlog2.f32 %v1919_v48 }
 0x1b0   :  { %v2638_v52 = vpop.eup %2637  ;;  %v1786_v5 = vadd.f32 %v1785_v13, %v1771_v22  ;;  %v1940_v63 = vmul.f32 0.6931472, %v2632_v44  ;;  %v1961_v9 = vadd.f32 %v1936_v54, %v3871_v8  ;;  %v1974_v21 = vadd.f32 %v1973_v42, %v1959_v37  ;;  %v3925_v44 = vld [vmem:[#allocation8_spill] sm:$0xff] }
 0x1b1   :  { %v2640_v35 = vpop.eup %2639  ;;  %v1822_v40 = vsub.f32 0.0, %v3810_v10  ;;  %v1823_v6 = vsub.f32 0.0, %v3813_v49  ;;  %v1922_v43 = vadd.f32 1.0, %v2634_v27  ;;  %2647 = vlog2.f32 %v1920_v56  ;;  %v3927_v27 = vld [vmem:[#allocation11_spill] sm:$0xff] }
 0x1b2   :  { %v3921_v1 = vsub.f32 0.0, %v3802_v29  ;;  %v1942_v53 = vmul.f32 0.6931472, %v2636_v32  ;;  %v1962_v16 = vadd.f32 %v1938_v51, %v1834_v19  ;;  %v1975_v7 = vadd.f32 %v1974_v21, %v1960_v4  ;;  %v3926_v19 = vld [vmem:[#allocation9_spill] sm:$0xff] }
 0x1b3   :  { %v2642_v46 = vpop.eup %2641  ;;  %v1757_v60 = vmul.f32 0.6931472, %v2638_v52  ;;  %v1773_v11 = vadd.f32 %v1755_v17, %v3745_v23  ;;  %v3922_v8 = vsub.f32 0.0, %v3806_v39  ;;  %2649 = vlog2.f32 %v1921_v25 }
 0x1b4   :  { %v1836_v0 = vmax.f32 %v3921_v1, 0.0  ;;  %v2644_v50 = vpop.eup %2643  ;;  %v1787_v10 = vadd.f32 %v1786_v5, %v1772_v20  ;;  %v1944_v55 = vmul.f32 0.6931472, %v2640_v35  ;;  %v1963_v49 = vadd.f32 %v1940_v63, %v1835_v36 }
 0x1b5   :  { %v1837_v61 = vmax.f32 %v3922_v8, 0.0  ;;  %v1976_v58 = vadd.f32 %v1975_v7, %v1961_v9  ;;  %v2646_v34 = vpop.eup %2645  ;;  %v1580_v29 = vadd.f32 %v3755_v18, %v3623_v47  ;;  %v1594_v33 = vadd.f32 %v3837_v45, %v3761_v15 }
 0x1b6   :  { %v1824_v26 = vsub.f32 0.0, %v3923_v59  ;;  %2651 = vlog2.f32 %v1922_v43  ;;  %v1838_v23 = vmax.f32 %v1822_v40, 0.0  ;;  %v1946_v30 = vmul.f32 0.6931472, %v2642_v46 }
 0x1b7   :  { %v1964_v39 = vadd.f32 %v1942_v53, %v1836_v0  ;;  %v1977_v3 = vadd.f32 %v1976_v58, %v1962_v16  ;;  %v2648_v62 = vpop.eup %2647  ;;  %v1759_v14 = vmul.f32 0.6931472, %v2644_v50  ;;  %v1774_v28 = vadd.f32 %v1757_v60, %v3924_v57 }
 0x1b8   :  { %v1825_v2 = vsub.f32 0.0, %v3840_v38  ;;  %v1839_v12 = vmax.f32 %v1823_v6, 0.0  ;;  %v1788_v22 = vadd.f32 %v1787_v10, %v1773_v11  ;;  %v1948_v48 = vmul.f32 0.6931472, %v2646_v34 }
 0x1b9   :  { %v1965_v47 = vadd.f32 %v1944_v55, %v1837_v61  ;;  %v1978_v18 = vadd.f32 %v1977_v3, %v1963_v49  ;;  %v2650_v24 = vpop.eup %2649  ;;  %v1826_v15 = vsub.f32 0.0, %v3844_v31  ;;  %v1840_v45 = vmax.f32 %v1824_v26, 0.0 }
 0x1ba   :  { %v1950_v13 = vmul.f32 0.6931472, %v2648_v62  ;;  %v1966_v54 = vadd.f32 %v1946_v30, %v1838_v23  ;;  %v1402_v36 = vadd.f32 %v3926_v19, %v3925_v44  ;;  %v1595_v56 = vadd.f32 %v1594_v33, %v1580_v29 }
 0x1bb   :  { %v1979_v37 = vadd.f32 %v1978_v18, %v1964_v39  ;;  %v1775_v51 = vadd.f32 %v1759_v14, %v3927_v27  ;;  %v1841_v38 = vmax.f32 %v1825_v2, 0.0  ;;  %v1789_v4 = vadd.f32 %v1788_v22, %v1774_v28 }
 0x1bc   :  { %v2652_v41 = vpop.eup %2651  ;;  %v1952_v42 = vmul.f32 0.6931472, %v2650_v24  ;;  %v1967_v32 = vadd.f32 %v1948_v48, %v1839_v12  ;;  %v1842_v20 = vmax.f32 %v1826_v15, 0.0  ;;  %v1968_v52 = vadd.f32 %v1950_v13, %v1840_v45 }
 0x1bd   :  { %v1980_v17 = vadd.f32 %v1979_v37, %v1965_v47  ;;  %v1954_v25 = vmul.f32 0.6931472, %v2652_v41  ;;  %v1597_v5 = vadd.f32 %v1595_v56, %v1402_v36  ;;  %v1790_v63 = vadd.f32 %v1789_v4, %v1775_v51 }
 0x1be   :  { %v1969_v9 = vadd.f32 %v1952_v42, %v1841_v38 }
 0x1bf   :  { %v1981_v31 = vadd.f32 %v1980_v17, %v1966_v54  ;;  %v1970_v35 = vadd.f32 %v1954_v25, %v1842_v20  ;;  %v1792_v6 = vadd.f32 %v1790_v63, %v1597_v5 }
 0x1c1   :  { %v1982_v21 = vadd.f32 %v1981_v31, %v1967_v32 }
 0x1c3   :  { %v1983_v40 = vadd.f32 %v1982_v21, %v1968_v52 }
 0x1c5   :  { %v1984_v43 = vadd.f32 %v1983_v40, %v1969_v9 }
 0x1c7   :  { %v1985_v1 = vadd.f32 %v1984_v43, %v1970_v35 }
 0x1c9   :  { %v1987_v0 = vadd.f32 %v1985_v1, %v1792_v6 }
 0x1cb   :  { %1988 = vst [vmem:[#allocation5] sm:$0xff] %v1987_v0 }
 0x1cc   :  { %1999 = dma.vmem_to_hbm [thread:$0]  %s1995_s13, 128, %s1997_s16, [#allocation4]  }
 0x1cd   :  { %2703 = dma.done.wait [#allocation4], 128  }
 0x1ce   :  { %2704 = vsyncadd [#allocation4], 4294967168 }
 0x1cf   :  { %2004 = vsyncpa [#allocation3], 1 }
 0x1d0   :  { %2005 = vsyncpa [#allocation4], 1 }

</bundles_post_ra>
